<compile_context>
chip_gen: v5e
topology: v5e:2x2
jax: 0.10.0
libtpu: 0.0.40
codegen_flags: <defaults>
</compile_context>

<pallas_src>
import functools

import jax
import jax.numpy as jnp
from jax.experimental import pallas as pl
from jax.experimental.pallas import tpu as pltpu

EMBEDDING_LEN = 32
VOCAB = 10000
# MLP sizes from the PyTorch module: F*32 -> 1024 -> 512 -> 256 -> 128 -> 64 -> 1
HIDDEN = (1024, 512, 256, 128, 64, 1)


def _round_up(x, m):
    return ((x + m - 1) // m) * m


def _pick_tiling(b):
    """Return (block_m, n_tiles) for the batch axis.

    * b <= 128: one minimally padded tile (avoids duplicating the weight DMA
      across TensorCores when compute is tiny).
    * b > 128: an even number of tiles (>= 2) so v7x's two TensorCores get
      balanced work; each tile <= ~512 rows for long MXU streams; padding is
      bounded by < 8 rows per tile instead of up to a whole 256-row tile.
    """
    if b <= 128:
        n_tiles = 1
    else:
        n_tiles = _round_up(max(2, pl.cdiv(b, 512)), 2)
    block_m = _round_up(pl.cdiv(b, n_tiles), 8)
    return block_m, n_tiles


def _critic_mlp_kernel(x_ref,
                       w1, b1, w2, b2, w3, b3, w4, b4, w5, b5, w6t, b6,
                       o_ref):
    """One (TM, F*32) batch tile through the whole MLP.

    x_ref: (TM, F*32) bf16.  w1..w5: (in, out) bf16; b1..b5: (1, out) f32.
    w6t: (1, 64) bf16 (last layer weight, transposed); b6: (1, 1) f32.
    o_ref: (1, 1, TM) f32 -- lane-dense output row for this tile.
    """
    h = x_ref[...]                                        # (TM, F*32) bf16
    for w_ref, b_ref in ((w1, b1), (w2, b2), (w3, b3), (w4, b4), (w5, b5)):
        # bf16 x bf16 MXU matmul, f32 accumulation; bias + ReLU in f32,
        # then cast once so inter-layer traffic stays bf16.
        a = jnp.dot(h, w_ref[...], preferred_element_type=jnp.float32) + b_ref[...]
        h = jnp.maximum(a, 0.0).astype(jnp.bfloat16)
    # Final 64 -> 1 layer as a lane-dense (1, TM) row:
    #   out_row = w6^T (1, 64) @ h^T (64, TM)
    # This avoids a (TM, 1) masked partial-store writeback every grid step.
    row = jnp.dot(w6t[...], h.T, preferred_element_type=jnp.float32) + b6[...]
    o_ref[0] = row


def init_params(key, feature_len):
    """Deterministic synthetic parameters (shapes match the PyTorch module)."""
    keys = jax.random.split(key, 1 + 2 * len(HIDDEN))
    params = {}
    # base_embedding ~ randn(10000, 32), kept f32 like the PyTorch parameter.
    params["embedding"] = jax.random.normal(
        keys[0], (VOCAB, EMBEDDING_LEN), dtype=jnp.float32)

    dims = (feature_len * EMBEDDING_LEN,) + HIDDEN
    layers = []
    for i in range(len(HIDDEN)):
        fan_in, fan_out = dims[i], dims[i + 1]
        bound = 1.0 / (fan_in ** 0.5)
        w = jax.random.uniform(keys[1 + 2 * i], (fan_in, fan_out),
                               minval=-bound, maxval=bound, dtype=jnp.float32)
        b = jax.random.uniform(keys[2 + 2 * i], (fan_out,),
                               minval=-bound, maxval=bound, dtype=jnp.float32)
        # Weights stored bf16 (halves weight DMA, bf16-native MXU); bias f32.
        layers.append((w.astype(jnp.bfloat16), b))
    params["layers"] = layers
    return params


@functools.partial(jax.jit, static_argnames=("feature_len",))
def critic_forward(x, params, *, feature_len):
    """Replicates Critic.forward: embedding gather -> flatten -> MLP kernel."""
    b = x.shape[0]
    feat_dim = feature_len * EMBEDDING_LEN

    # ids = x.view(-1, 1).to(long); base_embedding[ids, :].view(-1, F*32)
    # NOTE: jnp.take clamps out-of-range ids (PyTorch indexing would raise).
    ids = x.reshape(-1).astype(jnp.int32)
    batch_input = jnp.take(params["embedding"], ids, axis=0)
    # Cast activations to bf16 before they round-trip HBM (halves DMA traffic;
    # numerics identical to casting inside the kernel before the first dot).
    batch_input = batch_input.astype(jnp.bfloat16).reshape(b, feat_dim)

    block_m, n_tiles = _pick_tiling(b)
    b_pad = block_m * n_tiles
    if b_pad != b:
        batch_input = jnp.pad(batch_input, ((0, b_pad - b), (0, 0)))

    layers = params["layers"]
    flat_args = [batch_input]
    in_specs = [pl.BlockSpec((block_m, feat_dim), lambda i: (i, 0))]
    for idx, (w, bias) in enumerate(layers):
        w_arg = w.T if idx == len(layers) - 1 else w        # last layer: (1, 64)
        b_arg = bias.reshape(1, -1)
        flat_args += [w_arg, b_arg]
        # Constant block index -> weights stay VMEM-resident across grid steps.
        in_specs += [pl.BlockSpec(w_arg.shape, lambda i: (0, 0)),
                     pl.BlockSpec(b_arg.shape, lambda i: (0, 0))]

    dims = (feat_dim,) + HIDDEN
    flops = 2 * b_pad * sum(dims[i] * dims[i + 1] for i in range(len(HIDDEN)))
    weight_bytes = sum(int(w.size) * w.dtype.itemsize +
                       int(bias.size) * bias.dtype.itemsize
                       for w, bias in layers)
    bytes_accessed = weight_bytes + b_pad * feat_dim * 2 + b_pad * 4

    out = pl.pallas_call(
        _critic_mlp_kernel,
        # Lane-dense output: (n_tiles, 1, block_m) f32, one (1, 1, TM) row per
        # grid step; reshaped back to (B, 1) below.
        out_shape=jax.ShapeDtypeStruct((n_tiles, 1, block_m), jnp.float32),
        grid_spec=pltpu.PrefetchScalarGridSpec(
            num_scalar_prefetch=0,
            grid=(n_tiles,),
            in_specs=in_specs,
            out_specs=pl.BlockSpec((1, 1, block_m), lambda i: (i, 0, 0)),
        ),
        compiler_params=pltpu.CompilerParams(
            # Batch tiles are independent -> megacore-shardable on v7x.
            dimension_semantics=("parallel",),
            # 32 MiB fits v5e/v6e (128 MiB) and v7x (64 MiB) with headroom;
            # actual need is ~1.3 MB of bf16 weights + a few MB of tiles.
            vmem_limit_bytes=32 << 20,
        ),
        cost_estimate=pl.CostEstimate(
            flops=flops, transcendentals=0, bytes_accessed=bytes_accessed),
    )(*flat_args)
    return out.reshape(b_pad, 1)[:b]


def _reference(x, params, feature_len):
    """Plain-JAX reference using the same bf16 math as the kernel."""
    b = x.shape[0]
    ids = x.reshape(-1).astype(jnp.int32)
    h = jnp.take(params["embedding"], ids, axis=0).astype(jnp.bfloat16)
    h = h.reshape(b, feature_len * EMBEDDING_LEN)
    for w, bias in params["layers"][:-1]:
        a = jnp.dot(h, w, preferred_element_type=jnp.float32) + bias
        h = jnp.maximum(a, 0.0).astype(jnp.bfloat16)
    w6, b6 = params["layers"][-1]
    return jnp.dot(h, w6, preferred_element_type=jnp.float32) + b6


if __name__ == "__main__":
    FEATURE_LEN = 16   # ctor arg of Critic (any value works)

    key = jax.random.PRNGKey(0)
    k_param, k_x1, k_x2 = jax.random.split(key, 3)
    params = init_params(k_param, FEATURE_LEN)

    # Case 1: small batch (single tile path).  Ids arrive as floats, like the
    # PyTorch code.
    BATCH = 8
    x_ids = jax.random.randint(k_x1, (BATCH, FEATURE_LEN), 0, VOCAB)
    x = x_ids.astype(jnp.float32)
    y = jax.block_until_ready(critic_forward(x, params, feature_len=FEATURE_LEN))
    ref = _reference(x, params, FEATURE_LEN)
    assert y.shape == (BATCH, 1)
    assert jnp.allclose(y, ref, atol=2e-2, rtol=2e-2), (y, ref)

    # Case 2: multi-tile path (2 tiles, non-128-multiple tile, padded rows).
    BATCH2 = 200
    x2_ids = jax.random.randint(k_x2, (BATCH2, FEATURE_LEN), 0, VOCAB)
    x2 = x2_ids.astype(jnp.float32)
    y2 = jax.block_until_ready(critic_forward(x2, params, feature_len=FEATURE_LEN))
    ref2 = _reference(x2, params, FEATURE_LEN)
    assert y2.shape == (BATCH2, 1)
    assert jnp.allclose(y2, ref2, atol=2e-2, rtol=2e-2), (y2, ref2)

    print("KERNEL_OK")
</pallas_src>

<mosaic_0001>
module attributes {stable_mosaic.version = 11 : i64} {
  func.func @_critic_mlp_kernel(%arg0: i32, %arg1: memref<8x512xbf16, #tpu.memory_space<vmem>>, %arg2: memref<512x1024xbf16, #tpu.memory_space<vmem>>, %arg3: memref<1x1024xf32, #tpu.memory_space<vmem>>, %arg4: memref<1024x512xbf16, #tpu.memory_space<vmem>>, %arg5: memref<1x512xf32, #tpu.memory_space<vmem>>, %arg6: memref<512x256xbf16, #tpu.memory_space<vmem>>, %arg7: memref<1x256xf32, #tpu.memory_space<vmem>>, %arg8: memref<256x128xbf16, #tpu.memory_space<vmem>>, %arg9: memref<1x128xf32, #tpu.memory_space<vmem>>, %arg10: memref<128x64xbf16, #tpu.memory_space<vmem>>, %arg11: memref<1x64xf32, #tpu.memory_space<vmem>>, %arg12: memref<1x64xbf16, #tpu.memory_space<vmem>>, %arg13: memref<1x1xf32, #tpu.memory_space<vmem>>, %arg14: memref<1x1x8xf32, #tpu.memory_space<vmem>>) attributes {dimension_semantics = [#tpu.dimension_semantics<parallel>], iteration_bounds = array<i64: 1>, scalar_prefetch = 0 : i64, scratch_operands = 0 : i64, tpu.core_type = #tpu.core_type<tc>, window_params = [{transform_indices = @transform_0, window_bounds = array<i64: 8, 512>}, {pipeline_mode = #tpu.pipeline_mode<synchronous>, transform_indices = @transform_1, window_bounds = array<i64: 512, 1024>}, {pipeline_mode = #tpu.pipeline_mode<synchronous>, transform_indices = @transform_2, window_bounds = array<i64: 1, 1024>}, {pipeline_mode = #tpu.pipeline_mode<synchronous>, transform_indices = @transform_3, window_bounds = array<i64: 1024, 512>}, {pipeline_mode = #tpu.pipeline_mode<synchronous>, transform_indices = @transform_4, window_bounds = array<i64: 1, 512>}, {pipeline_mode = #tpu.pipeline_mode<synchronous>, transform_indices = @transform_5, window_bounds = array<i64: 512, 256>}, {pipeline_mode = #tpu.pipeline_mode<synchronous>, transform_indices = @transform_6, window_bounds = array<i64: 1, 256>}, {pipeline_mode = #tpu.pipeline_mode<synchronous>, transform_indices = @transform_7, window_bounds = array<i64: 256, 128>}, {pipeline_mode = #tpu.pipeline_mode<synchronous>, transform_indices = @transform_8, window_bounds = array<i64: 1, 128>}, {pipeline_mode = #tpu.pipeline_mode<synchronous>, transform_indices = @transform_9, window_bounds = array<i64: 128, 64>}, {pipeline_mode = #tpu.pipeline_mode<synchronous>, transform_indices = @transform_10, window_bounds = array<i64: 1, 64>}, {pipeline_mode = #tpu.pipeline_mode<synchronous>, transform_indices = @transform_11, window_bounds = array<i64: 1, 64>}, {pipeline_mode = #tpu.pipeline_mode<synchronous>, transform_indices = @transform_12, window_bounds = array<i64: 1, 1>}, {transform_indices = @transform_13, window_bounds = array<i64: 1, 1, 8>}]} {
    %c0 = arith.constant 0 : index
    %c0_0 = arith.constant 0 : index
    %0 = vector.load %arg1[%c0, %c0_0] : memref<8x512xbf16, #tpu.memory_space<vmem>>, vector<8x512xbf16>
    %c0_1 = arith.constant 0 : index
    %c0_2 = arith.constant 0 : index
    %1 = vector.load %arg2[%c0_1, %c0_2] : memref<512x1024xbf16, #tpu.memory_space<vmem>>, vector<512x1024xbf16>
    %cst = arith.constant dense<0.000000e+00> : vector<8x1024xf32>
    %2 = tpu.matmul %0, %1, %cst {dimension_numbers = #tpu.dot_dimension_numbers<[1], [0], [0], [1], [0, 0, 1, 1], [], []>} : vector<8x512xbf16>, vector<512x1024xbf16>, vector<8x1024xf32> -> vector<8x1024xf32>
    %c0_3 = arith.constant 0 : index
    %c0_4 = arith.constant 0 : index
    %3 = vector.load %arg3[%c0_3, %c0_4] : memref<1x1024xf32, #tpu.memory_space<vmem>>, vector<1x1024xf32>
    %4 = vector.broadcast %3 : vector<1x1024xf32> to vector<8x1024xf32>
    %5 = arith.addf %2, %4 : vector<8x1024xf32>
    %cst_5 = arith.constant 0.000000e+00 : f32
    %6 = vector.broadcast %cst_5 : f32 to vector<8x1024xf32>
    %7 = arith.maximumf %5, %6 : vector<8x1024xf32>
    %8 = arith.truncf %7 : vector<8x1024xf32> to vector<8x1024xbf16>
    %c0_6 = arith.constant 0 : index
    %c0_7 = arith.constant 0 : index
    %9 = vector.load %arg4[%c0_6, %c0_7] : memref<1024x512xbf16, #tpu.memory_space<vmem>>, vector<1024x512xbf16>
    %cst_8 = arith.constant dense<0.000000e+00> : vector<8x512xf32>
    %10 = tpu.matmul %8, %9, %cst_8 {dimension_numbers = #tpu.dot_dimension_numbers<[1], [0], [0], [1], [0, 0, 1, 1], [], []>} : vector<8x1024xbf16>, vector<1024x512xbf16>, vector<8x512xf32> -> vector<8x512xf32>
    %c0_9 = arith.constant 0 : index
    %c0_10 = arith.constant 0 : index
    %11 = vector.load %arg5[%c0_9, %c0_10] : memref<1x512xf32, #tpu.memory_space<vmem>>, vector<1x512xf32>
    %12 = vector.broadcast %11 : vector<1x512xf32> to vector<8x512xf32>
    %13 = arith.addf %10, %12 : vector<8x512xf32>
    %cst_11 = arith.constant 0.000000e+00 : f32
    %14 = vector.broadcast %cst_11 : f32 to vector<8x512xf32>
    %15 = arith.maximumf %13, %14 : vector<8x512xf32>
    %16 = arith.truncf %15 : vector<8x512xf32> to vector<8x512xbf16>
    %c0_12 = arith.constant 0 : index
    %c0_13 = arith.constant 0 : index
    %17 = vector.load %arg6[%c0_12, %c0_13] : memref<512x256xbf16, #tpu.memory_space<vmem>>, vector<512x256xbf16>
    %cst_14 = arith.constant dense<0.000000e+00> : vector<8x256xf32>
    %18 = tpu.matmul %16, %17, %cst_14 {dimension_numbers = #tpu.dot_dimension_numbers<[1], [0], [0], [1], [0, 0, 1, 1], [], []>} : vector<8x512xbf16>, vector<512x256xbf16>, vector<8x256xf32> -> vector<8x256xf32>
    %c0_15 = arith.constant 0 : index
    %c0_16 = arith.constant 0 : index
    %19 = vector.load %arg7[%c0_15, %c0_16] : memref<1x256xf32, #tpu.memory_space<vmem>>, vector<1x256xf32>
    %20 = vector.broadcast %19 : vector<1x256xf32> to vector<8x256xf32>
    %21 = arith.addf %18, %20 : vector<8x256xf32>
    %cst_17 = arith.constant 0.000000e+00 : f32
    %22 = vector.broadcast %cst_17 : f32 to vector<8x256xf32>
    %23 = arith.maximumf %21, %22 : vector<8x256xf32>
    %24 = arith.truncf %23 : vector<8x256xf32> to vector<8x256xbf16>
    %c0_18 = arith.constant 0 : index
    %c0_19 = arith.constant 0 : index
    %25 = vector.load %arg8[%c0_18, %c0_19] : memref<256x128xbf16, #tpu.memory_space<vmem>>, vector<256x128xbf16>
    %cst_20 = arith.constant dense<0.000000e+00> : vector<8x128xf32>
    %26 = tpu.matmul %24, %25, %cst_20 {dimension_numbers = #tpu.dot_dimension_numbers<[1], [0], [0], [1], [0, 0, 1, 1], [], []>} : vector<8x256xbf16>, vector<256x128xbf16>, vector<8x128xf32> -> vector<8x128xf32>
    %c0_21 = arith.constant 0 : index
    %c0_22 = arith.constant 0 : index
    %27 = vector.load %arg9[%c0_21, %c0_22] : memref<1x128xf32, #tpu.memory_space<vmem>>, vector<1x128xf32>
    %28 = vector.broadcast %27 : vector<1x128xf32> to vector<8x128xf32>
    %29 = arith.addf %26, %28 : vector<8x128xf32>
    %cst_23 = arith.constant 0.000000e+00 : f32
    %30 = vector.broadcast %cst_23 : f32 to vector<8x128xf32>
    %31 = arith.maximumf %29, %30 : vector<8x128xf32>
    %32 = arith.truncf %31 : vector<8x128xf32> to vector<8x128xbf16>
    %c0_24 = arith.constant 0 : index
    %c0_25 = arith.constant 0 : index
    %33 = vector.load %arg10[%c0_24, %c0_25] : memref<128x64xbf16, #tpu.memory_space<vmem>>, vector<128x64xbf16>
    %cst_26 = arith.constant dense<0.000000e+00> : vector<8x64xf32>
    %34 = tpu.matmul %32, %33, %cst_26 {dimension_numbers = #tpu.dot_dimension_numbers<[1], [0], [0], [1], [0, 0, 1, 1], [], []>} : vector<8x128xbf16>, vector<128x64xbf16>, vector<8x64xf32> -> vector<8x64xf32>
    %c0_27 = arith.constant 0 : index
    %c0_28 = arith.constant 0 : index
    %35 = vector.load %arg11[%c0_27, %c0_28] : memref<1x64xf32, #tpu.memory_space<vmem>>, vector<1x64xf32>
    %36 = vector.broadcast %35 : vector<1x64xf32> to vector<8x64xf32>
    %37 = arith.addf %34, %36 : vector<8x64xf32>
    %cst_29 = arith.constant 0.000000e+00 : f32
    %38 = vector.broadcast %cst_29 : f32 to vector<8x64xf32>
    %39 = arith.maximumf %37, %38 : vector<8x64xf32>
    %40 = arith.truncf %39 : vector<8x64xf32> to vector<8x64xbf16>
    %c0_30 = arith.constant 0 : index
    %c0_31 = arith.constant 0 : index
    %41 = vector.load %arg12[%c0_30, %c0_31] : memref<1x64xbf16, #tpu.memory_space<vmem>>, vector<1x64xbf16>
    %42 = tpu.transpose %40, [1, 0] : vector<8x64xbf16> -> vector<64x8xbf16>
    %cst_32 = arith.constant dense<0.000000e+00> : vector<1x8xf32>
    %43 = tpu.matmul %41, %42, %cst_32 {dimension_numbers = #tpu.dot_dimension_numbers<[1], [0], [0], [1], [0, 0, 1, 1], [], []>} : vector<1x64xbf16>, vector<64x8xbf16>, vector<1x8xf32> -> vector<1x8xf32>
    %c0_33 = arith.constant 0 : index
    %c0_34 = arith.constant 0 : index
    %44 = vector.load %arg13[%c0_33, %c0_34] : memref<1x1xf32, #tpu.memory_space<vmem>>, vector<1x1xf32>
    %45 = vector.broadcast %44 : vector<1x1xf32> to vector<1x8xf32>
    %46 = arith.addf %43, %45 : vector<1x8xf32>
    %c0_35 = arith.constant 0 : index
    %c0_36 = arith.constant 0 : index
    %c0_37 = arith.constant 0 : index
    %47 = vector.load %arg14[%c0_35, %c0_36, %c0_37] : memref<1x1x8xf32, #tpu.memory_space<vmem>>, vector<1x1x8xf32>
    %48 = vector.shape_cast %47 : vector<1x1x8xf32> to vector<1x8xf32>
    %49 = vector.shape_cast %46 : vector<1x8xf32> to vector<1x1x8xf32>
    tpu.vector_store %arg14[%c0_35, %c0_36, %c0_37], %49 {strides = array<i32>} : memref<1x1x8xf32, #tpu.memory_space<vmem>>, vector<1x1x8xf32>,
    return
  }
  func.func @transform_0(%arg0: i32) -> (i32, i32) {
    %c0_i32 = arith.constant 0 : i32
    %c0_i32_0 = arith.constant 0 : i32
    return %arg0, %c0_i32 : i32, i32
  }
  func.func @transform_1(%arg0: i32) -> (i32, i32) {
    %c0_i32 = arith.constant 0 : i32
    %c0_i32_0 = arith.constant 0 : i32
    %c0_i32_1 = arith.constant 0 : i32
    return %c0_i32, %c0_i32_0 : i32, i32
  }
  func.func @transform_2(%arg0: i32) -> (i32, i32) {
    %c0_i32 = arith.constant 0 : i32
    %c0_i32_0 = arith.constant 0 : i32
    %c0_i32_1 = arith.constant 0 : i32
    return %c0_i32, %c0_i32_0 : i32, i32
  }
  func.func @transform_3(%arg0: i32) -> (i32, i32) {
    %c0_i32 = arith.constant 0 : i32
    %c0_i32_0 = arith.constant 0 : i32
    %c0_i32_1 = arith.constant 0 : i32
    return %c0_i32, %c0_i32_0 : i32, i32
  }
  func.func @transform_4(%arg0: i32) -> (i32, i32) {
    %c0_i32 = arith.constant 0 : i32
    %c0_i32_0 = arith.constant 0 : i32
    %c0_i32_1 = arith.constant 0 : i32
    return %c0_i32, %c0_i32_0 : i32, i32
  }
  func.func @transform_5(%arg0: i32) -> (i32, i32) {
    %c0_i32 = arith.constant 0 : i32
    %c0_i32_0 = arith.constant 0 : i32
    %c0_i32_1 = arith.constant 0 : i32
    return %c0_i32, %c0_i32_0 : i32, i32
  }
  func.func @transform_6(%arg0: i32) -> (i32, i32) {
    %c0_i32 = arith.constant 0 : i32
    %c0_i32_0 = arith.constant 0 : i32
    %c0_i32_1 = arith.constant 0 : i32
    return %c0_i32, %c0_i32_0 : i32, i32
  }
  func.func @transform_7(%arg0: i32) -> (i32, i32) {
    %c0_i32 = arith.constant 0 : i32
    %c0_i32_0 = arith.constant 0 : i32
    %c0_i32_1 = arith.constant 0 : i32
    return %c0_i32, %c0_i32_0 : i32, i32
  }
  func.func @transform_8(%arg0: i32) -> (i32, i32) {
    %c0_i32 = arith.constant 0 : i32
    %c0_i32_0 = arith.constant 0 : i32
    %c0_i32_1 = arith.constant 0 : i32
    return %c0_i32, %c0_i32_0 : i32, i32
  }
  func.func @transform_9(%arg0: i32) -> (i32, i32) {
    %c0_i32 = arith.constant 0 : i32
    %c0_i32_0 = arith.constant 0 : i32
    %c0_i32_1 = arith.constant 0 : i32
    return %c0_i32, %c0_i32_0 : i32, i32
  }
  func.func @transform_10(%arg0: i32) -> (i32, i32) {
    %c0_i32 = arith.constant 0 : i32
    %c0_i32_0 = arith.constant 0 : i32
    %c0_i32_1 = arith.constant 0 : i32
    return %c0_i32, %c0_i32_0 : i32, i32
  }
  func.func @transform_11(%arg0: i32) -> (i32, i32) {
    %c0_i32 = arith.constant 0 : i32
    %c0_i32_0 = arith.constant 0 : i32
    %c0_i32_1 = arith.constant 0 : i32
    return %c0_i32, %c0_i32_0 : i32, i32
  }
  func.func @transform_12(%arg0: i32) -> (i32, i32) {
    %c0_i32 = arith.constant 0 : i32
    %c0_i32_0 = arith.constant 0 : i32
    %c0_i32_1 = arith.constant 0 : i32
    return %c0_i32, %c0_i32_0 : i32, i32
  }
  func.func @transform_13(%arg0: i32) -> (i32, i32, i32) {
    %c0_i32 = arith.constant 0 : i32
    %c0_i32_0 = arith.constant 0 : i32
    %c0_i32_1 = arith.constant 0 : i32
    return %arg0, %c0_i32, %c0_i32_0 : i32, i32, i32
  }
}

</mosaic_0001>

<bundles_post_ra>
// kernel: critic_forward.1
= control target key start
LH: loop header
LB: loop body
LE: loop exit
PB: predicated region body
PF: predicated region fallthrough
CT: control target
= control target key end

     0   :  { %s11651_s0 = inlined_call_operand.vmem [shape: bf16[8,512], index: 0, kind: input, shape index: {}]   ;;  %s11652_s1 = inlined_call_operand.vmem [shape: bf16[512,1024], index: 1, kind: input, shape index: {}]   ;;  %s11653_s2 = inlined_call_operand.vmem [shape: f32[1,1024], index: 2, kind: input, shape index: {}]   ;;  %s11654_s3 = inlined_call_operand.vmem [shape: bf16[1024,512], index: 3, kind: input, shape index: {}]   ;;  %s11655_s4 = inlined_call_operand.vmem [shape: f32[1,512], index: 4, kind: input, shape index: {}]   ;;  %s11656_s5 = inlined_call_operand.vmem [shape: bf16[512,256], index: 5, kind: input, shape index: {}]   ;;  %s11657_s6 = inlined_call_operand.vmem [shape: f32[1,256], index: 6, kind: input, shape index: {}]   ;;  %s11658_s7 = inlined_call_operand.vmem [shape: bf16[256,128], index: 7, kind: input, shape index: {}]   ;;  %s11659_s8 = inlined_call_operand.vmem [shape: f32[1,128], index: 8, kind: input, shape index: {}]   ;;  %s11660_s9 = inlined_call_operand.vmem [shape: bf16[128,64], index: 9, kind: input, shape index: {}]   ;;  %s11661_s10 = inlined_call_operand.vmem [shape: f32[1,64], index: 10, kind: input, shape index: {}]   ;;  %s11662_s11 = inlined_call_operand.vmem [shape: bf16[1,64], index: 11, kind: input, shape index: {}]   ;;  %s11663_s12 = inlined_call_operand.<no memory space> [shape: f32[1,1], index: 12, kind: input, shape index: {}]   ;;  %s11664_s13 = inlined_call_operand.hbm [shape: f32[1,1,8], index: 13, kind: output, shape index: {}]  }
   0x1   :  { %v18_v0 = vstv %s11663_s12 }
   0x2   :  { %19 = vst [vmem:[#allocation2] sm:$0x1] %v18_v0 }
   0x3   :  { %v5033_v1 = vld [vmem:[%s11652_s1 + $0x1c0] sm:$0xf] }
   0x4   :  { %v7268_v2 = vld [vmem:[%s11652_s1 + $0x1dc] sm:$0xf0] }
   0x5   :  { %v5289_v3 = vld [vmem:[%s11652_s1 + $0x3c0] sm:$0xf]  ;;  %v5034_v4 = vor.u32 %v7268_v2, %v5033_v1 }
   0x6   :  { %v7332_v5 = vld [vmem:[%s11652_s1 + $0x3dc] sm:$0xf0] }
   0x7   :  { %v5545_v6 = vld [vmem:[%s11652_s1 + $0x5c0] sm:$0xf]  ;;  %v5290_v8 = vor.u32 %v7332_v5, %v5289_v3  ;;  %1618 = vmatpush.bf16.msra.mxu0 %v5034_v4 }
   0x8   :  { %v7396_v7 = vld [vmem:[%s11652_s1 + $0x5dc] sm:$0xf0] }
   0x9   :  { %v5546_v9 = vor.u32 %v7396_v7, %v5545_v6  ;;  %v5801_v10 = vld [vmem:[%s11652_s1 + $0x7c0] sm:$0xf]  ;;  %1631 = vmatpush.bf16.msra.mxu1 %v5290_v8 }
   0xa   :  { %v7460_v11 = vld [vmem:[%s11652_s1 + $0x7dc] sm:$0xf0] }
   0xb   :  { %v5001_v12 = vld [vmem:[%s11652_s1 + $0x180] sm:$0xf]  ;;  %v5802_v13 = vor.u32 %v7460_v11, %v5801_v10  ;;  %1644 = vmatpush.bf16.msra.mxu2 %v5546_v9 }
   0xc   :  { %v7260_v14 = vld [vmem:[%s11652_s1 + $0x19c] sm:$0xf0] }
   0xd   :  { %v5257_v15 = vld [vmem:[%s11652_s1 + $0x380] sm:$0xf]  ;;  %v5002_v17 = vor.u32 %v7260_v14, %v5001_v12  ;;  %1657 = vmatpush.bf16.msra.mxu3 %v5802_v13 }
   0xe   :  { %v7324_v16 = vld [vmem:[%s11652_s1 + $0x39c] sm:$0xf0] }
   0xf   :  { %v5258_v18 = vor.u32 %v7324_v16, %v5257_v15  ;;  %v5513_v19 = vld [vmem:[%s11652_s1 + $0x580] sm:$0xf]  ;;  %1619 = vmatpush.bf16.msra.mxu0 %v5002_v17 }
  0x10   :  { %v7388_v20 = vld [vmem:[%s11652_s1 + $0x59c] sm:$0xf0] }
  0x11   :  { %v5769_v21 = vld [vmem:[%s11652_s1 + $0x780] sm:$0xf]  ;;  %v5514_v22 = vor.u32 %v7388_v20, %v5513_v19  ;;  %1632 = vmatpush.bf16.msra.mxu1 %v5258_v18 }
  0x12   :  { %v7452_v23 = vld [vmem:[%s11652_s1 + $0x79c] sm:$0xf0] }
  0x13   :  { %v4969_v24 = vld [vmem:[%s11652_s1 + $0x140] sm:$0xf]  ;;  %v5770_v26 = vor.u32 %v7452_v23, %v5769_v21  ;;  %1645 = vmatpush.bf16.msra.mxu2 %v5514_v22 }
  0x14   :  { %v7252_v25 = vld [vmem:[%s11652_s1 + $0x15c] sm:$0xf0] }
  0x15   :  { %v5225_v27 = vld [vmem:[%s11652_s1 + $0x340] sm:$0xf]  ;;  %v4970_v30 = vor.u32 %v7252_v25, %v4969_v24  ;;  %1658 = vmatpush.bf16.msra.mxu3 %v5770_v26 }
  0x16   :  { %v7316_v28 = vld [vmem:[%s11652_s1 + $0x35c] sm:$0xf0] }
  0x17   :  { %v5481_v29 = vld [vmem:[%s11652_s1 + $0x540] sm:$0xf]  ;;  %v5226_v34 = vor.u32 %v7316_v28, %v5225_v27  ;;  %1620 = vmatpush.bf16.msra.mxu0 %v4970_v30  ;;  %v5035_v30 = vld [vmem:[%s11652_s1 + $0x1e0] sm:$0xf0] }
  0x18   :  { %v7380_v31 = vld [vmem:[%s11652_s1 + $0x55c] sm:$0xf0] }
  0x19   :  { %v5737_v32 = vld [vmem:[%s11652_s1 + $0x740] sm:$0xf]  ;;  %v5482_v35 = vor.u32 %v7380_v31, %v5481_v29  ;;  %1633 = vmatpush.bf16.msra.mxu1 %v5226_v34  ;;  %v7264_v29 = vld [vmem:[%s11652_s1 + $0x1c4] sm:$0xf] }
  0x1a   :  { %v7444_v33 = vld [vmem:[%s11652_s1 + $0x75c] sm:$0xf0]  ;;  %v7328_v31 = vld [vmem:[%s11652_s1 + $0x3c4] sm:$0xf] }
  0x1b   :  { %v4937_v36 = vld [vmem:[%s11652_s1 + $0x100] sm:$0xf]  ;;  %v5738_v39 = vor.u32 %v7444_v33, %v5737_v32  ;;  %1646 = vmatpush.bf16.msra.mxu2 %v5482_v35  ;;  %v5291_v33 = vld [vmem:[%s11652_s1 + $0x3e0] sm:$0xf0] }
  0x1c   :  { %v7244_v37 = vld [vmem:[%s11652_s1 + $0x11c] sm:$0xf0]  ;;  %v7392_v34 = vld [vmem:[%s11652_s1 + $0x5c4] sm:$0xf] }
  0x1d   :  { %v5193_v38 = vld [vmem:[%s11652_s1 + $0x300] sm:$0xf]  ;;  %v4938_v45 = vor.u32 %v7244_v37, %v4937_v36  ;;  %1659 = vmatpush.bf16.msra.mxu3 %v5738_v39  ;;  %v5547_v35 = vld [vmem:[%s11652_s1 + $0x5e0] sm:$0xf0] }
  0x1e   :  { %v7308_v40 = vld [vmem:[%s11652_s1 + $0x31c] sm:$0xf0]  ;;  %v5803_v39 = vld [vmem:[%s11652_s1 + $0x7e0] sm:$0xf0] }
  0x1f   :  { %v5449_v41 = vld [vmem:[%s11652_s1 + $0x500] sm:$0xf]  ;;  %v5194_v46 = vor.u32 %v7308_v40, %v5193_v38  ;;  %1621 = vmatpush.bf16.msra.mxu0 %v4938_v45  ;;  %v7456_v38 = vld [vmem:[%s11652_s1 + $0x7c4] sm:$0xf] }
  0x20   :  { %v7372_v42 = vld [vmem:[%s11652_s1 + $0x51c] sm:$0xf0]  ;;  %v5003_v45 = vld [vmem:[%s11652_s1 + $0x1a0] sm:$0xf0] }
  0x21   :  { %v5705_v43 = vld [vmem:[%s11652_s1 + $0x700] sm:$0xf]  ;;  %v5450_v47 = vor.u32 %v7372_v42, %v5449_v41  ;;  %1634 = vmatpush.bf16.msra.mxu1 %v5194_v46  ;;  %v5038_v41 = vor.u32 %v7264_v29, %v5035_v30  ;;  %v5294_v42 = vor.u32 %v7328_v31, %v5291_v33  ;;  %v7320_v46 = vld [vmem:[%s11652_s1 + $0x384] sm:$0xf] }
  0x22   :  { %v7436_v44 = vld [vmem:[%s11652_s1 + $0x71c] sm:$0xf0]  ;;  %v5163_v30 = vld [vmem:[%s11652_s1 + $0x2e0] sm:$0xf0] }
  0x23   :  { %v4905_v48 = vld [vmem:[%s11652_s1 + $0xc0] sm:$0xf]  ;;  %v5706_v51 = vor.u32 %v7436_v44, %v5705_v43  ;;  %1647 = vmatpush.bf16.msra.mxu2 %v5450_v47  ;;  %v5550_v43 = vor.u32 %v7392_v34, %v5547_v35  ;;  %v7256_v44 = vld [vmem:[%s11652_s1 + $0x184] sm:$0xf]  ;;  %v5806_v47 = vor.u32 %v7456_v38, %v5803_v39 }
  0x24   :  { %v7236_v49 = vld [vmem:[%s11652_s1 + $0xdc] sm:$0xf0]  ;;  %v7360_v31 = vld [vmem:[%s11652_s1 + $0x4c4] sm:$0xf] }
  0x25   :  { %v5161_v50 = vld [vmem:[%s11652_s1 + $0x2c0] sm:$0xf]  ;;  %v4906_v57 = vor.u32 %v7236_v49, %v4905_v48  ;;  %1660 = vmatpush.bf16.msra.mxu3 %v5706_v51  ;;  %v5259_v48 = vld [vmem:[%s11652_s1 + $0x3a0] sm:$0xf0] }
  0x26   :  { %v7300_v52 = vld [vmem:[%s11652_s1 + $0x2dc] sm:$0xf0]  ;;  %v7384_v49 = vld [vmem:[%s11652_s1 + $0x584] sm:$0xf] }
  0x27   :  { %v5417_v53 = vld [vmem:[%s11652_s1 + $0x4c0] sm:$0xf]  ;;  %v5162_v58 = vor.u32 %v7300_v52, %v5161_v50  ;;  %1622 = vmatpush.bf16.msra.mxu0 %v4906_v57  ;;  %v5515_v50 = vld [vmem:[%s11652_s1 + $0x5a0] sm:$0xf0] }
  0x28   :  { %v7364_v54 = vld [vmem:[%s11652_s1 + $0x4dc] sm:$0xf0]  ;;  %v7448_v51 = vld [vmem:[%s11652_s1 + $0x784] sm:$0xf] }
  0x29   :  { %v5673_v55 = vld [vmem:[%s11652_s1 + $0x6c0] sm:$0xf]  ;;  %v5418_v59 = vor.u32 %v7364_v54, %v5417_v53  ;;  %1635 = vmatpush.bf16.msra.mxu1 %v5162_v58  ;;  %v5771_v52 = vld [vmem:[%s11652_s1 + $0x7a0] sm:$0xf0]  ;;  %v5006_v53 = vor.u32 %v7256_v44, %v5003_v45 }
  0x2a   :  { %v7428_v56 = vld [vmem:[%s11652_s1 + $0x6dc] sm:$0xf0]  ;;  %v7248_v54 = vld [vmem:[%s11652_s1 + $0x144] sm:$0xf] }
  0x2b   :  { %v4873_v60 = vld [vmem:[%s11652_s1 + $0x80] sm:$0xf]  ;;  %v5674_v63 = vor.u32 %v7428_v56, %v5673_v55  ;;  %1648 = vmatpush.bf16.msra.mxu2 %v5418_v59  ;;  %v5262_v55 = vor.u32 %v7320_v46, %v5259_v48  ;;  %v5518_v56 = vor.u32 %v7384_v49, %v5515_v50  ;;  %v4971_v57 = vld [vmem:[%s11652_s1 + $0x160] sm:$0xf0] }
  0x2c   :  { %v7228_v61 = vld [vmem:[%s11652_s1 + $0x9c] sm:$0xf0]  ;;  %v7312_v58 = vld [vmem:[%s11652_s1 + $0x344] sm:$0xf] }
  0x2d   :  { %v5129_v62 = vld [vmem:[%s11652_s1 + $0x280] sm:$0xf]  ;;  %v4874_v5 = vor.u32 %v7228_v61, %v4873_v60  ;;  %1661 = vmatpush.bf16.msra.mxu3 %v5674_v63  ;;  %v5227_v59 = vld [vmem:[%s11652_s1 + $0x360] sm:$0xf0]  ;;  %v5774_v60 = vor.u32 %v7448_v51, %v5771_v52 }
  0x2e   :  { %v7292_v0 = vld [vmem:[%s11652_s1 + $0x29c] sm:$0xf0]  ;;  %v7376_v61 = vld [vmem:[%s11652_s1 + $0x544] sm:$0xf] }
  0x2f   :  { %v5385_v1 = vld [vmem:[%s11652_s1 + $0x480] sm:$0xf]  ;;  %v5130_v6 = vor.u32 %v7292_v0, %v5129_v62  ;;  %1623 = vmatpush.bf16.msra.mxu0 %v4874_v5  ;;  %v5483_v62 = vld [vmem:[%s11652_s1 + $0x560] sm:$0xf0] }
  0x30   :  { %v7356_v2 = vld [vmem:[%s11652_s1 + $0x49c] sm:$0xf0]  ;;  %v7440_v63 = vld [vmem:[%s11652_s1 + $0x744] sm:$0xf]  ;;  %v5486_v5 = vor.u32 %v7376_v61, %v5483_v62 }
  0x31   :  { %v5641_v3 = vld [vmem:[%s11652_s1 + $0x680] sm:$0xf]  ;;  %v5386_v7 = vor.u32 %v7356_v2, %v5385_v1  ;;  %1636 = vmatpush.bf16.msra.mxu1 %v5130_v6  ;;  %v5739_v0 = vld [vmem:[%s11652_s1 + $0x760] sm:$0xf0]  ;;  %v4974_v1 = vor.u32 %v7248_v54, %v4971_v57  ;;  %v5230_v2 = vor.u32 %v7312_v58, %v5227_v59 }
  0x32   :  { %v7420_v4 = vld [vmem:[%s11652_s1 + $0x69c] sm:$0xf0]  ;;  %v7240_v6 = vld [vmem:[%s11652_s1 + $0x104] sm:$0xf] }
  0x33   :  { %v4841_v8 = vld [vmem:[%s11652_s1 + $0x40] sm:$0xf]  ;;  %v5642_v11 = vor.u32 %v7420_v4, %v5641_v3  ;;  %1649 = vmatpush.bf16.msra.mxu2 %v5386_v7  ;;  %v49_v3 = vld [vmem:[%s11651_s0 + $0x8] sm:$0xff]  ;;  %v4939_v7 = vld [vmem:[%s11652_s1 + $0x120] sm:$0xf0] }
  0x34   :  { %v7220_v9 = vld [vmem:[%s11652_s1 + $0x5c] sm:$0xf0]  ;;  %v7424_v33 = vld [vmem:[%s11652_s1 + $0x6c4] sm:$0xf] }
  0x35   :  { %v5097_v10 = vld [vmem:[%s11652_s1 + $0x240] sm:$0xf]  ;;  %v4842_v17 = vor.u32 %v7220_v9, %v4841_v8  ;;  %1662 = vmatpush.bf16.msra.mxu3 %v5642_v11  ;;  %v7304_v8 = vld [vmem:[%s11652_s1 + $0x304] sm:$0xf]  ;;  %v328_v9 = vunpack.c.l.b16 %v49_v3  ;;  %v329_v11 = vunpack.c.h.b16 %v49_v3 }
  0x36   :  { %v7284_v12 = vld [vmem:[%s11652_s1 + $0x25c] sm:$0xf0]  ;;  %v5675_v34 = vld [vmem:[%s11652_s1 + $0x6e0] sm:$0xf0] }
  0x37   :  { %v5353_v13 = vld [vmem:[%s11652_s1 + $0x440] sm:$0xf]  ;;  %v5098_v20 = vor.u32 %v7284_v12, %v5097_v10  ;;  %1624 = vmatpush.bf16.msra.mxu0 %v4842_v17  ;;  %v5742_v12 = vor.u32 %v7440_v63, %v5739_v0  ;;  %v7432_v17 = vld [vmem:[%s11652_s1 + $0x704] sm:$0xf] }
  0x38   :  { %v7348_v14 = vld [vmem:[%s11652_s1 + $0x45c] sm:$0xf0]  ;;  %v7224_v38 = vld [vmem:[%s11652_s1 + $0x84] sm:$0xf] }
  0x39   :  { %v5609_v15 = vld [vmem:[%s11652_s1 + $0x640] sm:$0xf]  ;;  %v5354_v21 = vor.u32 %v7348_v14, %v5353_v13  ;;  %1637 = vmatpush.bf16.msra.mxu1 %v5098_v20  ;;  %v5195_v13 = vld [vmem:[%s11652_s1 + $0x320] sm:$0xf0] }
  0x3a   :  { %v7412_v16 = vld [vmem:[%s11652_s1 + $0x65c] sm:$0xf0]  ;;  %v7368_v14 = vld [vmem:[%s11652_s1 + $0x504] sm:$0xf] }
  0x3b   :  { %v4809_v18 = vld [vmem:[%s11652_s1] sm:$0xf]  ;;  %v5610_v25 = vor.u32 %v7412_v16, %v5609_v15  ;;  %1650 = vmatpush.bf16.msra.mxu2 %v5354_v21  ;;  %v5451_v15 = vld [vmem:[%s11652_s1 + $0x520] sm:$0xf0]  ;;  %v8214_v21 = vpack.c.b16 %v329_v11, %v329_v11  ;;  %v7333_v11 = vld [vmem:[%s11652_s1 + $0x3e4] sm:$0xf0] }
  0x3c   :  { %v7212_v19 = vld [vmem:[%s11652_s1 + $0x1c] sm:$0xf0]  ;;  %v4875_v39 = vld [vmem:[%s11652_s1 + $0xa0] sm:$0xf0] }
  0x3d   :  { %v5065_v22 = vld [vmem:[%s11652_s1 + $0x200] sm:$0xf]  ;;  %v4810_v32 = vor.u32 %v7212_v19, %v4809_v18  ;;  %1663 = vmatpush.bf16.msra.mxu3 %v5610_v25  ;;  %v5707_v18 = vld [vmem:[%s11652_s1 + $0x720] sm:$0xf0]  ;;  %v8210_v19 = vpack.c.b16 %v328_v9, %v328_v9  ;;  %v5454_v25 = vor.u32 %v7368_v14, %v5451_v15  ;;  %v5297_v9 = vld [vmem:[%s11652_s1 + $0x3c8] sm:$0xf] }
  0x3e   :  { %v7276_v23 = vld [vmem:[%s11652_s1 + $0x21c] sm:$0xf0]  ;;  %v5710_v29 = vor.u32 %v7432_v17, %v5707_v18  ;;  %v5387_v44 = vld [vmem:[%s11652_s1 + $0x4a0] sm:$0xf0]  ;;  %v7461_v17 = vld [vmem:[%s11652_s1 + $0x7e4] sm:$0xf0] }
  0x3f   :  { %v5321_v24 = vld [vmem:[%s11652_s1 + $0x400] sm:$0xf]  ;;  %v5066_v36 = vor.u32 %v7276_v23, %v5065_v22  ;;  %1625 = vmatpush.bf16.msra.mxu0 %v4810_v32  ;;  %v4942_v22 = vor.u32 %v7240_v6, %v4939_v7  ;;  %v5419_v32 = vld [vmem:[%s11652_s1 + $0x4e0] sm:$0xf0]  ;;  %v5041_v7 = vld [vmem:[%s11652_s1 + $0x1c8] sm:$0xf] }
  0x40   :  { %v7340_v26 = vld [vmem:[%s11652_s1 + $0x41c] sm:$0xf0]  ;;  %v7416_v45 = vld [vmem:[%s11652_s1 + $0x684] sm:$0xf] }
  0x41   :  { %v5577_v27 = vld [vmem:[%s11652_s1 + $0x600] sm:$0xf]  ;;  %v5322_v37 = vor.u32 %v7340_v26, %v5321_v24  ;;  %1638 = vmatpush.bf16.msra.mxu1 %v5066_v36  ;;  %v5198_v24 = vor.u32 %v7304_v8, %v5195_v13  ;;  %v7232_v26 = vld [vmem:[%s11652_s1 + $0xc4] sm:$0xf]  ;;  %v7269_v8 = vld [vmem:[%s11652_s1 + $0x1e4] sm:$0xf0] }
  0x42   :  { %v7404_v28 = vld [vmem:[%s11652_s1 + $0x61c] sm:$0xf0]  ;;  %v5643_v46 = vld [vmem:[%s11652_s1 + $0x6a0] sm:$0xf0]  ;;  %v7397_v13 = vld [vmem:[%s11652_s1 + $0x5e4] sm:$0xf0] }
  0x43   :  { %v5578_v40 = vor.u32 %v7404_v28, %v5577_v27  ;;  %1651 = vmatpush.bf16.msra.mxu2 %v5322_v37  ;;  %1670 = vmatpush.bf16.msrb.mxu0 %v5038_v41  ;;  %v48_v4 = vld [vmem:[%s11651_s0] sm:$0xff]  ;;  %v5422_v37 = vor.u32 %v7360_v31, %v5419_v32  ;;  %v5678_v41 = vor.u32 %v7424_v33, %v5675_v34  ;;  %v5521_v31 = vld [vmem:[%s11652_s1 + $0x588] sm:$0xf] }
  0x44   :  { %v326_v10 = vunpack.c.l.b16 %v48_v4  ;;  %v327_v16 = vunpack.c.h.b16 %v48_v4  ;;  %v4907_v27 = vld [vmem:[%s11652_s1 + $0xe0] sm:$0xf0]  ;;  %v7389_v32 = vld [vmem:[%s11652_s1 + $0x5a4] sm:$0xf0] }
  0x45   :  { %1664 = vmatpush.bf16.msra.mxu3 %v5578_v40  ;;  %1683 = vmatpush.bf16.msrb.mxu1 %v5294_v42  ;;  %v7296_v28 = vld [vmem:[%s11652_s1 + $0x2c4] sm:$0xf]  ;;  %v4910_v35 = vor.u32 %v7232_v26, %v4907_v27  ;;  %v5009_v26 = vld [vmem:[%s11652_s1 + $0x188] sm:$0xf] }
  0x46   :  { %v8212_v20 = vpack.c.b16 %v326_v10, %v326_v10  ;;  %v8216_v23 = vpack.c.b16 %v327_v16, %v327_v16  ;;  %1652 = vmatmul.bf16.vlgmr.msra.gmra.mxu2 %v8210_v19  ;;  %v5166_v36 = vor.u32 %v7296_v28, %v5163_v30  ;;  %v7288_v40 = vld [vmem:[%s11652_s1 + $0x284] sm:$0xf]  ;;  %v5809_v16 = vld [vmem:[%s11652_s1 + $0x7c8] sm:$0xf] }
  0x47   :  { %1696 = vmatpush.bf16.msrb.mxu2 %v5550_v43  ;;  %1671 = vmatpush.bf16.msrb.mxu0 %v5006_v53  ;;  %v5131_v42 = vld [vmem:[%s11652_s1 + $0x2a0] sm:$0xf0]  ;;  %v5646_v53 = vor.u32 %v7416_v45, %v5643_v46  ;;  %v7261_v27 = vld [vmem:[%s11652_s1 + $0x1a4] sm:$0xf0] }
  0x48   :  { %1626 = vmatmul.bf16.vlgmr.msra.gmra.mxu0 %v8212_v20  ;;  %1665 = vmatmul.bf16.vlgmr.msra.gmra.mxu3 %v8214_v21  ;;  %v7352_v43 = vld [vmem:[%s11652_s1 + $0x484] sm:$0xf]  ;;  %v5134_v48 = vor.u32 %v7288_v40, %v5131_v42  ;;  %v5265_v28 = vld [vmem:[%s11652_s1 + $0x388] sm:$0xf] }
  0x49   :  { %1709 = vmatpush.bf16.msrb.mxu3 %v5806_v47  ;;  %1684 = vmatpush.bf16.msrb.mxu1 %v5262_v55  ;;  %v4878_v47 = vor.u32 %v7224_v38, %v4875_v39  ;;  %v5390_v49 = vor.u32 %v7352_v43, %v5387_v44  ;;  %v7216_v50 = vld [vmem:[%s11652_s1 + $0x44] sm:$0xf]  ;;  %v7325_v30 = vld [vmem:[%s11652_s1 + $0x3a4] sm:$0xf0] }
  0x4a   :  { %1639 = vmatmul.bf16.vlgmr.msra.gmra.mxu1 %v8216_v23  ;;  %v4843_v51 = vld [vmem:[%s11652_s1 + $0x60] sm:$0xf0]  ;;  %v5777_v33 = vld [vmem:[%s11652_s1 + $0x788] sm:$0xf] }
  0x4b   :  { %1697 = vmatpush.bf16.msrb.mxu2 %v5518_v56  ;;  %1672 = vmatpush.bf16.msrb.mxu0 %v4974_v1  ;;  %v7280_v52 = vld [vmem:[%s11652_s1 + $0x244] sm:$0xf]  ;;  %v4846_v59 = vor.u32 %v7216_v50, %v4843_v51  ;;  %v7453_v34 = vld [vmem:[%s11652_s1 + $0x7a4] sm:$0xf0] }
  0x4c   :  { %v5099_v54 = vld [vmem:[%s11652_s1 + $0x260] sm:$0xf0]  ;;  %v4977_v38 = vld [vmem:[%s11652_s1 + $0x148] sm:$0xf] }
  0x4d   :  { %1710 = vmatpush.bf16.msrb.mxu3 %v5774_v60  ;;  %1685 = vmatpush.bf16.msrb.mxu1 %v5230_v2  ;;  %v7344_v55 = vld [vmem:[%s11652_s1 + $0x444] sm:$0xf]  ;;  %v5102_v62 = vor.u32 %v7280_v52, %v5099_v54  ;;  %v7253_v39 = vld [vmem:[%s11652_s1 + $0x164] sm:$0xf0] }
  0x4e   :  { %v5355_v56 = vld [vmem:[%s11652_s1 + $0x460] sm:$0xf0]  ;;  %v5233_v40 = vld [vmem:[%s11652_s1 + $0x348] sm:$0xf] }
  0x4f   :  { %1698 = vmatpush.bf16.msrb.mxu2 %v5486_v5  ;;  %1673 = vmatpush.bf16.msrb.mxu0 %v4942_v22  ;;  %v7408_v57 = vld [vmem:[%s11652_s1 + $0x644] sm:$0xf]  ;;  %v5358_v63 = vor.u32 %v7344_v55, %v5355_v56  ;;  %v5042_v22 = vor.u32 %v7269_v8, %v5041_v7  ;;  %v7317_v42 = vld [vmem:[%s11652_s1 + $0x364] sm:$0xf0] }
  0x50   :  { %v5611_v58 = vld [vmem:[%s11652_s1 + $0x660] sm:$0xf0]  ;;  %v5489_v43 = vld [vmem:[%s11652_s1 + $0x548] sm:$0xf] }
  0x51   :  { %1711 = vmatpush.bf16.msrb.mxu3 %v5742_v12  ;;  %1686 = vmatpush.bf16.msrb.mxu1 %v5198_v24  ;;  %v7208_v60 = vld [vmem:[%s11652_s1 + $0x4] sm:$0xf]  ;;  %v5614_v3 = vor.u32 %v7408_v57, %v5611_v58  ;;  %v5553_v12 = vld [vmem:[%s11652_s1 + $0x5c8] sm:$0xf]  ;;  %v5298_v24 = vor.u32 %v7333_v11, %v5297_v9 }
  0x52   :  { %v4811_v61 = vld [vmem:[%s11652_s1 + $0x20] sm:$0xf0]  ;;  %v7381_v44 = vld [vmem:[%s11652_s1 + $0x564] sm:$0xf0] }
  0x53   :  { %1699 = vmatpush.bf16.msrb.mxu2 %v5454_v25  ;;  %1674 = vmatpush.bf16.msrb.mxu0 %v4910_v35  ;;  %v7272_v0 = vld [vmem:[%s11652_s1 + $0x204] sm:$0xf]  ;;  %v4814_v10 = vor.u32 %v7208_v60, %v4811_v61  ;;  %v5554_v25 = vor.u32 %v7397_v13, %v5553_v12  ;;  %v5010_v35 = vor.u32 %v7261_v27, %v5009_v26  ;;  %v5745_v45 = vld [vmem:[%s11652_s1 + $0x748] sm:$0xf] }
  0x54   :  { %v5067_v1 = vld [vmem:[%s11652_s1 + $0x220] sm:$0xf0]  ;;  %v7445_v46 = vld [vmem:[%s11652_s1 + $0x764] sm:$0xf0] }
  0x55   :  { %1712 = vmatpush.bf16.msrb.mxu3 %v5710_v29  ;;  %1687 = vmatpush.bf16.msrb.mxu1 %v5166_v36  ;;  %v7336_v2 = vld [vmem:[%s11652_s1 + $0x404] sm:$0xf]  ;;  %v5070_v14 = vor.u32 %v7272_v0, %v5067_v1  ;;  %v5810_v29 = vor.u32 %v7461_v17, %v5809_v16  ;;  %v5266_v36 = vor.u32 %v7325_v30, %v5265_v28  ;;  %v4945_v50 = vld [vmem:[%s11652_s1 + $0x108] sm:$0xf] }
  0x56   :  { %v5323_v4 = vld [vmem:[%s11652_s1 + $0x420] sm:$0xf0]  ;;  %v7245_v51 = vld [vmem:[%s11652_s1 + $0x124] sm:$0xf0] }
  0x57   :  { %1700 = vmatpush.bf16.msrb.mxu2 %v5422_v37  ;;  %1675 = vmatpush.bf16.msrb.mxu0 %v4878_v47  ;;  %v7400_v5 = vld [vmem:[%s11652_s1 + $0x604] sm:$0xf]  ;;  %v5326_v15 = vor.u32 %v7336_v2, %v5323_v4  ;;  %v5522_v37 = vor.u32 %v7389_v32, %v5521_v31  ;;  %v4978_v47 = vor.u32 %v7253_v39, %v4977_v38  ;;  %v5201_v52 = vld [vmem:[%s11652_s1 + $0x308] sm:$0xf] }
  0x58   :  { %v5579_v6 = vld [vmem:[%s11652_s1 + $0x620] sm:$0xf0]  ;;  %v7309_v54 = vld [vmem:[%s11652_s1 + $0x324] sm:$0xf0] }
  0x59   :  { %1713 = vmatpush.bf16.msrb.mxu3 %v5678_v41  ;;  %1688 = vmatpush.bf16.msrb.mxu1 %v5134_v48  ;;  %v5582_v18 = vor.u32 %v7400_v5, %v5579_v6  ;;  %v5778_v41 = vor.u32 %v7453_v34, %v5777_v33  ;;  %v5234_v48 = vor.u32 %v7317_v42, %v5233_v40  ;;  %v5457_v55 = vld [vmem:[%s11652_s1 + $0x508] sm:$0xf] }
  0x5a   :  { %v7373_v56 = vld [vmem:[%s11652_s1 + $0x524] sm:$0xf0]  ;;  %v5202_v60 = vor.u32 %v7309_v54, %v5201_v52 }
  0x5b   :  { %1701 = vmatpush.bf16.msrb.mxu2 %v5390_v49  ;;  %1676 = vmatpush.bf16.msrb.mxu0 %v4846_v59  ;;  %v5490_v49 = vor.u32 %v7381_v44, %v5489_v43  ;;  %v5713_v57 = vld [vmem:[%s11652_s1 + $0x708] sm:$0xf]  ;;  %v4946_v59 = vor.u32 %v7245_v51, %v4945_v50  ;;  %v5458_v61 = vor.u32 %v7373_v56, %v5457_v55 }
  0x5c   :  { %v7437_v58 = vld [vmem:[%s11652_s1 + $0x724] sm:$0xf0] }
  0x5d   :  { %1714 = vmatpush.bf16.msrb.mxu3 %v5646_v53  ;;  %1689 = vmatpush.bf16.msrb.mxu1 %v5102_v62  ;;  %v5746_v53 = vor.u32 %v7445_v46, %v5745_v45  ;;  %v4913_v62 = vld [vmem:[%s11652_s1 + $0xc8] sm:$0xf]  ;;  %v5714_v1 = vor.u32 %v7437_v58, %v5713_v57 }
  0x5e   :  { %v5169_v0 = vld [vmem:[%s11652_s1 + $0x2c8] sm:$0xf] }
  0x5f   :  { %1702 = vmatpush.bf16.msrb.mxu2 %v5358_v63  ;;  %1677 = vmatpush.bf16.msrb.mxu0 %v4814_v10  ;;  %v7237_v63 = vld [vmem:[%s11652_s1 + $0xe4] sm:$0xf0] }
  0x60   :  { %v7301_v2 = vld [vmem:[%s11652_s1 + $0x2e4] sm:$0xf0]  ;;  %v4914_v7 = vor.u32 %v7237_v63, %v4913_v62 }
  0x61   :  { %1715 = vmatpush.bf16.msrb.mxu3 %v5614_v3  ;;  %1690 = vmatpush.bf16.msrb.mxu1 %v5070_v14  ;;  %v5425_v3 = vld [vmem:[%s11652_s1 + $0x4c8] sm:$0xf]  ;;  %v5170_v10 = vor.u32 %v7301_v2, %v5169_v0 }
  0x62   :  { %1678 = vmatmul.bf16.vlgmr.msrb.gmra.mxu0 %v8212_v20  ;;  %v7365_v4 = vld [vmem:[%s11652_s1 + $0x4e4] sm:$0xf0] }
  0x63   :  { %1703 = vmatpush.bf16.msrb.mxu2 %v5326_v15  ;;  %1722 = vmatpush.bf16.msra.mxu0 %v5042_v22  ;;  %v5681_v5 = vld [vmem:[%s11652_s1 + $0x6c8] sm:$0xf]  ;;  %v5426_v11 = vor.u32 %v7365_v4, %v5425_v3 }
  0x64   :  { %1691 = vmatmul.bf16.vlgmr.msrb.gmra.mxu1 %v8216_v23  ;;  %v7429_v6 = vld [vmem:[%s11652_s1 + $0x6e4] sm:$0xf0] }
  0x65   :  { %1716 = vmatpush.bf16.msrb.mxu3 %v5582_v18  ;;  %1735 = vmatpush.bf16.msra.mxu1 %v5298_v24  ;;  %v4881_v8 = vld [vmem:[%s11652_s1 + $0x88] sm:$0xf]  ;;  %v5682_v15 = vor.u32 %v7429_v6, %v5681_v5 }
  0x66   :  { %1704 = vmatmul.bf16.vlgmr.msrb.gmra.mxu2 %v8210_v19  ;;  %v7229_v9 = vld [vmem:[%s11652_s1 + $0xa4] sm:$0xf0] }
  0x67   :  { %1748 = vmatpush.bf16.msra.mxu2 %v5554_v25  ;;  %1723 = vmatpush.bf16.msra.mxu0 %v5010_v35  ;;  %v5137_v12 = vld [vmem:[%s11652_s1 + $0x288] sm:$0xf] }
  0x68   :  { %1717 = vmatmul.bf16.vlgmr.msrb.gmra.mxu3 %v8214_v21  ;;  %v7293_v13 = vld [vmem:[%s11652_s1 + $0x2a4] sm:$0xf0] }
  0x69   :  { %1761 = vmatpush.bf16.msra.mxu3 %v5810_v29  ;;  %1736 = vmatpush.bf16.msra.mxu1 %v5266_v36  ;;  %v5393_v14 = vld [vmem:[%s11652_s1 + $0x488] sm:$0xf] }
  0x6a   :  { %v7357_v16 = vld [vmem:[%s11652_s1 + $0x4a4] sm:$0xf0] }
  0x6b   :  { %1749 = vmatpush.bf16.msra.mxu2 %v5522_v37  ;;  %1724 = vmatpush.bf16.msra.mxu0 %v4978_v47  ;;  %v5649_v17 = vld [vmem:[%s11652_s1 + $0x688] sm:$0xf] }
  0x6c   :  { %v7421_v18 = vld [vmem:[%s11652_s1 + $0x6a4] sm:$0xf0] }
  0x6d   :  { %1762 = vmatpush.bf16.msra.mxu3 %v5778_v41  ;;  %1737 = vmatpush.bf16.msra.mxu1 %v5234_v48 }
  0x6f   :  { %1750 = vmatpush.bf16.msra.mxu2 %v5490_v49  ;;  %1725 = vmatpush.bf16.msra.mxu0 %v4946_v59 }
  0x71   :  { %1763 = vmatpush.bf16.msra.mxu3 %v5746_v53  ;;  %1738 = vmatpush.bf16.msra.mxu1 %v5202_v60 }
  0x73   :  { %1751 = vmatpush.bf16.msra.mxu2 %v5458_v61 }
  0x75   :  { %1764 = vmatpush.bf16.msra.mxu3 %v5714_v1 }
  0x76   :  { %20 = vsyncpa [#allocation4], 0  ;;  %1726 = vmatpush.bf16.msra.mxu0 %v4914_v7  ;;  %v4882_v22 = vor.u32 %v7229_v9, %v4881_v8  ;;  %1739 = vmatpush.bf16.msra.mxu1 %v5170_v10  ;;  %v5138_v24 = vor.u32 %v7293_v13, %v5137_v12  ;;  %v5394_v25 = vor.u32 %v7357_v16, %v5393_v14  ;;  %v4849_v26 = vld [vmem:[%s11652_s1 + $0x48] sm:$0xf]  ;;  %v7265_v47 = vld [vmem:[%s11652_s1 + $0x1cc] sm:$0xf] }
  0x77   :  { %1752 = vmatpush.bf16.msra.mxu2 %v5426_v11  ;;  %v7221_v27 = vld [vmem:[%s11652_s1 + $0x64] sm:$0xf0]  ;;  %v5650_v29 = vor.u32 %v7421_v18, %v5649_v17  ;;  %v5043_v48 = vld [vmem:[%s11652_s1 + $0x1e8] sm:$0xf0]  ;;  %vm4769_vm0 = vcmask 523264   ;;  %s7842_s22 = smov [#allocation3]  }
  0x78   :  { %v5105_v28 = vld [vmem:[%s11652_s1 + $0x248] sm:$0xf]  ;;  %v4850_v35 = vor.u32 %v7221_v27, %v4849_v26  ;;  %v7329_v49 = vld [vmem:[%s11652_s1 + $0x3cc] sm:$0xf]  ;;  %v5046_v59 = vor.u32 %v7265_v47, %v5043_v48  ;;  %s4796_s23 = sshll.u32 %s7842_s22, 4  ;;  %vm4789_vm1 = vcmask 57344   ;;  %s4797_s23 = int_to_ptr.vmem [resolvable:$true] %s4796_s23 }
  0x79   :  { %1765 = vmatpush.bf16.msra.mxu3 %v5682_v15  ;;  %v7285_v30 = vld [vmem:[%s11652_s1 + $0x264] sm:$0xf0]  ;;  %v5299_v51 = vld [vmem:[%s11652_s1 + $0x3e8] sm:$0xf0] }
  0x7a   :  { %v5361_v31 = vld [vmem:[%s11652_s1 + $0x448] sm:$0xf]  ;;  %1727 = vmatpush.bf16.msra.mxu0 %v4882_v22  ;;  %1740 = vmatpush.bf16.msra.mxu1 %v5138_v24  ;;  %v5106_v38 = vor.u32 %v7285_v30, %v5105_v28  ;;  %v7393_v52 = vld [vmem:[%s11652_s1 + $0x5cc] sm:$0xf]  ;;  %v5302_v60 = vor.u32 %v7329_v49, %v5299_v51 }
  0x7b   :  { %v7349_v32 = vld [vmem:[%s11652_s1 + $0x464] sm:$0xf0]  ;;  %1753 = vmatpush.bf16.msra.mxu2 %v5394_v25  ;;  %v5555_v53 = vld [vmem:[%s11652_s1 + $0x5e8] sm:$0xf0] }
  0x7c   :  { %v5617_v33 = vld [vmem:[%s11652_s1 + $0x648] sm:$0xf]  ;;  %v5362_v39 = vor.u32 %v7349_v32, %v5361_v31  ;;  %v7457_v56 = vld [vmem:[%s11652_s1 + $0x7cc] sm:$0xf]  ;;  %v5558_v61 = vor.u32 %v7393_v52, %v5555_v53 }
  0x7d   :  { %v7413_v34 = vld [vmem:[%s11652_s1 + $0x664] sm:$0xf0]  ;;  %1766 = vmatpush.bf16.msra.mxu3 %v5650_v29  ;;  %v5811_v57 = vld [vmem:[%s11652_s1 + $0x7e8] sm:$0xf0] }
  0x7e   :  { %v4817_v36 = vld [vmem:[%s11652_s1 + $0x8] sm:$0xf]  ;;  %v5618_v43 = vor.u32 %v7413_v34, %v5617_v33  ;;  %1728 = vmatpush.bf16.msra.mxu0 %v4850_v35  ;;  %1741 = vmatpush.bf16.msra.mxu1 %v5106_v38  ;;  %v7257_v62 = vld [vmem:[%s11652_s1 + $0x18c] sm:$0xf]  ;;  %v5814_v1 = vor.u32 %v7457_v56, %v5811_v57 }
  0x7f   :  { %v7213_v37 = vld [vmem:[%s11652_s1 + $0x24] sm:$0xf0]  ;;  %1754 = vmatpush.bf16.msra.mxu2 %v5362_v39  ;;  %v5011_v63 = vld [vmem:[%s11652_s1 + $0x1a8] sm:$0xf0] }
  0x80   :  { %v5073_v40 = vld [vmem:[%s11652_s1 + $0x208] sm:$0xf]  ;;  %v4818_v50 = vor.u32 %v7213_v37, %v4817_v36  ;;  %v7321_v0 = vld [vmem:[%s11652_s1 + $0x38c] sm:$0xf]  ;;  %v5014_v7 = vor.u32 %v7257_v62, %v5011_v63 }
  0x81   :  { %v7277_v41 = vld [vmem:[%s11652_s1 + $0x224] sm:$0xf0]  ;;  %1767 = vmatpush.bf16.msra.mxu3 %v5618_v43  ;;  %v5267_v2 = vld [vmem:[%s11652_s1 + $0x3a8] sm:$0xf0] }
  0x82   :  { %v5329_v42 = vld [vmem:[%s11652_s1 + $0x408] sm:$0xf]  ;;  %v5074_v54 = vor.u32 %v7277_v41, %v5073_v40  ;;  %1729 = vmatpush.bf16.msra.mxu0 %v4818_v50  ;;  %v7385_v3 = vld [vmem:[%s11652_s1 + $0x58c] sm:$0xf]  ;;  %v5270_v8 = vor.u32 %v7321_v0, %v5267_v2 }
  0x83   :  { %v7341_v44 = vld [vmem:[%s11652_s1 + $0x424] sm:$0xf0]  ;;  %v5523_v4 = vld [vmem:[%s11652_s1 + $0x5a8] sm:$0xf0] }
  0x84   :  { %v5585_v45 = vld [vmem:[%s11652_s1 + $0x608] sm:$0xf]  ;;  %v5330_v55 = vor.u32 %v7341_v44, %v5329_v42  ;;  %1742 = vmatpush.bf16.msra.mxu1 %v5074_v54  ;;  %v7449_v5 = vld [vmem:[%s11652_s1 + $0x78c] sm:$0xf]  ;;  %v5526_v9 = vor.u32 %v7385_v3, %v5523_v4 }
  0x85   :  { %v7405_v46 = vld [vmem:[%s11652_s1 + $0x624] sm:$0xf0]  ;;  %v5779_v6 = vld [vmem:[%s11652_s1 + $0x7a8] sm:$0xf0]  ;;  %1730 = vmatmul.bf16.vlgmr.msra.gmra.mxu0 %v8212_v20 }
  0x86   :  { %v5586_v58 = vor.u32 %v7405_v46, %v5585_v45  ;;  %1755 = vmatpush.bf16.msra.mxu2 %v5330_v55  ;;  %1774 = vmatpush.bf16.msrb.mxu0 %v5046_v59  ;;  %v7249_v10 = vld [vmem:[%s11652_s1 + $0x14c] sm:$0xf]  ;;  %v5782_v13 = vor.u32 %v7449_v5, %v5779_v6 }
  0x87   :  { %v4979_v11 = vld [vmem:[%s11652_s1 + $0x168] sm:$0xf0]  ;;  %1743 = vmatmul.bf16.vlgmr.msra.gmra.mxu1 %v8216_v23 }
  0x88   :  { %1768 = vmatpush.bf16.msra.mxu3 %v5586_v58  ;;  %1787 = vmatpush.bf16.msrb.mxu1 %v5302_v60  ;;  %v7313_v12 = vld [vmem:[%s11652_s1 + $0x34c] sm:$0xf]  ;;  %v4982_v22 = vor.u32 %v7249_v10, %v4979_v11 }
  0x89   :  { %v5235_v14 = vld [vmem:[%s11652_s1 + $0x368] sm:$0xf0]  ;;  %1756 = vmatmul.bf16.vlgmr.msra.gmra.mxu2 %v8210_v19 }
  0x8a   :  { %1800 = vmatpush.bf16.msrb.mxu2 %v5558_v61  ;;  %v7377_v15 = vld [vmem:[%s11652_s1 + $0x54c] sm:$0xf]  ;;  %1775 = vmatpush.bf16.msrb.mxu0 %v5014_v7  ;;  %v5238_v24 = vor.u32 %v7313_v12, %v5235_v14 }
  0x8b   :  { %v5491_v16 = vld [vmem:[%s11652_s1 + $0x568] sm:$0xf0]  ;;  %1769 = vmatmul.bf16.vlgmr.msra.gmra.mxu3 %v8214_v21 }
  0x8c   :  { %1813 = vmatpush.bf16.msrb.mxu3 %v5814_v1  ;;  %v7441_v17 = vld [vmem:[%s11652_s1 + $0x74c] sm:$0xf]  ;;  %1788 = vmatpush.bf16.msrb.mxu1 %v5270_v8  ;;  %v5494_v25 = vor.u32 %v7377_v15, %v5491_v16 }
  0x8d   :  { %v5747_v18 = vld [vmem:[%s11652_s1 + $0x768] sm:$0xf0] }
  0x8e   :  { %1801 = vmatpush.bf16.msrb.mxu2 %v5526_v9  ;;  %v7241_v26 = vld [vmem:[%s11652_s1 + $0x10c] sm:$0xf]  ;;  %v5750_v29 = vor.u32 %v7441_v17, %v5747_v18  ;;  %1776 = vmatpush.bf16.msrb.mxu0 %v4982_v22  ;;  %v5049_v22 = vld [vmem:[%s11652_s1 + $0x1d0] sm:$0xf] }
  0x8f   :  { %v4947_v27 = vld [vmem:[%s11652_s1 + $0x128] sm:$0xf0] }
  0x90   :  { %v7305_v28 = vld [vmem:[%s11652_s1 + $0x30c] sm:$0xf]  ;;  %1814 = vmatpush.bf16.msrb.mxu3 %v5782_v13  ;;  %v4950_v35 = vor.u32 %v7241_v26, %v4947_v27  ;;  %1789 = vmatpush.bf16.msrb.mxu1 %v5238_v24  ;;  %v7270_v24 = vld [vmem:[%s11652_s1 + $0x1ec] sm:$0xf0] }
  0x91   :  { %v5203_v30 = vld [vmem:[%s11652_s1 + $0x328] sm:$0xf0]  ;;  %v7334_v27 = vld [vmem:[%s11652_s1 + $0x3ec] sm:$0xf0] }
  0x92   :  { %v7369_v31 = vld [vmem:[%s11652_s1 + $0x50c] sm:$0xf]  ;;  %1802 = vmatpush.bf16.msrb.mxu2 %v5494_v25  ;;  %v5206_v36 = vor.u32 %v7305_v28, %v5203_v30  ;;  %1777 = vmatpush.bf16.msrb.mxu0 %v4950_v35  ;;  %v5305_v25 = vld [vmem:[%s11652_s1 + $0x3d0] sm:$0xf]  ;;  %v5050_v35 = vor.u32 %v7270_v24, %v5049_v22 }
  0x93   :  { %v5459_v32 = vld [vmem:[%s11652_s1 + $0x528] sm:$0xf0]  ;;  %v5561_v28 = vld [vmem:[%s11652_s1 + $0x5d0] sm:$0xf] }
  0x94   :  { %v7433_v33 = vld [vmem:[%s11652_s1 + $0x70c] sm:$0xf]  ;;  %v5462_v37 = vor.u32 %v7369_v31, %v5459_v32  ;;  %1815 = vmatpush.bf16.msrb.mxu3 %v5750_v29  ;;  %1790 = vmatpush.bf16.msrb.mxu1 %v5206_v36  ;;  %v7398_v29 = vld [vmem:[%s11652_s1 + $0x5ec] sm:$0xf0]  ;;  %v5306_v36 = vor.u32 %v7334_v27, %v5305_v25 }
  0x95   :  { %v5715_v34 = vld [vmem:[%s11652_s1 + $0x728] sm:$0xf0]  ;;  %v5817_v32 = vld [vmem:[%s11652_s1 + $0x7d0] sm:$0xf] }
  0x96   :  { %v7233_v38 = vld [vmem:[%s11652_s1 + $0xcc] sm:$0xf]  ;;  %v5718_v41 = vor.u32 %v7433_v33, %v5715_v34  ;;  %1803 = vmatpush.bf16.msrb.mxu2 %v5462_v37  ;;  %v7462_v33 = vld [vmem:[%s11652_s1 + $0x7ec] sm:$0xf0]  ;;  %v5562_v37 = vor.u32 %v7398_v29, %v5561_v28 }
  0x97   :  { %v4915_v39 = vld [vmem:[%s11652_s1 + $0xe8] sm:$0xf0]  ;;  %v7230_v27 = vld [vmem:[%s11652_s1 + $0xac] sm:$0xf0] }
  0x98   :  { %v7297_v40 = vld [vmem:[%s11652_s1 + $0x2cc] sm:$0xf]  ;;  %v4918_v47 = vor.u32 %v7233_v38, %v4915_v39  ;;  %1816 = vmatpush.bf16.msrb.mxu3 %v5718_v41  ;;  %v5017_v38 = vld [vmem:[%s11652_s1 + $0x190] sm:$0xf]  ;;  %v5818_v41 = vor.u32 %v7462_v33, %v5817_v32 }
  0x99   :  { %v5171_v42 = vld [vmem:[%s11652_s1 + $0x2e8] sm:$0xf0]  ;;  %v7262_v39 = vld [vmem:[%s11652_s1 + $0x1ac] sm:$0xf0] }
  0x9a   :  { %v7361_v43 = vld [vmem:[%s11652_s1 + $0x4cc] sm:$0xf]  ;;  %v5174_v48 = vor.u32 %v7297_v40, %v5171_v42  ;;  %1778 = vmatpush.bf16.msrb.mxu0 %v4918_v47  ;;  %v5273_v40 = vld [vmem:[%s11652_s1 + $0x390] sm:$0xf]  ;;  %v5018_v47 = vor.u32 %v7262_v39, %v5017_v38 }
  0x9b   :  { %v5427_v44 = vld [vmem:[%s11652_s1 + $0x4e8] sm:$0xf0]  ;;  %v7326_v42 = vld [vmem:[%s11652_s1 + $0x3ac] sm:$0xf0] }
  0x9c   :  { %v7425_v45 = vld [vmem:[%s11652_s1 + $0x6cc] sm:$0xf]  ;;  %v5430_v49 = vor.u32 %v7361_v43, %v5427_v44  ;;  %1791 = vmatpush.bf16.msrb.mxu1 %v5174_v48  ;;  %v5529_v43 = vld [vmem:[%s11652_s1 + $0x590] sm:$0xf]  ;;  %v5274_v48 = vor.u32 %v7326_v42, %v5273_v40 }
  0x9d   :  { %v5683_v46 = vld [vmem:[%s11652_s1 + $0x6e8] sm:$0xf0]  ;;  %v7390_v44 = vld [vmem:[%s11652_s1 + $0x5ac] sm:$0xf0] }
  0x9e   :  { %v7225_v50 = vld [vmem:[%s11652_s1 + $0x8c] sm:$0xf]  ;;  %v5686_v53 = vor.u32 %v7425_v45, %v5683_v46  ;;  %1804 = vmatpush.bf16.msrb.mxu2 %v5430_v49  ;;  %v5785_v45 = vld [vmem:[%s11652_s1 + $0x790] sm:$0xf]  ;;  %v5530_v49 = vor.u32 %v7390_v44, %v5529_v43 }
  0x9f   :  { %v4883_v51 = vld [vmem:[%s11652_s1 + $0xa8] sm:$0xf0]  ;;  %v7454_v46 = vld [vmem:[%s11652_s1 + $0x7ac] sm:$0xf0] }
  0xa0   :  { %v7289_v52 = vld [vmem:[%s11652_s1 + $0x28c] sm:$0xf]  ;;  %v4886_v59 = vor.u32 %v7225_v50, %v4883_v51  ;;  %1817 = vmatpush.bf16.msrb.mxu3 %v5686_v53  ;;  %v4985_v50 = vld [vmem:[%s11652_s1 + $0x150] sm:$0xf]  ;;  %v5786_v53 = vor.u32 %v7454_v46, %v5785_v45 }
  0xa1   :  { %v5139_v54 = vld [vmem:[%s11652_s1 + $0x2a8] sm:$0xf0]  ;;  %v7254_v51 = vld [vmem:[%s11652_s1 + $0x16c] sm:$0xf0] }
  0xa2   :  { %v7353_v55 = vld [vmem:[%s11652_s1 + $0x48c] sm:$0xf]  ;;  %v5142_v60 = vor.u32 %v7289_v52, %v5139_v54  ;;  %1779 = vmatpush.bf16.msrb.mxu0 %v4886_v59  ;;  %v5241_v52 = vld [vmem:[%s11652_s1 + $0x350] sm:$0xf]  ;;  %v4986_v59 = vor.u32 %v7254_v51, %v4985_v50 }
  0xa3   :  { %v5395_v56 = vld [vmem:[%s11652_s1 + $0x4a8] sm:$0xf0]  ;;  %v7318_v54 = vld [vmem:[%s11652_s1 + $0x36c] sm:$0xf0] }
  0xa4   :  { %v7417_v57 = vld [vmem:[%s11652_s1 + $0x68c] sm:$0xf]  ;;  %v5398_v61 = vor.u32 %v7353_v55, %v5395_v56  ;;  %1792 = vmatpush.bf16.msrb.mxu1 %v5142_v60  ;;  %v5497_v55 = vld [vmem:[%s11652_s1 + $0x550] sm:$0xf]  ;;  %v5242_v60 = vor.u32 %v7318_v54, %v5241_v52 }
  0xa5   :  { %v5651_v58 = vld [vmem:[%s11652_s1 + $0x6a8] sm:$0xf0]  ;;  %v7382_v56 = vld [vmem:[%s11652_s1 + $0x56c] sm:$0xf0] }
  0xa6   :  { %v7217_v62 = vld [vmem:[%s11652_s1 + $0x4c] sm:$0xf]  ;;  %v5654_v1 = vor.u32 %v7417_v57, %v5651_v58  ;;  %1805 = vmatpush.bf16.msrb.mxu2 %v5398_v61  ;;  %v5753_v57 = vld [vmem:[%s11652_s1 + $0x750] sm:$0xf]  ;;  %v5498_v61 = vor.u32 %v7382_v56, %v5497_v55 }
  0xa7   :  { %v4851_v63 = vld [vmem:[%s11652_s1 + $0x68] sm:$0xf0]  ;;  %v7446_v58 = vld [vmem:[%s11652_s1 + $0x76c] sm:$0xf0] }
  0xa8   :  { %v7281_v0 = vld [vmem:[%s11652_s1 + $0x24c] sm:$0xf]  ;;  %v4854_v7 = vor.u32 %v7217_v62, %v4851_v63  ;;  %1818 = vmatpush.bf16.msrb.mxu3 %v5654_v1  ;;  %v4953_v62 = vld [vmem:[%s11652_s1 + $0x110] sm:$0xf]  ;;  %v5754_v1 = vor.u32 %v7446_v58, %v5753_v57 }
  0xa9   :  { %v5107_v2 = vld [vmem:[%s11652_s1 + $0x268] sm:$0xf0]  ;;  %v7246_v63 = vld [vmem:[%s11652_s1 + $0x12c] sm:$0xf0] }
  0xaa   :  { %v7345_v3 = vld [vmem:[%s11652_s1 + $0x44c] sm:$0xf]  ;;  %v5110_v10 = vor.u32 %v7281_v0, %v5107_v2  ;;  %1780 = vmatpush.bf16.msrb.mxu0 %v4854_v7  ;;  %v5209_v0 = vld [vmem:[%s11652_s1 + $0x310] sm:$0xf]  ;;  %v4954_v7 = vor.u32 %v7246_v63, %v4953_v62  ;;  %v5307_v63 = vld [vmem:[%s11652_s1 + $0x3f0] sm:$0xf0] }
  0xab   :  { %v5363_v4 = vld [vmem:[%s11652_s1 + $0x468] sm:$0xf0]  ;;  %v7310_v2 = vld [vmem:[%s11652_s1 + $0x32c] sm:$0xf0] }
  0xac   :  { %v7409_v5 = vld [vmem:[%s11652_s1 + $0x64c] sm:$0xf]  ;;  %v5366_v11 = vor.u32 %v7345_v3, %v5363_v4  ;;  %1793 = vmatpush.bf16.msrb.mxu1 %v5110_v10  ;;  %v5465_v3 = vld [vmem:[%s11652_s1 + $0x510] sm:$0xf] }
  0xad   :  { %v5619_v6 = vld [vmem:[%s11652_s1 + $0x668] sm:$0xf0]  ;;  %v7374_v4 = vld [vmem:[%s11652_s1 + $0x52c] sm:$0xf0] }
  0xae   :  { %v7209_v8 = vld [vmem:[%s11652_s1 + $0xc] sm:$0xf]  ;;  %v5622_v15 = vor.u32 %v7409_v5, %v5619_v6  ;;  %1806 = vmatpush.bf16.msrb.mxu2 %v5366_v11  ;;  %v5721_v5 = vld [vmem:[%s11652_s1 + $0x710] sm:$0xf] }
  0xaf   :  { %v4819_v9 = vld [vmem:[%s11652_s1 + $0x28] sm:$0xf0]  ;;  %v7438_v6 = vld [vmem:[%s11652_s1 + $0x72c] sm:$0xf0] }
  0xb0   :  { %v7273_v12 = vld [vmem:[%s11652_s1 + $0x20c] sm:$0xf]  ;;  %v4822_v26 = vor.u32 %v7209_v8, %v4819_v9  ;;  %1819 = vmatpush.bf16.msrb.mxu3 %v5622_v15  ;;  %v5210_v8 = vor.u32 %v7310_v2, %v5209_v0  ;;  %v5466_v9 = vor.u32 %v7374_v4, %v5465_v3  ;;  %v4921_v10 = vld [vmem:[%s11652_s1 + $0xd0] sm:$0xf]  ;;  %v7394_v0 = vld [vmem:[%s11652_s1 + $0x5d4] sm:$0xf] }
  0xb1   :  { %v5075_v13 = vld [vmem:[%s11652_s1 + $0x228] sm:$0xf0]  ;;  %v7238_v11 = vld [vmem:[%s11652_s1 + $0xec] sm:$0xf0]  ;;  %v7458_v4 = vld [vmem:[%s11652_s1 + $0x7d4] sm:$0xf] }
  0xb2   :  { %v7337_v14 = vld [vmem:[%s11652_s1 + $0x40c] sm:$0xf]  ;;  %v5078_v30 = vor.u32 %v7273_v12, %v5075_v13  ;;  %1781 = vmatpush.bf16.msrb.mxu0 %v4822_v26  ;;  %v5177_v12 = vld [vmem:[%s11652_s1 + $0x2d0] sm:$0xf]  ;;  %v5722_v13 = vor.u32 %v7438_v6, %v5721_v5  ;;  %v4922_v22 = vor.u32 %v7238_v11, %v4921_v10  ;;  %v5819_v5 = vld [vmem:[%s11652_s1 + $0x7f0] sm:$0xf0] }
  0xb3   :  { %v5331_v16 = vld [vmem:[%s11652_s1 + $0x428] sm:$0xf0]  ;;  %v5433_v15 = vld [vmem:[%s11652_s1 + $0x4d0] sm:$0xf]  ;;  %v7258_v10 = vld [vmem:[%s11652_s1 + $0x194] sm:$0xf] }
  0xb4   :  { %v7401_v17 = vld [vmem:[%s11652_s1 + $0x60c] sm:$0xf]  ;;  %v5334_v31 = vor.u32 %v7337_v14, %v5331_v16  ;;  %1794 = vmatpush.bf16.msrb.mxu1 %v5078_v30  ;;  %v7302_v14 = vld [vmem:[%s11652_s1 + $0x2ec] sm:$0xf0]  ;;  %v5019_v11 = vld [vmem:[%s11652_s1 + $0x1b0] sm:$0xf0] }
  0xb5   :  { %v5587_v18 = vld [vmem:[%s11652_s1 + $0x628] sm:$0xf0]  ;;  %1782 = vmatmul.bf16.vlgmr.msrb.gmra.mxu0 %v8212_v20  ;;  %v7366_v16 = vld [vmem:[%s11652_s1 + $0x4ec] sm:$0xf0]  ;;  %v5178_v24 = vor.u32 %v7302_v14, %v5177_v12  ;;  %v7322_v12 = vld [vmem:[%s11652_s1 + $0x394] sm:$0xf] }
  0xb6   :  { %v5590_v34 = vor.u32 %v7401_v17, %v5587_v18  ;;  %1807 = vmatpush.bf16.msrb.mxu2 %v5334_v31  ;;  %1826 = vmatpush.bf16.msra.mxu0 %v5050_v35  ;;  %v5689_v17 = vld [vmem:[%s11652_s1 + $0x6d0] sm:$0xf]  ;;  %v5434_v25 = vor.u32 %v7366_v16, %v5433_v15  ;;  %v5275_v14 = vld [vmem:[%s11652_s1 + $0x3b0] sm:$0xf0] }
  0xb7   :  { %1795 = vmatmul.bf16.vlgmr.msrb.gmra.mxu1 %v8216_v23  ;;  %v7430_v18 = vld [vmem:[%s11652_s1 + $0x6ec] sm:$0xf0]  ;;  %v7386_v15 = vld [vmem:[%s11652_s1 + $0x594] sm:$0xf] }
  0xb8   :  { %1820 = vmatpush.bf16.msrb.mxu3 %v5590_v34  ;;  %1839 = vmatpush.bf16.msra.mxu1 %v5306_v36  ;;  %v4889_v26 = vld [vmem:[%s11652_s1 + $0x90] sm:$0xf]  ;;  %v5690_v29 = vor.u32 %v7430_v18, %v5689_v17  ;;  %v5531_v16 = vld [vmem:[%s11652_s1 + $0x5b0] sm:$0xf0] }
  0xb9   :  { %1808 = vmatmul.bf16.vlgmr.msrb.gmra.mxu2 %v8210_v19  ;;  %v5145_v28 = vld [vmem:[%s11652_s1 + $0x290] sm:$0xf]  ;;  %v4890_v35 = vor.u32 %v7230_v27, %v4889_v26  ;;  %v7450_v17 = vld [vmem:[%s11652_s1 + $0x794] sm:$0xf] }
  0xba   :  { %1852 = vmatpush.bf16.msra.mxu2 %v5562_v37  ;;  %1827 = vmatpush.bf16.msra.mxu0 %v5018_v47  ;;  %v7294_v30 = vld [vmem:[%s11652_s1 + $0x2ac] sm:$0xf0]  ;;  %v5787_v18 = vld [vmem:[%s11652_s1 + $0x7b0] sm:$0xf0] }
  0xbb   :  { %1821 = vmatmul.bf16.vlgmr.msrb.gmra.mxu3 %v8214_v21  ;;  %v5401_v31 = vld [vmem:[%s11652_s1 + $0x490] sm:$0xf]  ;;  %v5146_v36 = vor.u32 %v7294_v30, %v5145_v28  ;;  %v7250_v26 = vld [vmem:[%s11652_s1 + $0x154] sm:$0xf] }
  0xbc   :  { %1865 = vmatpush.bf16.msra.mxu3 %v5818_v41  ;;  %1840 = vmatpush.bf16.msra.mxu1 %v5274_v48  ;;  %v7358_v32 = vld [vmem:[%s11652_s1 + $0x4ac] sm:$0xf0]  ;;  %v4987_v27 = vld [vmem:[%s11652_s1 + $0x170] sm:$0xf0] }
  0xbd   :  { %v5657_v33 = vld [vmem:[%s11652_s1 + $0x690] sm:$0xf]  ;;  %v5402_v37 = vor.u32 %v7358_v32, %v5401_v31  ;;  %v7314_v28 = vld [vmem:[%s11652_s1 + $0x354] sm:$0xf] }
  0xbe   :  { %1853 = vmatpush.bf16.msra.mxu2 %v5530_v49  ;;  %1828 = vmatpush.bf16.msra.mxu0 %v4986_v59  ;;  %v7422_v34 = vld [vmem:[%s11652_s1 + $0x6ac] sm:$0xf0]  ;;  %v7266_v59 = vld [vmem:[%s11652_s1 + $0x1d4] sm:$0xf] }
  0xbf   :  { %v4857_v38 = vld [vmem:[%s11652_s1 + $0x50] sm:$0xf]  ;;  %v5658_v41 = vor.u32 %v7422_v34, %v5657_v33  ;;  %v5243_v30 = vld [vmem:[%s11652_s1 + $0x370] sm:$0xf0] }
  0xc0   :  { %1866 = vmatpush.bf16.msra.mxu3 %v5786_v53  ;;  %1841 = vmatpush.bf16.msra.mxu1 %v5242_v60  ;;  %v7222_v39 = vld [vmem:[%s11652_s1 + $0x6c] sm:$0xf0]  ;;  %v5051_v60 = vld [vmem:[%s11652_s1 + $0x1f0] sm:$0xf0] }
  0xc1   :  { %v5113_v40 = vld [vmem:[%s11652_s1 + $0x250] sm:$0xf]  ;;  %v4858_v47 = vor.u32 %v7222_v39, %v4857_v38  ;;  %v7378_v31 = vld [vmem:[%s11652_s1 + $0x554] sm:$0xf] }
  0xc2   :  { %1854 = vmatpush.bf16.msra.mxu2 %v5498_v61  ;;  %1829 = vmatpush.bf16.msra.mxu0 %v4954_v7  ;;  %v7286_v42 = vld [vmem:[%s11652_s1 + $0x26c] sm:$0xf0]  ;;  %v7330_v61 = vld [vmem:[%s11652_s1 + $0x3d4] sm:$0xf]  ;;  %v5054_v7 = vor.u32 %v7266_v59, %v5051_v60 }
  0xc3   :  { %v5369_v43 = vld [vmem:[%s11652_s1 + $0x450] sm:$0xf]  ;;  %v5114_v50 = vor.u32 %v7286_v42, %v5113_v40  ;;  %v5499_v32 = vld [vmem:[%s11652_s1 + $0x570] sm:$0xf0] }
  0xc4   :  { %1867 = vmatpush.bf16.msra.mxu3 %v5754_v1  ;;  %1842 = vmatpush.bf16.msra.mxu1 %v5210_v8  ;;  %v7350_v44 = vld [vmem:[%s11652_s1 + $0x46c] sm:$0xf0]  ;;  %v5563_v1 = vld [vmem:[%s11652_s1 + $0x5f0] sm:$0xf0]  ;;  %v5310_v8 = vor.u32 %v7330_v61, %v5307_v63 }
  0xc5   :  { %v5625_v45 = vld [vmem:[%s11652_s1 + $0x650] sm:$0xf]  ;;  %v5370_v51 = vor.u32 %v7350_v44, %v5369_v43  ;;  %v7442_v33 = vld [vmem:[%s11652_s1 + $0x754] sm:$0xf] }
  0xc6   :  { %1855 = vmatpush.bf16.msra.mxu2 %v5466_v9  ;;  %1830 = vmatpush.bf16.msra.mxu0 %v4922_v22  ;;  %v7414_v46 = vld [vmem:[%s11652_s1 + $0x66c] sm:$0xf0]  ;;  %v5566_v9 = vor.u32 %v7394_v0, %v5563_v1  ;;  %v5022_v22 = vor.u32 %v7258_v10, %v5019_v11  ;;  %v5755_v34 = vld [vmem:[%s11652_s1 + $0x770] sm:$0xf0]  ;;  %v1627_v10 = vpop.f32.mrf.mxu0 }
  0xc7   :  { %v4825_v48 = vld [vmem:[%s11652_s1 + $0x10] sm:$0xf]  ;;  %v5626_v55 = vor.u32 %v7414_v46, %v5625_v45  ;;  %v7242_v38 = vld [vmem:[%s11652_s1 + $0x114] sm:$0xf] }
  0xc8   :  { %1868 = vmatpush.bf16.msra.mxu3 %v5722_v13  ;;  %1843 = vmatpush.bf16.msra.mxu1 %v5178_v24  ;;  %v7214_v49 = vld [vmem:[%s11652_s1 + $0x2c] sm:$0xf0]  ;;  %v5822_v13 = vor.u32 %v7458_v4, %v5819_v5  ;;  %v5278_v24 = vor.u32 %v7322_v12, %v5275_v14  ;;  %v4955_v39 = vld [vmem:[%s11652_s1 + $0x130] sm:$0xf0] }
  0xc9   :  { %v5081_v52 = vld [vmem:[%s11652_s1 + $0x210] sm:$0xf]  ;;  %v4826_v62 = vor.u32 %v7214_v49, %v4825_v48  ;;  %v7306_v40 = vld [vmem:[%s11652_s1 + $0x314] sm:$0xf] }
  0xca   :  { %1856 = vmatpush.bf16.msra.mxu2 %v5434_v25  ;;  %1831 = vmatpush.bf16.msra.mxu0 %v4890_v35  ;;  %v7278_v53 = vld [vmem:[%s11652_s1 + $0x22c] sm:$0xf0]  ;;  %v5534_v25 = vor.u32 %v7386_v15, %v5531_v16  ;;  %v4990_v35 = vor.u32 %v7250_v26, %v4987_v27  ;;  %v5211_v42 = vld [vmem:[%s11652_s1 + $0x330] sm:$0xf0] }
  0xcb   :  { %v5337_v54 = vld [vmem:[%s11652_s1 + $0x410] sm:$0xf]  ;;  %v5082_v2 = vor.u32 %v7278_v53, %v5081_v52  ;;  %v7370_v43 = vld [vmem:[%s11652_s1 + $0x514] sm:$0xf]  ;;  %v5214_v49 = vor.u32 %v7306_v40, %v5211_v42 }
  0xcc   :  { %1869 = vmatpush.bf16.msra.mxu3 %v5690_v29  ;;  %1844 = vmatpush.bf16.msra.mxu1 %v5146_v36  ;;  %v7342_v56 = vld [vmem:[%s11652_s1 + $0x42c] sm:$0xf0]  ;;  %v5790_v29 = vor.u32 %v7450_v17, %v5787_v18  ;;  %v5246_v36 = vor.u32 %v7314_v28, %v5243_v30  ;;  %v5467_v44 = vld [vmem:[%s11652_s1 + $0x530] sm:$0xf0]  ;;  %v1640_v17 = vpop.f32.mrf.mxu1 }
  0xcd   :  { %v5593_v57 = vld [vmem:[%s11652_s1 + $0x610] sm:$0xf]  ;;  %v5338_v3 = vor.u32 %v7342_v56, %v5337_v54  ;;  %v7434_v45 = vld [vmem:[%s11652_s1 + $0x714] sm:$0xf] }
  0xce   :  { %1857 = vmatpush.bf16.msra.mxu2 %v5402_v37  ;;  %v7406_v58 = vld [vmem:[%s11652_s1 + $0x62c] sm:$0xf0]  ;;  %1832 = vmatpush.bf16.msra.mxu0 %v4858_v47  ;;  %v5502_v37 = vor.u32 %v7378_v31, %v5499_v32  ;;  %v5723_v46 = vld [vmem:[%s11652_s1 + $0x730] sm:$0xf0]  ;;  %v4958_v47 = vor.u32 %v7242_v38, %v4955_v39 }
  0xcf   :  { %v5594_v6 = vor.u32 %v7406_v58, %v5593_v57  ;;  %v7234_v48 = vld [vmem:[%s11652_s1 + $0xd4] sm:$0xf]  ;;  %v5726_v54 = vor.u32 %v7434_v45, %v5723_v46  ;;  %v9027_v57 = vld [vmem:[%s11653_s2] sm:$0xff]  ;;  %v7271_v45 = vld [vmem:[%s11652_s1 + $0x1f4] sm:$0xf0] }
  0xd0   :  { %1870 = vmatpush.bf16.msra.mxu3 %v5658_v41  ;;  %1845 = vmatpush.bf16.msra.mxu1 %v5114_v50  ;;  %v5758_v41 = vor.u32 %v7442_v33, %v5755_v34  ;;  %v5470_v50 = vor.u32 %v7370_v43, %v5467_v44  ;;  %v7298_v52 = vld [vmem:[%s11652_s1 + $0x2d4] sm:$0xf]  ;;  %v1666_v43 = vpop.f32.mrf.mxu3  ;;  %v5057_v44 = vld [vmem:[%s11652_s1 + $0x1d8] sm:$0xf] }
  0xd1   :  { %v5179_v53 = vld [vmem:[%s11652_s1 + $0x2f0] sm:$0xf0]  ;;  %v5313_v46 = vld [vmem:[%s11652_s1 + $0x3d8] sm:$0xf] }
  0xd2   :  { %1858 = vmatpush.bf16.msra.mxu2 %v5370_v51  ;;  %1833 = vmatpush.bf16.msra.mxu0 %v4826_v62  ;;  %v4923_v51 = vld [vmem:[%s11652_s1 + $0xf0] sm:$0xf0]  ;;  %v5182_v62 = vor.u32 %v7298_v52, %v5179_v53  ;;  %v1629_v52 = vpop.f32.mrf.mxu0 }
  0xd3   :  { %v5435_v56 = vld [vmem:[%s11652_s1 + $0x4f0] sm:$0xf0]  ;;  %v4926_v60 = vor.u32 %v7234_v48, %v4923_v51  ;;  %v7335_v48 = vld [vmem:[%s11652_s1 + $0x3f4] sm:$0xf0] }
  0xd4   :  { %1871 = vmatpush.bf16.msra.mxu3 %v5626_v55  ;;  %1846 = vmatpush.bf16.msra.mxu1 %v5082_v2  ;;  %v7362_v55 = vld [vmem:[%s11652_s1 + $0x4d4] sm:$0xf]  ;;  %v308_v2 = vperm.slane %v9027_v57, 0  ;;  %v7367_v52 = vld [vmem:[%s11652_s1 + $0x4f4] sm:$0xf0] }
  0xd5   :  { %1834 = vmatmul.bf16.vlgmr.msra.gmra.mxu0 %v8212_v20  ;;  %v7426_v58 = vld [vmem:[%s11652_s1 + $0x6d4] sm:$0xf]  ;;  %v5438_v63 = vor.u32 %v7362_v55, %v5435_v56  ;;  %v5825_v55 = vld [vmem:[%s11652_s1 + $0x7d8] sm:$0xf] }
  0xd6   :  { %1859 = vmatpush.bf16.msra.mxu2 %v5338_v3  ;;  %1878 = vmatpush.bf16.msrb.mxu0 %v5054_v7  ;;  %v5691_v59 = vld [vmem:[%s11652_s1 + $0x6f0] sm:$0xf0]  ;;  %v1628_v16 = vadd.f32 %v1627_v10, %v308_v2  ;;  %v7463_v56 = vld [vmem:[%s11652_s1 + $0x7f4] sm:$0xf0] }
  0xd7   :  { %1847 = vmatmul.bf16.vlgmr.msra.gmra.mxu1 %v8216_v23  ;;  %v7226_v61 = vld [vmem:[%s11652_s1 + $0x94] sm:$0xf]  ;;  %v5694_v3 = vor.u32 %v7426_v58, %v5691_v59  ;;  %v1642_v58 = vpop.f32.mrf.mxu1  ;;  %v5826_v2 = vor.u32 %v7463_v56, %v5825_v55 }
  0xd8   :  { %1872 = vmatpush.bf16.msra.mxu3 %v5594_v6  ;;  %1891 = vmatpush.bf16.msrb.mxu1 %v5310_v8  ;;  %v4891_v0 = vld [vmem:[%s11652_s1 + $0xb0] sm:$0xf0]  ;;  %v1641_v28 = vadd.f32 %v1640_v17, %v1628_v16  ;;  %v1668_v10 = vpop.f32.mrf.mxu3  ;;  %v7319_v17 = vld [vmem:[%s11652_s1 + $0x374] sm:$0xf0] }
  0xd9   :  { %1860 = vmatmul.bf16.vlgmr.msra.gmra.mxu2 %v8210_v19  ;;  %v7290_v1 = vld [vmem:[%s11652_s1 + $0x294] sm:$0xf] }
  0xda   :  { %1904 = vmatpush.bf16.msrb.mxu2 %v5566_v9  ;;  %1879 = vmatpush.bf16.msrb.mxu0 %v5022_v22  ;;  %v5147_v4 = vld [vmem:[%s11652_s1 + $0x2b0] sm:$0xf0]  ;;  %v4894_v9 = vor.u32 %v7226_v61, %v4891_v0  ;;  %v5314_v61 = vor.u32 %v7335_v48, %v5313_v46  ;;  %v7263_v0 = vld [vmem:[%s11652_s1 + $0x1b4] sm:$0xf0] }
  0xdb   :  { %1873 = vmatmul.bf16.vlgmr.msra.gmra.mxu3 %v8214_v21  ;;  %v7354_v5 = vld [vmem:[%s11652_s1 + $0x494] sm:$0xf]  ;;  %v5150_v11 = vor.u32 %v7290_v1, %v5147_v4  ;;  %v5281_v1 = vld [vmem:[%s11652_s1 + $0x398] sm:$0xf] }
  0xdc   :  { %1917 = vmatpush.bf16.msrb.mxu3 %v5822_v13  ;;  %1892 = vmatpush.bf16.msrb.mxu1 %v5278_v24  ;;  %v5403_v6 = vld [vmem:[%s11652_s1 + $0x4b0] sm:$0xf0]  ;;  %v5537_v4 = vld [vmem:[%s11652_s1 + $0x598] sm:$0xf] }
  0xdd   :  { %v7418_v7 = vld [vmem:[%s11652_s1 + $0x694] sm:$0xf]  ;;  %v5406_v12 = vor.u32 %v7354_v5, %v5403_v6  ;;  %v7391_v5 = vld [vmem:[%s11652_s1 + $0x5b4] sm:$0xf0] }
  0xde   :  { %1905 = vmatpush.bf16.msrb.mxu2 %v5534_v25  ;;  %1880 = vmatpush.bf16.msrb.mxu0 %v4990_v35  ;;  %v5659_v8 = vld [vmem:[%s11652_s1 + $0x6b0] sm:$0xf0]  ;;  %v5793_v6 = vld [vmem:[%s11652_s1 + $0x798] sm:$0xf] }
  0xdf   :  { %v7218_v13 = vld [vmem:[%s11652_s1 + $0x54] sm:$0xf]  ;;  %v5662_v18 = vor.u32 %v7418_v7, %v5659_v8  ;;  %v7455_v7 = vld [vmem:[%s11652_s1 + $0x7b4] sm:$0xf0] }
  0xe0   :  { %1918 = vmatpush.bf16.msrb.mxu3 %v5790_v29  ;;  %1893 = vmatpush.bf16.msrb.mxu1 %v5246_v36  ;;  %v4859_v14 = vld [vmem:[%s11652_s1 + $0x70] sm:$0xf0]  ;;  %v5794_v16 = vor.u32 %v7455_v7, %v5793_v6  ;;  %v5665_v6 = vld [vmem:[%s11652_s1 + $0x698] sm:$0xf] }
  0xe1   :  { %v7282_v15 = vld [vmem:[%s11652_s1 + $0x254] sm:$0xf]  ;;  %v4862_v29 = vor.u32 %v7218_v13, %v4859_v14  ;;  %v4993_v13 = vld [vmem:[%s11652_s1 + $0x158] sm:$0xf] }
  0xe2   :  { %1906 = vmatpush.bf16.msrb.mxu2 %v5502_v37  ;;  %1881 = vmatpush.bf16.msrb.mxu0 %v4958_v47  ;;  %v5115_v22 = vld [vmem:[%s11652_s1 + $0x270] sm:$0xf0]  ;;  %v1653_v37 = vpop.f32.mrf.mxu2  ;;  %v7255_v14 = vld [vmem:[%s11652_s1 + $0x174] sm:$0xf0] }
  0xe3   :  { %v7346_v24 = vld [vmem:[%s11652_s1 + $0x454] sm:$0xf]  ;;  %v5118_v32 = vor.u32 %v7282_v15, %v5115_v22  ;;  %v1654_v42 = vadd.f32 %v1653_v37, %v1641_v28  ;;  %v5249_v15 = vld [vmem:[%s11652_s1 + $0x358] sm:$0xf] }
  0xe4   :  { %1919 = vmatpush.bf16.msrb.mxu3 %v5758_v41  ;;  %1894 = vmatpush.bf16.msrb.mxu1 %v5214_v49  ;;  %v5371_v25 = vld [vmem:[%s11652_s1 + $0x470] sm:$0xf0]  ;;  %v5569_v49 = vld [vmem:[%s11652_s1 + $0x5d8] sm:$0xf]  ;;  %v5250_v28 = vor.u32 %v7319_v17, %v5249_v15 }
  0xe5   :  { %v7410_v26 = vld [vmem:[%s11652_s1 + $0x654] sm:$0xf]  ;;  %v5374_v33 = vor.u32 %v7346_v24, %v5371_v25  ;;  %v9126_v51 = vadd.f32 %v1666_v43, %v1654_v42  ;;  %v7383_v22 = vld [vmem:[%s11652_s1 + $0x574] sm:$0xf0] }
  0xe6   :  { %1907 = vmatpush.bf16.msrb.mxu2 %v5470_v50  ;;  %1882 = vmatpush.bf16.msrb.mxu0 %v4926_v60  ;;  %v5627_v27 = vld [vmem:[%s11652_s1 + $0x670] sm:$0xf0]  ;;  %v7399_v50 = vld [vmem:[%s11652_s1 + $0x5f4] sm:$0xf0]  ;;  %v5058_v60 = vor.u32 %v7271_v45, %v5057_v44 }
  0xe7   :  { %v7210_v30 = vld [vmem:[%s11652_s1 + $0x14] sm:$0xf]  ;;  %v5630_v38 = vor.u32 %v7410_v26, %v5627_v27  ;;  %v5761_v24 = vld [vmem:[%s11652_s1 + $0x758] sm:$0xf]  ;;  %v4994_v26 = vor.u32 %v7255_v14, %v4993_v13 }
  0xe8   :  { %1920 = vmatpush.bf16.msrb.mxu3 %v5726_v54  ;;  %1895 = vmatpush.bf16.msrb.mxu1 %v5182_v62  ;;  %v4827_v31 = vld [vmem:[%s11652_s1 + $0x30] sm:$0xf0]  ;;  %v5570_v62 = vor.u32 %v7399_v50, %v5569_v49  ;;  %v7447_v25 = vld [vmem:[%s11652_s1 + $0x774] sm:$0xf0] }
  0xe9   :  { %v7274_v34 = vld [vmem:[%s11652_s1 + $0x214] sm:$0xf]  ;;  %v4830_v47 = vor.u32 %v7210_v30, %v4827_v31  ;;  %v4961_v27 = vld [vmem:[%s11652_s1 + $0x118] sm:$0xf] }
  0xea   :  { %1908 = vmatpush.bf16.msrb.mxu2 %v5438_v63  ;;  %1883 = vmatpush.bf16.msrb.mxu0 %v4894_v9  ;;  %v5083_v35 = vld [vmem:[%s11652_s1 + $0x230] sm:$0xf0]  ;;  %v5025_v63 = vld [vmem:[%s11652_s1 + $0x198] sm:$0xf]  ;;  %v1655_v8 = vpop.f32.mrf.mxu2 }
  0xeb   :  { %v7338_v36 = vld [vmem:[%s11652_s1 + $0x414] sm:$0xf]  ;;  %v5086_v53 = vor.u32 %v7274_v34, %v5083_v35  ;;  %v5026_v9 = vor.u32 %v7263_v0, %v5025_v63  ;;  %v7247_v30 = vld [vmem:[%s11652_s1 + $0x134] sm:$0xf0] }
  0xec   :  { %1921 = vmatpush.bf16.msrb.mxu3 %v5694_v3  ;;  %1896 = vmatpush.bf16.msrb.mxu1 %v5150_v11  ;;  %v5339_v39 = vld [vmem:[%s11652_s1 + $0x430] sm:$0xf0]  ;;  %v7327_v3 = vld [vmem:[%s11652_s1 + $0x3b4] sm:$0xf0] }
  0xed   :  { %v7402_v40 = vld [vmem:[%s11652_s1 + $0x614] sm:$0xf]  ;;  %v5342_v54 = vor.u32 %v7338_v36, %v5339_v39  ;;  %v5282_v11 = vor.u32 %v7327_v3, %v5281_v1  ;;  %v5217_v31 = vld [vmem:[%s11652_s1 + $0x318] sm:$0xf]  ;;  %v4962_v39 = vor.u32 %v7247_v30, %v4961_v27 }
  0xee   :  { %1909 = vmatpush.bf16.msrb.mxu2 %v5406_v12  ;;  %v5595_v41 = vld [vmem:[%s11652_s1 + $0x630] sm:$0xf0]  ;;  %1884 = vmatpush.bf16.msrb.mxu0 %v4862_v29  ;;  %v5538_v12 = vor.u32 %v7391_v5, %v5537_v4  ;;  %v7311_v34 = vld [vmem:[%s11652_s1 + $0x334] sm:$0xf0]  ;;  %v1718_v5 = vpop.f32.mrf.mxu3 }
  0xef   :  { %v5598_v59 = vor.u32 %v7402_v40, %v5595_v41  ;;  %v5473_v35 = vld [vmem:[%s11652_s1 + $0x518] sm:$0xf]  ;;  %v1679_v40 = vpop.f32.mrf.mxu0  ;;  %v5218_v41 = vor.u32 %v7311_v34, %v5217_v31 }
  0xf0   :  { %1922 = vmatpush.bf16.msrb.mxu3 %v5662_v18  ;;  %1897 = vmatpush.bf16.msrb.mxu1 %v5118_v32  ;;  %v5505_v18 = vld [vmem:[%s11652_s1 + $0x558] sm:$0xf]  ;;  %v309_v32 = vperm.slane %v9027_v57, 1 }
  0xf1   :  { %v5506_v29 = vor.u32 %v7383_v22, %v5505_v18  ;;  %v7375_v36 = vld [vmem:[%s11652_s1 + $0x534] sm:$0xf0] }
  0xf2   :  { %1910 = vmatpush.bf16.msrb.mxu2 %v5374_v33  ;;  %1885 = vmatpush.bf16.msrb.mxu0 %v4830_v47  ;;  %v5762_v33 = vor.u32 %v7447_v25, %v5761_v24  ;;  %v5729_v37 = vld [vmem:[%s11652_s1 + $0x718] sm:$0xf]  ;;  %v5474_v42 = vor.u32 %v7375_v36, %v5473_v35  ;;  %v1680_v46 = vadd.f32 %v1679_v40, %v309_v32  ;;  %v1692_v47 = vpop.f32.mrf.mxu1  ;;  %v1705_v63 = vpop.f32.mrf.mxu2 }
  0xf3   :  { %v4929_v43 = vld [vmem:[%s11652_s1 + $0xd8] sm:$0xf] }
  0xf4   :  { %1923 = vmatpush.bf16.msrb.mxu3 %v5630_v38  ;;  %1898 = vmatpush.bf16.msrb.mxu1 %v5086_v53  ;;  %v7439_v38 = vld [vmem:[%s11652_s1 + $0x734] sm:$0xf0]  ;;  %v1693_v55 = vadd.f32 %v1692_v47, %v1680_v46  ;;  %v7395_v46 = vld [vmem:[%s11652_s1 + $0x5dc] sm:$0xf] }
  0xf5   :  { %1886 = vmatmul.bf16.vlgmr.msrb.gmra.mxu0 %v8212_v20  ;;  %v7239_v44 = vld [vmem:[%s11652_s1 + $0xf4] sm:$0xf0]  ;;  %v5730_v48 = vor.u32 %v7439_v38, %v5729_v37  ;;  %v5571_v47 = vld [vmem:[%s11652_s1 + $0x5f8] sm:$0xf0] }
  0xf6   :  { %1911 = vmatpush.bf16.msrb.mxu2 %v5342_v54  ;;  %1930 = vmatpush.bf16.msra.mxu0 %v5058_v60  ;;  %v5185_v45 = vld [vmem:[%s11652_s1 + $0x2d8] sm:$0xf]  ;;  %v4930_v56 = vor.u32 %v7239_v44, %v4929_v43  ;;  %v1706_v4 = vadd.f32 %v1705_v63, %v1693_v55  ;;  %v1720_v40 = vpop.f32.mrf.mxu3  ;;  %v7331_v43 = vld [vmem:[%s11652_s1 + $0x3dc] sm:$0xf] }
  0xf7   :  { %1899 = vmatmul.bf16.vlgmr.msrb.gmra.mxu1 %v8216_v23  ;;  %v7303_v49 = vld [vmem:[%s11652_s1 + $0x2f4] sm:$0xf0]  ;;  %v1681_v10 = vpop.f32.mrf.mxu0  ;;  %v7387_v63 = vld [vmem:[%s11652_s1 + $0x59c] sm:$0xf] }
  0xf8   :  { %1924 = vmatpush.bf16.msrb.mxu3 %v5598_v59  ;;  %1943 = vmatpush.bf16.msra.mxu1 %v5314_v61  ;;  %v5441_v50 = vld [vmem:[%s11652_s1 + $0x4d8] sm:$0xf]  ;;  %v5186_v58 = vor.u32 %v7303_v49, %v5185_v45  ;;  %v5315_v45 = vld [vmem:[%s11652_s1 + $0x3f8] sm:$0xf0] }
  0xf9   :  { %1912 = vmatmul.bf16.vlgmr.msrb.gmra.mxu2 %v8210_v19  ;;  %v5697_v53 = vld [vmem:[%s11652_s1 + $0x6d8] sm:$0xf]  ;;  %v5442_v59 = vor.u32 %v7367_v52, %v5441_v50  ;;  %v7459_v50 = vld [vmem:[%s11652_s1 + $0x7dc] sm:$0xf]  ;;  %v5318_v55 = vor.u32 %v7331_v43, %v5315_v45 }
  0xfa   :  { %1956 = vmatpush.bf16.msra.mxu2 %v5570_v62  ;;  %1931 = vmatpush.bf16.msra.mxu0 %v5026_v9  ;;  %v7431_v54 = vld [vmem:[%s11652_s1 + $0x6f4] sm:$0xf0]  ;;  %v9259_v9 = vadd.f32 %v1718_v5, %v1706_v4  ;;  %v1707_v35 = vpop.f32.mrf.mxu2  ;;  %v5827_v52 = vld [vmem:[%s11652_s1 + $0x7f8] sm:$0xf0] }
  0xfb   :  { %1925 = vmatmul.bf16.vlgmr.msrb.gmra.mxu3 %v8214_v21  ;;  %v4897_v60 = vld [vmem:[%s11652_s1 + $0x98] sm:$0xf]  ;;  %v5698_v0 = vor.u32 %v7431_v54, %v5697_v53  ;;  %v5443_v43 = vld [vmem:[%s11652_s1 + $0x4f8] sm:$0xf0] }
  0xfc   :  { %1969 = vmatpush.bf16.msra.mxu3 %v5826_v2  ;;  %1944 = vmatpush.bf16.msra.mxu1 %v5282_v11  ;;  %v7231_v61 = vld [vmem:[%s11652_s1 + $0xb4] sm:$0xf0]  ;;  %v5699_v45 = vld [vmem:[%s11652_s1 + $0x6f8] sm:$0xf0] }
  0xfd   :  { %v5153_v62 = vld [vmem:[%s11652_s1 + $0x298] sm:$0xf]  ;;  %v4898_v8 = vor.u32 %v7231_v61, %v4897_v60  ;;  %v7323_v60 = vld [vmem:[%s11652_s1 + $0x39c] sm:$0xf]  ;;  %v5830_v61 = vor.u32 %v7459_v50, %v5827_v52 }
  0xfe   :  { %1957 = vmatpush.bf16.msra.mxu2 %v5538_v12  ;;  %1932 = vmatpush.bf16.msra.mxu0 %v4994_v26  ;;  %v7295_v1 = vld [vmem:[%s11652_s1 + $0x2b4] sm:$0xf0]  ;;  %v4899_v50 = vld [vmem:[%s11652_s1 + $0xb8] sm:$0xf0] }
  0xff   :  { %v5409_v2 = vld [vmem:[%s11652_s1 + $0x498] sm:$0xf]  ;;  %v5154_v11 = vor.u32 %v7295_v1, %v5153_v62  ;;  %v5283_v62 = vld [vmem:[%s11652_s1 + $0x3b8] sm:$0xf0] }
 0x100   :  { %1970 = vmatpush.bf16.msra.mxu3 %v5794_v16  ;;  %1945 = vmatpush.bf16.msra.mxu1 %v5250_v28  ;;  %v7359_v3 = vld [vmem:[%s11652_s1 + $0x4b4] sm:$0xf0]  ;;  %v1694_v16 = vpop.f32.mrf.mxu1  ;;  %v7451_v1 = vld [vmem:[%s11652_s1 + $0x79c] sm:$0xf]  ;;  %v5286_v4 = vor.u32 %v7323_v60, %v5283_v62 }
 0x101   :  { %v7423_v7 = vld [vmem:[%s11652_s1 + $0x6b4] sm:$0xf0]  ;;  %v5410_v12 = vor.u32 %v7359_v3, %v5409_v2  ;;  %v5795_v2 = vld [vmem:[%s11652_s1 + $0x7b8] sm:$0xf0] }
 0x102   :  { %1958 = vmatpush.bf16.msra.mxu2 %v5506_v29  ;;  %1933 = vmatpush.bf16.msra.mxu0 %v4962_v39  ;;  %v4865_v13 = vld [vmem:[%s11652_s1 + $0x58] sm:$0xf]  ;;  %v5666_v17 = vor.u32 %v7423_v7, %v5665_v6  ;;  %v7251_v6 = vld [vmem:[%s11652_s1 + $0x15c] sm:$0xf]  ;;  %v5798_v10 = vor.u32 %v7451_v1, %v5795_v2 }
 0x103   :  { %v7223_v14 = vld [vmem:[%s11652_s1 + $0x74] sm:$0xf0]  ;;  %v4995_v7 = vld [vmem:[%s11652_s1 + $0x178] sm:$0xf0] }
 0x104   :  { %1971 = vmatpush.bf16.msra.mxu3 %v5762_v33  ;;  %1946 = vmatpush.bf16.msra.mxu1 %v5218_v41  ;;  %v5121_v15 = vld [vmem:[%s11652_s1 + $0x258] sm:$0xf]  ;;  %v4866_v27 = vor.u32 %v7223_v14, %v4865_v13  ;;  %v7267_v41 = vld [vmem:[%s11652_s1 + $0x1dc] sm:$0xf]  ;;  %v4998_v16 = vor.u32 %v7251_v6, %v4995_v7 }
 0x105   :  { %v7287_v18 = vld [vmem:[%s11652_s1 + $0x274] sm:$0xf0]  ;;  %v5507_v13 = vld [vmem:[%s11652_s1 + $0x578] sm:$0xf0] }
 0x106   :  { %1959 = vmatpush.bf16.msra.mxu2 %v5474_v42  ;;  %1934 = vmatpush.bf16.msra.mxu0 %v4930_v56  ;;  %v5377_v22 = vld [vmem:[%s11652_s1 + $0x458] sm:$0xf]  ;;  %v5122_v30 = vor.u32 %v7287_v18, %v5121_v15  ;;  %v5059_v42 = vld [vmem:[%s11652_s1 + $0x1f8] sm:$0xf0]  ;;  %v5574_v56 = vor.u32 %v7395_v46, %v5571_v47 }
 0x107   :  { %v7351_v24 = vld [vmem:[%s11652_s1 + $0x474] sm:$0xf0]  ;;  %v5062_v54 = vor.u32 %v7267_v41, %v5059_v42  ;;  %v7443_v14 = vld [vmem:[%s11652_s1 + $0x75c] sm:$0xf] }
 0x108   :  { %1972 = vmatpush.bf16.msra.mxu3 %v5730_v48  ;;  %1947 = vmatpush.bf16.msra.mxu1 %v5186_v58  ;;  %v5633_v25 = vld [vmem:[%s11652_s1 + $0x658] sm:$0xf]  ;;  %v5378_v31 = vor.u32 %v7351_v24, %v5377_v22  ;;  %v7259_v58 = vld [vmem:[%s11652_s1 + $0x19c] sm:$0xf] }
 0x109   :  { %v7415_v26 = vld [vmem:[%s11652_s1 + $0x674] sm:$0xf0]  ;;  %v5763_v15 = vld [vmem:[%s11652_s1 + $0x778] sm:$0xf0] }
 0x10a   :  { %1960 = vmatpush.bf16.msra.mxu2 %v5442_v59  ;;  %1935 = vmatpush.bf16.msra.mxu0 %v4898_v8  ;;  %v4833_v28 = vld [vmem:[%s11652_s1 + $0x18] sm:$0xf]  ;;  %v5634_v36 = vor.u32 %v7415_v26, %v5633_v25  ;;  %v5027_v59 = vld [vmem:[%s11652_s1 + $0x1b8] sm:$0xf0]  ;;  %v5766_v26 = vor.u32 %v7443_v14, %v5763_v15 }
 0x10b   :  { %v7215_v29 = vld [vmem:[%s11652_s1 + $0x34] sm:$0xf0]  ;;  %v5030_v3 = vor.u32 %v7259_v58, %v5027_v59  ;;  %v7315_v8 = vld [vmem:[%s11652_s1 + $0x35c] sm:$0xf] }
 0x10c   :  { %1973 = vmatpush.bf16.msra.mxu3 %v5698_v0  ;;  %1948 = vmatpush.bf16.msra.mxu1 %v5154_v11  ;;  %v5089_v32 = vld [vmem:[%s11652_s1 + $0x218] sm:$0xf]  ;;  %v4834_v44 = vor.u32 %v7215_v29, %v4833_v28  ;;  %v5539_v0 = vld [vmem:[%s11652_s1 + $0x5b8] sm:$0xf0] }
 0x10d   :  { %v7279_v33 = vld [vmem:[%s11652_s1 + $0x234] sm:$0xf0]  ;;  %v5542_v5 = vor.u32 %v7387_v63, %v5539_v0  ;;  %v5251_v11 = vld [vmem:[%s11652_s1 + $0x378] sm:$0xf0] }
 0x10e   :  { %1961 = vmatpush.bf16.msra.mxu2 %v5410_v12  ;;  %v5345_v34 = vld [vmem:[%s11652_s1 + $0x418] sm:$0xf]  ;;  %1936 = vmatpush.bf16.msra.mxu0 %v4866_v27  ;;  %v5090_v48 = vor.u32 %v7279_v33, %v5089_v32  ;;  %v7379_v12 = vld [vmem:[%s11652_s1 + $0x55c] sm:$0xf]  ;;  %v9409_v33 = vpop.f32.mrf.mxu0  ;;  %v9457_v59 = vpop.f32.mrf.mxu3 }
 0x10f   :  { %v7343_v37 = vld [vmem:[%s11652_s1 + $0x434] sm:$0xf0]  ;;  %v5510_v18 = vor.u32 %v7379_v12, %v5507_v13  ;;  %v7243_v22 = vld [vmem:[%s11652_s1 + $0x11c] sm:$0xf] }
 0x110   :  { %1974 = vmatpush.bf16.msra.mxu3 %v5666_v17  ;;  %v5601_v38 = vld [vmem:[%s11652_s1 + $0x618] sm:$0xf]  ;;  %1949 = vmatpush.bf16.msra.mxu1 %v5122_v30  ;;  %v5346_v49 = vor.u32 %v7343_v37, %v5345_v34  ;;  %v5254_v17 = vor.u32 %v7315_v8, %v5251_v11  ;;  %v4963_v24 = vld [vmem:[%s11652_s1 + $0x138] sm:$0xf0] }
 0x111   :  { %v7407_v39 = vld [vmem:[%s11652_s1 + $0x634] sm:$0xf0]  ;;  %v7307_v25 = vld [vmem:[%s11652_s1 + $0x31c] sm:$0xf]  ;;  %v4966_v32 = vor.u32 %v7243_v22, %v4963_v24 }
 0x112   :  { %1962 = vmatpush.bf16.msra.mxu2 %v5378_v31  ;;  %v5602_v53 = vor.u32 %v7407_v39, %v5601_v38  ;;  %1937 = vmatpush.bf16.msra.mxu0 %v4834_v44  ;;  %v5219_v27 = vld [vmem:[%s11652_s1 + $0x338] sm:$0xf0]  ;;  %v9420_v39 = vpop.f32.mrf.mxu1 }
 0x113   :  { %v7371_v28 = vld [vmem:[%s11652_s1 + $0x51c] sm:$0xf]  ;;  %v5222_v34 = vor.u32 %v7307_v25, %v5219_v27 }
 0x114   :  { %1975 = vmatpush.bf16.msra.mxu3 %v5634_v36  ;;  %1950 = vmatpush.bf16.msra.mxu1 %v5090_v48  ;;  %v5475_v29 = vld [vmem:[%s11652_s1 + $0x538] sm:$0xf0] }
 0x115   :  { %1938 = vmatmul.bf16.vlgmr.msra.gmra.mxu0 %v8212_v20  ;;  %v7435_v30 = vld [vmem:[%s11652_s1 + $0x71c] sm:$0xf]  ;;  %v5478_v35 = vor.u32 %v7371_v28, %v5475_v29 }
 0x116   :  { %1963 = vmatpush.bf16.msra.mxu2 %v5346_v49  ;;  %1982 = vmatpush.bf16.msrb.mxu0 %v5062_v54  ;;  %v5731_v31 = vld [vmem:[%s11652_s1 + $0x738] sm:$0xf0]  ;;  %v1733_v63 = vpop.f32.mrf.mxu0 }
 0x117   :  { %1951 = vmatmul.bf16.vlgmr.msra.gmra.mxu1 %v8216_v23  ;;  %v7235_v36 = vld [vmem:[%s11652_s1 + $0xdc] sm:$0xf]  ;;  %v5734_v40 = vor.u32 %v7435_v30, %v5731_v31  ;;  %v1772_v30 = vpop.f32.mrf.mxu3  ;;  %v5945_v31 = vld [vmem:[%s11654_s3 + $0xe0] sm:$0xf] }
 0x118   :  { %1976 = vmatpush.bf16.msra.mxu3 %v5602_v53  ;;  %1995 = vmatpush.bf16.msrb.mxu1 %v5318_v55  ;;  %v4931_v37 = vld [vmem:[%s11652_s1 + $0xf8] sm:$0xf0]  ;;  %v9446_v53 = vpop.f32.mrf.mxu2 }
 0x119   :  { %1964 = vmatmul.bf16.vlgmr.msra.gmra.mxu2 %v8210_v19  ;;  %v7299_v38 = vld [vmem:[%s11652_s1 + $0x2dc] sm:$0xf]  ;;  %v4934_v46 = vor.u32 %v7235_v36, %v4931_v37  ;;  %v7526_v36 = vld [vmem:[%s11654_s3 + $0x1ec] sm:$0xf0]  ;;  %v6201_v37 = vld [vmem:[%s11654_s3 + $0x2e0] sm:$0xf] }
 0x11a   :  { %2008 = vmatpush.bf16.msrb.mxu2 %v5574_v56  ;;  %1983 = vmatpush.bf16.msrb.mxu0 %v5030_v3  ;;  %v5187_v41 = vld [vmem:[%s11652_s1 + $0x2f8] sm:$0xf0] }
 0x11b   :  { %1977 = vmatmul.bf16.vlgmr.msra.gmra.mxu3 %v8214_v21  ;;  %v7363_v42 = vld [vmem:[%s11652_s1 + $0x4dc] sm:$0xf]  ;;  %v5190_v47 = vor.u32 %v7299_v38, %v5187_v41  ;;  %v7558_v38 = vld [vmem:[%s11654_s3 + $0x2ec] sm:$0xf0] }
 0x11c   :  { %2021 = vmatpush.bf16.msrb.mxu3 %v5830_v61  ;;  %1996 = vmatpush.bf16.msrb.mxu1 %v5286_v4  ;;  %v7427_v44 = vld [vmem:[%s11652_s1 + $0x6dc] sm:$0xf]  ;;  %v5446_v48 = vor.u32 %v7363_v42, %v5443_v43 }
 0x11d   :  { %v7227_v49 = vld [vmem:[%s11652_s1 + $0x9c] sm:$0xf]  ;;  %v5702_v54 = vor.u32 %v7427_v44, %v5699_v45  ;;  %v6329_v44 = vld [vmem:[%s11654_s3 + $0x3e0] sm:$0xf]  ;;  %v7590_v45 = vld [vmem:[%s11654_s3 + $0x3ec] sm:$0xf0] }
 0x11e   :  { %2009 = vmatpush.bf16.msrb.mxu2 %v5542_v5  ;;  %1984 = vmatpush.bf16.msrb.mxu0 %v4998_v16  ;;  %v7291_v52 = vld [vmem:[%s11652_s1 + $0x29c] sm:$0xf]  ;;  %v4902_v62 = vor.u32 %v7227_v49, %v4899_v50  ;;  %v1746_v5 = vpop.f32.mrf.mxu1  ;;  %v7490_v49 = vld [vmem:[%s11654_s3 + $0xcc] sm:$0xf0]  ;;  %v6057_v50 = vld [vmem:[%s11654_s3 + $0x1c0] sm:$0xf] }
 0x11f   :  { %v5155_v55 = vld [vmem:[%s11652_s1 + $0x2b8] sm:$0xf0]  ;;  %v7550_v5 = vld [vmem:[%s11654_s3 + $0x2ac] sm:$0xf0] }
 0x120   :  { %2022 = vmatpush.bf16.msrb.mxu3 %v5798_v10  ;;  %1997 = vmatpush.bf16.msrb.mxu1 %v5254_v17  ;;  %v7355_v56 = vld [vmem:[%s11652_s1 + $0x49c] sm:$0xf]  ;;  %v5158_v0 = vor.u32 %v7291_v52, %v5155_v55  ;;  %v1759_v25 = vpop.f32.mrf.mxu2  ;;  %v7522_v52 = vld [vmem:[%s11654_s3 + $0x1cc] sm:$0xf0] }
 0x121   :  { %v5411_v58 = vld [vmem:[%s11652_s1 + $0x4b8] sm:$0xf0]  ;;  %v7554_v55 = vld [vmem:[%s11654_s3 + $0x2cc] sm:$0xf0] }
 0x122   :  { %2010 = vmatpush.bf16.msrb.mxu2 %v5510_v18  ;;  %1985 = vmatpush.bf16.msrb.mxu0 %v4966_v32  ;;  %v7419_v60 = vld [vmem:[%s11652_s1 + $0x69c] sm:$0xf]  ;;  %v5414_v1 = vor.u32 %v7355_v56, %v5411_v58  ;;  %v7494_v32 = vld [vmem:[%s11654_s3 + $0xec] sm:$0xf0]  ;;  %v6330_v56 = vor.u32 %v7590_v45, %v6329_v44  ;;  %v5993_v45 = vld [vmem:[%s11654_s3 + $0x140] sm:$0xf] }
 0x123   :  { %v5667_v61 = vld [vmem:[%s11652_s1 + $0x6b8] sm:$0xf0]  ;;  %v5946_v43 = vor.u32 %v7494_v32, %v5945_v31  ;;  %v7510_v31 = vld [vmem:[%s11654_s3 + $0x16c] sm:$0xf0]  ;;  %v6137_v32 = vld [vmem:[%s11654_s3 + $0x260] sm:$0xf] }
 0x124   :  { %2023 = vmatpush.bf16.msrb.mxu3 %v5766_v26  ;;  %1998 = vmatpush.bf16.msrb.mxu1 %v5222_v34  ;;  %v7219_v2 = vld [vmem:[%s11652_s1 + $0x5c] sm:$0xf]  ;;  %v5670_v6 = vor.u32 %v7419_v60, %v5667_v61  ;;  %v6073_v34 = vld [vmem:[%s11654_s3 + $0x1e0] sm:$0xf]  ;;  %v7586_v61 = vld [vmem:[%s11654_s3 + $0x3cc] sm:$0xf0] }
 0x125   :  { %v4867_v3 = vld [vmem:[%s11652_s1 + $0x78] sm:$0xf0]  ;;  %v6313_v60 = vld [vmem:[%s11654_s3 + $0x3c0] sm:$0xf]  ;;  %v7474_v44 = vld [vmem:[%s11654_s3 + $0x4c] sm:$0xf0] }
 0x126   :  { %2011 = vmatpush.bf16.msrb.mxu2 %v5478_v35  ;;  %1986 = vmatpush.bf16.msrb.mxu0 %v4934_v46  ;;  %v7283_v4 = vld [vmem:[%s11652_s1 + $0x25c] sm:$0xf]  ;;  %v4870_v13 = vor.u32 %v7219_v2, %v4867_v3  ;;  %v6074_v46 = vor.u32 %v7526_v36, %v6073_v34  ;;  %v6041_v2 = vld [vmem:[%s11654_s3 + $0x1a0] sm:$0xf]  ;;  %v7518_v3 = vld [vmem:[%s11654_s3 + $0x1ac] sm:$0xf0] }
 0x127   :  { %v5123_v7 = vld [vmem:[%s11652_s1 + $0x278] sm:$0xf0]  ;;  %v7542_v34 = vld [vmem:[%s11654_s3 + $0x26c] sm:$0xf0] }
 0x128   :  { %2024 = vmatpush.bf16.msrb.mxu3 %v5734_v40  ;;  %1999 = vmatpush.bf16.msrb.mxu1 %v5190_v47  ;;  %v7347_v8 = vld [vmem:[%s11652_s1 + $0x45c] sm:$0xf]  ;;  %v5126_v16 = vor.u32 %v7283_v4, %v5123_v7  ;;  %v6202_v47 = vor.u32 %v7558_v38, %v6201_v37  ;;  %v6169_v4 = vld [vmem:[%s11654_s3 + $0x2a0] sm:$0xf]  ;;  %v7582_v7 = vld [vmem:[%s11654_s3 + $0x3ac] sm:$0xf0] }
 0x129   :  { %v5379_v10 = vld [vmem:[%s11652_s1 + $0x478] sm:$0xf0] }
 0x12a   :  { %2012 = vmatpush.bf16.msrb.mxu2 %v5446_v48  ;;  %v7411_v11 = vld [vmem:[%s11652_s1 + $0x65c] sm:$0xf]  ;;  %1987 = vmatpush.bf16.msrb.mxu0 %v4902_v62  ;;  %v5382_v17 = vor.u32 %v7347_v8, %v5379_v10  ;;  %v5929_v48 = vld [vmem:[%s11654_s3 + $0xc0] sm:$0xf]  ;;  %v6058_v62 = vor.u32 %v7522_v52, %v6057_v50  ;;  %v6042_v8 = vor.u32 %v7518_v3, %v6041_v2  ;;  %v7502_v3 = vld [vmem:[%s11654_s3 + $0x12c] sm:$0xf0] }
 0x12b   :  { %v5635_v12 = vld [vmem:[%s11652_s1 + $0x678] sm:$0xf0]  ;;  %v5930_v58 = vor.u32 %v7490_v49, %v5929_v48  ;;  %v6170_v10 = vor.u32 %v7550_v5, %v6169_v4  ;;  %v6121_v48 = vld [vmem:[%s11654_s3 + $0x240] sm:$0xf]  ;;  %v7538_v49 = vld [vmem:[%s11654_s3 + $0x24c] sm:$0xf0] }
 0x12c   :  { %2025 = vmatpush.bf16.msrb.mxu3 %v5702_v54  ;;  %v7211_v14 = vld [vmem:[%s11652_s1 + $0x1c] sm:$0xf]  ;;  %2000 = vmatpush.bf16.msrb.mxu1 %v5158_v0  ;;  %v5638_v26 = vor.u32 %v7411_v11, %v5635_v12  ;;  %v6185_v54 = vld [vmem:[%s11654_s3 + $0x2c0] sm:$0xf]  ;;  %v7514_v12 = vld [vmem:[%s11654_s3 + $0x18c] sm:$0xf0] }
 0x12d   :  { %v4835_v15 = vld [vmem:[%s11652_s1 + $0x38] sm:$0xf0]  ;;  %v6186_v63 = vor.u32 %v7554_v55, %v6185_v54  ;;  %v5913_v0 = vld [vmem:[%s11654_s3 + $0xa0] sm:$0xf]  ;;  %v7534_v5 = vld [vmem:[%s11654_s3 + $0x22c] sm:$0xf0] }
 0x12e   :  { %2013 = vmatpush.bf16.msrb.mxu2 %v5414_v1  ;;  %v7275_v18 = vld [vmem:[%s11652_s1 + $0x21c] sm:$0xf]  ;;  %1988 = vmatpush.bf16.msrb.mxu0 %v4870_v13  ;;  %v4838_v35 = vor.u32 %v7211_v14, %v4835_v15  ;;  %v7486_v1 = vld [vmem:[%s11654_s3 + $0xac] sm:$0xf0]  ;;  %v6025_v11 = vld [vmem:[%s11654_s3 + $0x180] sm:$0xf] }
 0x12f   :  { %v5091_v22 = vld [vmem:[%s11652_s1 + $0x238] sm:$0xf0]  ;;  %v6153_v13 = vld [vmem:[%s11654_s3 + $0x280] sm:$0xf]  ;;  %v7546_v14 = vld [vmem:[%s11654_s3 + $0x28c] sm:$0xf0] }
 0x130   :  { %v7339_v24 = vld [vmem:[%s11652_s1 + $0x41c] sm:$0xf]  ;;  %2026 = vmatpush.bf16.msrb.mxu3 %v5670_v6  ;;  %2001 = vmatpush.bf16.msrb.mxu1 %v5126_v16  ;;  %v5094_v40 = vor.u32 %v7275_v18, %v5091_v22  ;;  %v6297_v6 = vld [vmem:[%s11654_s3 + $0x3a0] sm:$0xf]  ;;  %v310_v15 = vperm.slane %v9027_v57, 2  ;;  %v311_v16 = vperm.slane %v9027_v57, 3 }
 0x131   :  { %v5347_v27 = vld [vmem:[%s11652_s1 + $0x438] sm:$0xf0]  ;;  %v6281_v22 = vld [vmem:[%s11654_s3 + $0x380] sm:$0xf] }
 0x132   :  { %v7403_v28 = vld [vmem:[%s11652_s1 + $0x61c] sm:$0xf]  ;;  %2014 = vmatpush.bf16.msrb.mxu2 %v5382_v17  ;;  %v5350_v41 = vor.u32 %v7339_v24, %v5347_v27  ;;  %1989 = vmatpush.bf16.msrb.mxu0 %v4838_v35  ;;  %v6298_v17 = vor.u32 %v7582_v7, %v6297_v6  ;;  %v7578_v24 = vld [vmem:[%s11654_s3 + $0x38c] sm:$0xf0]  ;;  %v1783_v25 = vpop.f32.mrf.mxu0  ;;  %v6154_v27 = vor.u32 %v7546_v14, %v6153_v13  ;;  %v5881_v57 = vld [vmem:[%s11654_s3 + $0x60] sm:$0xf] }
 0x133   :  { %v5603_v29 = vld [vmem:[%s11652_s1 + $0x638] sm:$0xf0]  ;;  %v1732_v35 = vadd.f32 %v9409_v33, %v310_v15  ;;  %v1784_v36 = vadd.f32 %v1783_v25, %v311_v16  ;;  %v6282_v37 = vor.u32 %v7578_v24, %v6281_v22  ;;  %v5865_v33 = vld [vmem:[%s11654_s3 + $0x40] sm:$0xf]  ;;  %v7498_v13 = vld [vmem:[%s11654_s3 + $0x10c] sm:$0xf0] }
 0x134   :  { %2027 = vmatpush.bf16.msrb.mxu3 %v5638_v26  ;;  %v5606_v42 = vor.u32 %v7403_v28, %v5603_v29  ;;  %2002 = vmatpush.bf16.msrb.mxu1 %v5094_v40  ;;  %v6026_v26 = vor.u32 %v7514_v12, %v6025_v11  ;;  %v7478_v28 = vld [vmem:[%s11654_s3 + $0x6c] sm:$0xf0]  ;;  %v6009_v29 = vld [vmem:[%s11654_s3 + $0x160] sm:$0xf]  ;;  %v1796_v30 = vpop.f32.mrf.mxu1 }
 0x135   :  { %1990 = vmatmul.bf16.vlgmr.msrb.gmra.mxu0 %v8212_v20  ;;  %v6314_v20 = vor.u32 %v7586_v61, %v6313_v60  ;;  %v5882_v38 = vor.u32 %v7478_v28, %v5881_v57  ;;  %v6265_v40 = vld [vmem:[%s11654_s3 + $0x360] sm:$0xf]  ;;  %v1745_v52 = vadd.f32 %v9420_v39, %v1732_v35  ;;  %v1797_v54 = vadd.f32 %v1796_v30, %v1784_v36  ;;  %v7570_v60 = vld [vmem:[%s11654_s3 + $0x34c] sm:$0xf0] }
 0x136   :  { %2015 = vmatpush.bf16.msrb.mxu2 %v5350_v41  ;;  %3596 = vmatpush.bf16.msra.mxu0 %v5946_v43  ;;  %v7574_v41 = vld [vmem:[%s11654_s3 + $0x36c] sm:$0xf0]  ;;  %v6138_v43 = vor.u32 %v7542_v34, %v6137_v32  ;;  %v5849_v39 = vld [vmem:[%s11654_s3 + $0x20] sm:$0xf]  ;;  %v2034_v30 = vmax.f32 %v9126_v51, 0.0  ;;  %v2035_v36 = vmax.f32 %v9259_v9, 0.0 }
 0x137   :  { %2003 = vmatmul.bf16.vlgmr.msrb.gmra.mxu1 %v8216_v23  ;;  %v5914_v23 = vor.u32 %v7486_v1, %v5913_v0  ;;  %v6266_v55 = vor.u32 %v7574_v41, %v6265_v40  ;;  %v7470_v0 = vld [vmem:[%s11654_s3 + $0x2c] sm:$0xf0]  ;;  %v5977_v1 = vld [vmem:[%s11654_s3 + $0x120] sm:$0xf] }
 0x138   :  { %2028 = vmatpush.bf16.msrb.mxu3 %v5606_v42  ;;  %3609 = vmatpush.bf16.msra.mxu1 %v6074_v46  ;;  %v6010_v42 = vor.u32 %v7510_v31, %v6009_v29  ;;  %v6105_v4 = vld [vmem:[%s11654_s3 + $0x220] sm:$0xf]  ;;  %v5850_v7 = vor.u32 %v7470_v0, %v5849_v39  ;;  %v7466_v11 = vld [vmem:[%s11654_s3 + $0xc] sm:$0xf0] }
 0x139   :  { %2016 = vmatmul.bf16.vlgmr.msrb.gmra.mxu2 %v8210_v19  ;;  %v5897_v19 = vld [vmem:[%s11654_s3 + $0x80] sm:$0xf]  ;;  %v7530_v16 = vld [vmem:[%s11654_s3 + $0x20c] sm:$0xf0] }
 0x13a   :  { %3622 = vmatpush.bf16.msra.mxu2 %v6202_v47  ;;  %3597 = vmatpush.bf16.msra.mxu0 %v5930_v58  ;;  %v7506_v47 = vld [vmem:[%s11654_s3 + $0x14c] sm:$0xf0]  ;;  %v6249_v58 = vld [vmem:[%s11654_s3 + $0x340] sm:$0xf]  ;;  %v1785_v61 = vpop.f32.mrf.mxu0 }
 0x13b   :  { %2029 = vmatmul.bf16.vlgmr.msrb.gmra.mxu3 %v8214_v21  ;;  %v7482_v21 = vld [vmem:[%s11654_s3 + $0x8c] sm:$0xf0]  ;;  %v6250_v6 = vor.u32 %v7570_v60, %v6249_v58  ;;  %v5961_v12 = vld [vmem:[%s11654_s3 + $0x100] sm:$0xf] }
 0x13c   :  { %3635 = vmatpush.bf16.msra.mxu3 %v6330_v56  ;;  %3610 = vmatpush.bf16.msra.mxu1 %v6058_v62  ;;  %v5898_v18 = vor.u32 %v7482_v21, %v5897_v19  ;;  %v1809_v46 = vpop.f32.mrf.mxu2  ;;  %v5866_v56 = vor.u32 %v7474_v44, %v5865_v33  ;;  %v5994_v62 = vor.u32 %v7506_v47, %v5993_v45  ;;  %v1798_v2 = vpop.f32.mrf.mxu1  ;;  %v5833_v19 = vld [vmem:[%s11654_s3] sm:$0xf]  ;;  %v7622_v25 = vld [vmem:[%s11654_s3 + $0x4ec] sm:$0xf0] }
 0x13d   :  { %v6106_v21 = vor.u32 %v7534_v5, %v6105_v4  ;;  %v6089_v15 = vld [vmem:[%s11654_s3 + $0x200] sm:$0xf]  ;;  %v5834_v28 = vor.u32 %v7466_v11, %v5833_v19  ;;  %v7686_v29 = vld [vmem:[%s11654_s3 + $0x6ec] sm:$0xf0]  ;;  %v5962_v31 = vor.u32 %v7498_v13, %v5961_v12  ;;  %v9753_v47 = vpack.c.bf16 %v2034_v30, %v2034_v30 }
 0x13e   :  { %3623 = vmatpush.bf16.msra.mxu2 %v6186_v63  ;;  %3598 = vmatpush.bf16.msra.mxu0 %v5914_v23  ;;  %v1822_v50 = vpop.f32.mrf.mxu3  ;;  %v6122_v63 = vor.u32 %v7538_v49, %v6121_v48  ;;  %v1810_v23 = vadd.f32 %v1809_v46, %v1797_v54  ;;  %v6090_v32 = vor.u32 %v7530_v16, %v6089_v15  ;;  %v6217_v34 = vld [vmem:[%s11654_s3 + $0x300] sm:$0xf]  ;;  %v7562_v35 = vld [vmem:[%s11654_s3 + $0x30c] sm:$0xf0] }
 0x13f   :  { %v6441_v51 = vld [vmem:[%s11654_s3 + $0x4c0] sm:$0xf]  ;;  %v7618_v40 = vld [vmem:[%s11654_s3 + $0x4cc] sm:$0xf0]  ;;  %v6218_v44 = vor.u32 %v7562_v35, %v6217_v34  ;;  %v9755_v48 = vpack.c.bf16 %v2035_v36, %v2035_v36 }
 0x140   :  { %3636 = vmatpush.bf16.msra.mxu3 %v6314_v20  ;;  %3611 = vmatpush.bf16.msra.mxu1 %v6042_v8  ;;  %v1758_v20 = vadd.f32 %v9446_v53, %v1745_v52  ;;  %v6233_v8 = vld [vmem:[%s11654_s3 + $0x320] sm:$0xf]  ;;  %v5978_v53 = vor.u32 %v7502_v3, %v5977_v1  ;;  %v1823_v24 = vadd.f32 %v1822_v50, %v1810_v23  ;;  %v7650_v9 = vld [vmem:[%s11654_s3 + $0x5cc] sm:$0xf0] }
 0x141   :  { %v6697_v45 = vld [vmem:[%s11654_s3 + $0x6c0] sm:$0xf]  ;;  %v7682_v46 = vld [vmem:[%s11654_s3 + $0x6cc] sm:$0xf0]  ;;  %v6442_v49 = vor.u32 %v7618_v40, %v6441_v51 }
 0x142   :  { %3624 = vmatpush.bf16.msra.mxu2 %v6170_v10  ;;  %3599 = vmatpush.bf16.msra.mxu0 %v5898_v18  ;;  %v7566_v10 = vld [vmem:[%s11654_s3 + $0x32c] sm:$0xf0]  ;;  %v1771_v22 = vadd.f32 %v9457_v59, %v1758_v20  ;;  %v6713_v59 = vld [vmem:[%s11654_s3 + $0x6e0] sm:$0xf]  ;;  %v6698_v61 = vor.u32 %v7682_v46, %v6697_v45 }
 0x143   :  { %v6234_v57 = vor.u32 %v7566_v10, %v6233_v8  ;;  %v6714_v33 = vor.u32 %v7686_v29, %v6713_v59  ;;  %v6425_v52 = vld [vmem:[%s11654_s3 + $0x4a0] sm:$0xf]  ;;  %v7646_v60 = vld [vmem:[%s11654_s3 + $0x5ac] sm:$0xf0] }
 0x144   :  { %3637 = vmatpush.bf16.msra.mxu3 %v6298_v17  ;;  %3612 = vmatpush.bf16.msra.mxu1 %v6026_v26  ;;  %v1811_v14 = vpop.f32.mrf.mxu2  ;;  %v6457_v17 = vld [vmem:[%s11654_s3 + $0x4e0] sm:$0xf]  ;;  %v2036_v41 = vmax.f32 %v1771_v22, 0.0  ;;  %v7610_v2 = vld [vmem:[%s11654_s3 + $0x48c] sm:$0xf0] }
 0x145   :  { %v6585_v26 = vld [vmem:[%s11654_s3 + $0x5e0] sm:$0xf]  ;;  %v7642_v4 = vld [vmem:[%s11654_s3 + $0x58c] sm:$0xf0] }
 0x146   :  { %3625 = vmatpush.bf16.msra.mxu2 %v6154_v27  ;;  %3600 = vmatpush.bf16.msra.mxu0 %v5882_v38  ;;  %v1824_v18 = vpop.f32.mrf.mxu3  ;;  %v7654_v27 = vld [vmem:[%s11654_s3 + $0x5ec] sm:$0xf0]  ;;  %v9760_v54 = vpack.c.bf16 %v2036_v41, %v2036_v41  ;;  %v6553_v58 = vld [vmem:[%s11654_s3 + $0x5a0] sm:$0xf] }
 0x147   :  { %v6586_v38 = vor.u32 %v7654_v27, %v6585_v26  ;;  %v6554_v0 = vor.u32 %v7646_v60, %v6553_v58  ;;  %v6409_v1 = vld [vmem:[%s11654_s3 + $0x480] sm:$0xf]  ;;  %v7638_v12 = vld [vmem:[%s11654_s3 + $0x56c] sm:$0xf0] }
 0x148   :  { %3638 = vmatpush.bf16.msra.mxu3 %v6282_v37  ;;  %3613 = vmatpush.bf16.msra.mxu1 %v6010_v42  ;;  %v6458_v37 = vor.u32 %v7622_v25, %v6457_v17  ;;  %v2037_v42 = vmax.f32 %v1823_v24, 0.0  ;;  %v6537_v3 = vld [vmem:[%s11654_s3 + $0x580] sm:$0xf]  ;;  %v6410_v8 = vor.u32 %v7610_v2, %v6409_v1  ;;  %v7670_v17 = vld [vmem:[%s11654_s3 + $0x66c] sm:$0xf0] }
 0x149   :  { %v9798_v5 = vld [vmem:[%s11653_s2] sm:$0xff]  ;;  %v6538_v10 = vor.u32 %v7642_v4, %v6537_v3  ;;  %v7602_v26 = vld [vmem:[%s11654_s3 + $0x44c] sm:$0xf0] }
 0x14a   :  { %3626 = vmatpush.bf16.msra.mxu2 %v6138_v43  ;;  %3601 = vmatpush.bf16.msra.mxu0 %v5866_v56  ;;  %v6569_v43 = vld [vmem:[%s11654_s3 + $0x5c0] sm:$0xf]  ;;  %v7614_v56 = vld [vmem:[%s11654_s3 + $0x4ac] sm:$0xf0]  ;;  %v312_v20 = vperm.slane %v9798_v5, 4 }
 0x14b   :  { %v6570_v50 = vor.u32 %v7650_v9, %v6569_v43  ;;  %v6426_v39 = vor.u32 %v7614_v56, %v6425_v52  ;;  %v6393_v19 = vld [vmem:[%s11654_s3 + $0x460] sm:$0xf]  ;;  %v7630_v40 = vld [vmem:[%s11654_s3 + $0x52c] sm:$0xf0]  ;;  %v7492_v56 = vld [vmem:[%s11654_s3 + $0xe4] sm:$0xf] }
 0x14c   :  { %3639 = vmatpush.bf16.msra.mxu3 %v6266_v55  ;;  %3614 = vmatpush.bf16.msra.mxu1 %v5994_v62  ;;  %v9762_v55 = vpack.c.bf16 %v2037_v42, %v2037_v42  ;;  %v6681_v62 = vld [vmem:[%s11654_s3 + $0x6a0] sm:$0xf]  ;;  %v7662_v9 = vld [vmem:[%s11654_s3 + $0x62c] sm:$0xf0] }
 0x14d   :  { %v6521_v11 = vld [vmem:[%s11654_s3 + $0x560] sm:$0xf]  ;;  %v7626_v52 = vld [vmem:[%s11654_s3 + $0x50c] sm:$0xf0] }
 0x14e   :  { %3627 = vmatpush.bf16.msra.mxu2 %v6122_v63  ;;  %3602 = vmatpush.bf16.msra.mxu0 %v5850_v7  ;;  %v7678_v63 = vld [vmem:[%s11654_s3 + $0x6ac] sm:$0xf0]  ;;  %v6649_v16 = vld [vmem:[%s11654_s3 + $0x660] sm:$0xf]  ;;  %v6522_v24 = vor.u32 %v7638_v12, %v6521_v11  ;;  %v5931_v12 = vld [vmem:[%s11654_s3 + $0xd0] sm:$0xf0] }
 0x14f   :  { %v6682_v23 = vor.u32 %v7678_v63, %v6681_v62  ;;  %v7674_v7 = vld [vmem:[%s11654_s3 + $0x68c] sm:$0xf0]  ;;  %v6377_v25 = vld [vmem:[%s11654_s3 + $0x440] sm:$0xf]  ;;  %v6650_v59 = vor.u32 %v7670_v17, %v6649_v16  ;;  %v5947_v63 = vld [vmem:[%s11654_s3 + $0xf0] sm:$0xf0] }
 0x150   :  { %3640 = vmatpush.bf16.msra.mxu3 %v6250_v6  ;;  %3615 = vmatpush.bf16.msra.mxu1 %v5978_v53  ;;  %v6665_v6 = vld [vmem:[%s11654_s3 + $0x680] sm:$0xf]  ;;  %v6378_v34 = vor.u32 %v7602_v26, %v6377_v25  ;;  %v7718_v62 = vld [vmem:[%s11654_s3 + $0x7ec] sm:$0xf0] }
 0x151   :  { %v6666_v15 = vor.u32 %v7674_v7, %v6665_v6  ;;  %v6505_v27 = vld [vmem:[%s11654_s3 + $0x540] sm:$0xf]  ;;  %v7556_v7 = vld [vmem:[%s11654_s3 + $0x2e4] sm:$0xf]  ;;  %v7714_v11 = vld [vmem:[%s11654_s3 + $0x7cc] sm:$0xf0] }
 0x152   :  { %3628 = vmatpush.bf16.msra.mxu2 %v6106_v21  ;;  %3603 = vmatpush.bf16.msra.mxu0 %v5834_v28  ;;  %v1835_v53 = vpop.f32.mrf.mxu0  ;;  %v7606_v21 = vld [vmem:[%s11654_s3 + $0x46c] sm:$0xf0]  ;;  %v6633_v30 = vld [vmem:[%s11654_s3 + $0x640] sm:$0xf] }
 0x153   :  { %v1836_v13 = vadd.f32 %v1835_v53, %v312_v20  ;;  %v6394_v22 = vor.u32 %v7606_v21, %v6393_v19  ;;  %v6361_v36 = vld [vmem:[%s11654_s3 + $0x420] sm:$0xf]  ;;  %v7658_v20 = vld [vmem:[%s11654_s3 + $0x60c] sm:$0xf0]  ;;  %v7488_v53 = vld [vmem:[%s11654_s3 + $0xc4] sm:$0xf] }
 0x154   :  { %3641 = vmatpush.bf16.msra.mxu3 %v6234_v57  ;;  %3616 = vmatpush.bf16.msra.mxu1 %v5962_v31  ;;  %v1848_v14 = vpop.f32.mrf.mxu1  ;;  %v7634_v57 = vld [vmem:[%s11654_s3 + $0x54c] sm:$0xf0]  ;;  %v6489_v51 = vld [vmem:[%s11654_s3 + $0x520] sm:$0xf]  ;;  %v5934_v25 = vor.u32 %v7488_v53, %v5931_v12  ;;  %v7504_v53 = vld [vmem:[%s11654_s3 + $0x144] sm:$0xf] }
 0x155   :  { %3604 = vmatmul.bf16.vlgmr.msra.gmra.mxu0 %v9753_v47  ;;  %v1849_v18 = vadd.f32 %v1848_v14, %v1836_v13  ;;  %v7666_v31 = vld [vmem:[%s11654_s3 + $0x64c] sm:$0xf0]  ;;  %v6506_v35 = vor.u32 %v7634_v57, %v6505_v27  ;;  %v6617_v43 = vld [vmem:[%s11654_s3 + $0x620] sm:$0xf]  ;;  %v6490_v46 = vor.u32 %v7630_v40, %v6489_v51  ;;  %v7520_v13 = vld [vmem:[%s11654_s3 + $0x1c4] sm:$0xf] }
 0x156   :  { %3629 = vmatpush.bf16.msra.mxu2 %v6090_v32  ;;  %3648 = vmatpush.bf16.msrb.mxu0 %v6458_v37  ;;  %v6634_v42 = vor.u32 %v7666_v31, %v6633_v30  ;;  %v6618_v60 = vor.u32 %v7662_v9, %v6617_v43  ;;  %v6601_v4 = vld [vmem:[%s11654_s3 + $0x600] sm:$0xf]  ;;  %v6059_v14 = vld [vmem:[%s11654_s3 + $0x1d0] sm:$0xf0]  ;;  %v7484_v27 = vld [vmem:[%s11654_s3 + $0xa4] sm:$0xf] }
 0x157   :  { %3617 = vmatmul.bf16.vlgmr.msra.gmra.mxu1 %v9755_v48  ;;  %v6825_v21 = vld [vmem:[%s11654_s3 + $0x7c0] sm:$0xf]  ;;  %v6062_v26 = vor.u32 %v7520_v13, %v6059_v14  ;;  %v6043_v30 = vld [vmem:[%s11654_s3 + $0x1b0] sm:$0xf0]  ;;  %v7706_v40 = vld [vmem:[%s11654_s3 + $0x78c] sm:$0xf0] }
 0x158   :  { %3661 = vmatpush.bf16.msrb.mxu1 %v6586_v38  ;;  %3642 = vmatpush.bf16.msra.mxu3 %v6218_v44  ;;  %v7598_v38 = vld [vmem:[%s11654_s3 + $0x42c] sm:$0xf0]  ;;  %v6345_v44 = vld [vmem:[%s11654_s3 + $0x400] sm:$0xf]  ;;  %v6826_v16 = vor.u32 %v7714_v11, %v6825_v21  ;;  %v6027_v43 = vld [vmem:[%s11654_s3 + $0x190] sm:$0xf0] }
 0x159   :  { %3630 = vmatmul.bf16.vlgmr.msra.gmra.mxu2 %v9760_v54  ;;  %v6362_v45 = vor.u32 %v7598_v38, %v6361_v36  ;;  %v6809_v57 = vld [vmem:[%s11654_s3 + $0x7a0] sm:$0xf]  ;;  %v7480_v38 = vld [vmem:[%s11654_s3 + $0x84] sm:$0xf]  ;;  %v5995_v21 = vld [vmem:[%s11654_s3 + $0x150] sm:$0xf0] }
 0x15a   :  { %3674 = vmatpush.bf16.msrb.mxu2 %v6714_v33  ;;  %3649 = vmatpush.bf16.msrb.mxu0 %v6442_v49  ;;  %v1837_v37 = vpop.f32.mrf.mxu0  ;;  %v7594_v49 = vld [vmem:[%s11654_s3 + $0x40c] sm:$0xf0]  ;;  %v6793_v51 = vld [vmem:[%s11654_s3 + $0x780] sm:$0xf] }
 0x15b   :  { %3643 = vmatmul.bf16.vlgmr.msra.gmra.mxu3 %v9762_v55  ;;  %v6794_v9 = vor.u32 %v7706_v40, %v6793_v51  ;;  %v7532_v51 = vld [vmem:[%s11654_s3 + $0x224] sm:$0xf]  ;;  %v6107_v40 = vld [vmem:[%s11654_s3 + $0x230] sm:$0xf0] }
 0x15c   :  { %3662 = vmatpush.bf16.msrb.mxu1 %v6570_v50  ;;  %v1861_v28 = vpop.f32.mrf.mxu2  ;;  %v1850_v41 = vpop.f32.mrf.mxu1  ;;  %v6473_v50 = vld [vmem:[%s11654_s3 + $0x500] sm:$0xf] }
 0x15d   :  { %v1862_v32 = vadd.f32 %v1861_v28, %v1849_v18  ;;  %v6474_v6 = vor.u32 %v7626_v52, %v6473_v50  ;;  %v7710_v28 = vld [vmem:[%s11654_s3 + $0x7ac] sm:$0xf0]  ;;  %v5899_v41 = vld [vmem:[%s11654_s3 + $0x90] sm:$0xf0]  ;;  %v7476_v52 = vld [vmem:[%s11654_s3 + $0x64] sm:$0xf] }
 0x15e   :  { %3675 = vmatpush.bf16.msrb.mxu2 %v6698_v61  ;;  %3650 = vmatpush.bf16.msrb.mxu0 %v6426_v39  ;;  %v1874_v29 = vpop.f32.mrf.mxu3  ;;  %v6841_v61 = vld [vmem:[%s11654_s3 + $0x7e0] sm:$0xf]  ;;  %v7524_v39 = vld [vmem:[%s11654_s3 + $0x1e4] sm:$0xf]  ;;  %v6810_v31 = vor.u32 %v7710_v28, %v6809_v57  ;;  %v5851_v28 = vld [vmem:[%s11654_s3 + $0x30] sm:$0xf0] }
 0x15f   :  { %v1875_v33 = vadd.f32 %v1874_v29, %v1862_v32  ;;  %v6842_v2 = vor.u32 %v7718_v62, %v6841_v61  ;;  %v7516_v29 = vld [vmem:[%s11654_s3 + $0x1a4] sm:$0xf]  ;;  %v5883_v61 = vld [vmem:[%s11654_s3 + $0x70] sm:$0xf0] }
 0x160   :  { %3663 = vmatpush.bf16.msrb.mxu1 %v6554_v0  ;;  %v6075_v0 = vld [vmem:[%s11654_s3 + $0x1f0] sm:$0xf0]  ;;  %v6046_v37 = vor.u32 %v7516_v29, %v6043_v30  ;;  %v7508_v62 = vld [vmem:[%s11654_s3 + $0x164] sm:$0xf] }
 0x161   :  { %v2038_v3 = vmax.f32 %v1875_v33, 0.0  ;;  %v6078_v19 = vor.u32 %v7524_v39, %v6075_v0  ;;  %3687 = vmatpush.bf16.msrb.mxu3 %v6842_v2  ;;  %v313_v33 = vperm.slane %v9798_v5, 5  ;;  %v5979_v29 = vld [vmem:[%s11654_s3 + $0x130] sm:$0xf0] }
 0x162   :  { %3676 = vmatpush.bf16.msrb.mxu2 %v6682_v23  ;;  %3651 = vmatpush.bf16.msrb.mxu0 %v6410_v8  ;;  %v6346_v23 = vor.u32 %v7594_v49, %v6345_v44  ;;  %v6203_v8 = vld [vmem:[%s11654_s3 + $0x2f0] sm:$0xf0]  ;;  %v5902_v49 = vor.u32 %v7480_v38, %v5899_v41  ;;  %v7496_v38 = vld [vmem:[%s11654_s3 + $0x104] sm:$0xf] }
 0x163   :  { %v9921_v17 = vpack.c.bf16 %v2038_v3, %v2038_v3  ;;  %v6206_v18 = vor.u32 %v7556_v7, %v6203_v8  ;;  %v7540_v3 = vld [vmem:[%s11654_s3 + $0x264] sm:$0xf]  ;;  %v6761_v8 = vld [vmem:[%s11654_s3 + $0x740] sm:$0xf] }
 0x164   :  { %3664 = vmatpush.bf16.msrb.mxu1 %v6538_v10  ;;  %v1863_v58 = vpop.f32.mrf.mxu2  ;;  %v5950_v10 = vor.u32 %v7492_v56, %v5947_v63  ;;  %v6777_v56 = vld [vmem:[%s11654_s3 + $0x760] sm:$0xf]  ;;  %v6011_v63 = vld [vmem:[%s11654_s3 + $0x170] sm:$0xf0]  ;;  %v7472_v7 = vld [vmem:[%s11654_s3 + $0x44] sm:$0xf] }
 0x165   :  { %3688 = vmatpush.bf16.msrb.mxu3 %v6826_v16  ;;  %v7702_v58 = vld [vmem:[%s11654_s3 + $0x76c] sm:$0xf0]  ;;  %v7536_v16 = vld [vmem:[%s11654_s3 + $0x244] sm:$0xf] }
 0x166   :  { %3677 = vmatpush.bf16.msrb.mxu2 %v6666_v15  ;;  %3652 = vmatpush.bf16.msrb.mxu0 %v6394_v22  ;;  %v1876_v1 = vpop.f32.mrf.mxu3  ;;  %v6602_v15 = vor.u32 %v7658_v20, %v6601_v4  ;;  %v7552_v22 = vld [vmem:[%s11654_s3 + $0x2c4] sm:$0xf]  ;;  %v6778_v39 = vor.u32 %v7702_v58, %v6777_v56  ;;  %v6139_v4 = vld [vmem:[%s11654_s3 + $0x270] sm:$0xf0]  ;;  %v6110_v56 = vor.u32 %v7532_v51, %v6107_v40 }
 0x167   :  { %v6142_v13 = vor.u32 %v7540_v3, %v6139_v4  ;;  %v7636_v51 = vld [vmem:[%s11654_s3 + $0x564] sm:$0xf]  ;;  %v6523_v40 = vld [vmem:[%s11654_s3 + $0x570] sm:$0xf0] }
 0x168   :  { %3665 = vmatpush.bf16.msrb.mxu1 %v6522_v24  ;;  %v6187_v24 = vld [vmem:[%s11654_s3 + $0x2d0] sm:$0xf0] }
 0x169   :  { %v6190_v32 = vor.u32 %v7552_v22, %v6187_v24  ;;  %3689 = vmatpush.bf16.msrb.mxu3 %v6810_v31  ;;  %v5998_v24 = vor.u32 %v7504_v53, %v5995_v21 }
 0x16a   :  { %3678 = vmatpush.bf16.msrb.mxu2 %v6650_v59  ;;  %3653 = vmatpush.bf16.msrb.mxu0 %v6378_v34  ;;  %v5915_v59 = vld [vmem:[%s11654_s3 + $0xb0] sm:$0xf0]  ;;  %v7548_v34 = vld [vmem:[%s11654_s3 + $0x2a4] sm:$0xf] }
 0x16b   :  { %v5918_v36 = vor.u32 %v7484_v27, %v5915_v59  ;;  %v7694_v27 = vld [vmem:[%s11654_s3 + $0x72c] sm:$0xf0]  ;;  %v7500_v59 = vld [vmem:[%s11654_s3 + $0x124] sm:$0xf] }
 0x16c   :  { %3666 = vmatpush.bf16.msrb.mxu1 %v6506_v35  ;;  %v6171_v35 = vld [vmem:[%s11654_s3 + $0x2b0] sm:$0xf0] }
 0x16d   :  { %v6174_v44 = vor.u32 %v7548_v34, %v6171_v35  ;;  %3690 = vmatpush.bf16.msrb.mxu3 %v6794_v9  ;;  %v7620_v9 = vld [vmem:[%s11654_s3 + $0x4e4] sm:$0xf] }
 0x16e   :  { %3679 = vmatpush.bf16.msrb.mxu2 %v6634_v42  ;;  %3654 = vmatpush.bf16.msrb.mxu0 %v6362_v45  ;;  %v7512_v42 = vld [vmem:[%s11654_s3 + $0x184] sm:$0xf] }
 0x16f   :  { %v7544_v45 = vld [vmem:[%s11654_s3 + $0x284] sm:$0xf]  ;;  %v6030_v50 = vor.u32 %v7512_v42, %v6027_v43  ;;  %v5982_v42 = vor.u32 %v7500_v59, %v5979_v29  ;;  %v5963_v43 = vld [vmem:[%s11654_s3 + $0x110] sm:$0xf0] }
 0x170   :  { %3667 = vmatpush.bf16.msrb.mxu1 %v6490_v46  ;;  %v6155_v46 = vld [vmem:[%s11654_s3 + $0x290] sm:$0xf0]  ;;  %v7640_v59 = vld [vmem:[%s11654_s3 + $0x584] sm:$0xf] }
 0x171   :  { %v6158_v2 = vor.u32 %v7544_v45, %v6155_v46  ;;  %3691 = vmatpush.bf16.msrb.mxu3 %v6778_v39  ;;  %v6459_v45 = vld [vmem:[%s11654_s3 + $0x4f0] sm:$0xf0]  ;;  %v7652_v46 = vld [vmem:[%s11654_s3 + $0x5e4] sm:$0xf] }
 0x172   :  { %3680 = vmatpush.bf16.msrb.mxu2 %v6618_v60  ;;  %3655 = vmatpush.bf16.msrb.mxu0 %v6346_v23  ;;  %v1887_v60 = vpop.f32.mrf.mxu0  ;;  %v5886_v23 = vor.u32 %v7476_v52, %v5883_v61  ;;  %v6331_v61 = vld [vmem:[%s11654_s3 + $0x3f0] sm:$0xf0]  ;;  %v6462_v3 = vor.u32 %v7620_v9, %v6459_v45  ;;  %v6526_v45 = vor.u32 %v7636_v51, %v6523_v40  ;;  %v5937_v51 = vld [vmem:[%s11654_s3 + $0xc8] sm:$0xf] }
 0x173   :  { %v1888_v0 = vadd.f32 %v1887_v60, %v313_v33  ;;  %v6729_v33 = vld [vmem:[%s11654_s3 + $0x700] sm:$0xf]  ;;  %v7588_v60 = vld [vmem:[%s11654_s3 + $0x3e4] sm:$0xf]  ;;  %v6091_v39 = vld [vmem:[%s11654_s3 + $0x210] sm:$0xf0] }
 0x174   :  { %3668 = vmatpush.bf16.msrb.mxu1 %v6474_v6  ;;  %v1900_v1 = vpop.f32.mrf.mxu1  ;;  %v6014_v6 = vor.u32 %v7508_v62, %v6011_v63  ;;  %v7528_v63 = vld [vmem:[%s11654_s3 + $0x204] sm:$0xf]  ;;  %v6539_v29 = vld [vmem:[%s11654_s3 + $0x590] sm:$0xf0] }
 0x175   :  { %3656 = vmatmul.bf16.vlgmr.msrb.gmra.mxu0 %v9921_v17  ;;  %v1901_v20 = vadd.f32 %v1900_v1, %v1888_v0  ;;  %v6334_v0 = vor.u32 %v7588_v60, %v6331_v61  ;;  %v6507_v60 = vld [vmem:[%s11654_s3 + $0x550] sm:$0xf0] }
 0x176   :  { %3700 = vmatpush.bf16.msra.mxu0 %v5950_v10  ;;  %3681 = vmatpush.bf16.msrb.mxu2 %v6602_v15  ;;  %v7698_v10 = vld [vmem:[%s11654_s3 + $0x74c] sm:$0xf0] }
 0x177   :  { %v6762_v11 = vor.u32 %v7698_v10, %v6761_v8  ;;  %v6094_v8 = vor.u32 %v7528_v63, %v6091_v39  ;;  %v7584_v10 = vld [vmem:[%s11654_s3 + $0x3c4] sm:$0xf] }
 0x178   :  { %3713 = vmatpush.bf16.msra.mxu1 %v6078_v19  ;;  %v5867_v19 = vld [vmem:[%s11654_s3 + $0x50] sm:$0xf0] }
 0x179   :  { %v5870_v22 = vor.u32 %v7472_v7, %v5867_v19  ;;  %3692 = vmatpush.bf16.msrb.mxu3 %v6762_v11  ;;  %v6571_v7 = vld [vmem:[%s11654_s3 + $0x5d0] sm:$0xf0] }
 0x17a   :  { %3726 = vmatpush.bf16.msra.mxu2 %v6206_v18  ;;  %3701 = vmatpush.bf16.msra.mxu0 %v5934_v25  ;;  %v6123_v18 = vld [vmem:[%s11654_s3 + $0x250] sm:$0xf0]  ;;  %v7468_v25 = vld [vmem:[%s11654_s3 + $0x24] sm:$0xf]  ;;  %v1889_v30 = vpop.f32.mrf.mxu0 }
 0x17b   :  { %v6126_v34 = vor.u32 %v7536_v16, %v6123_v18  ;;  %v5854_v41 = vor.u32 %v7468_v25, %v5851_v28  ;;  %v6315_v19 = vld [vmem:[%s11654_s3 + $0x3d0] sm:$0xf0]  ;;  %v7644_v16 = vld [vmem:[%s11654_s3 + $0x5a4] sm:$0xf] }
 0x17c   :  { %3714 = vmatpush.bf16.msra.mxu1 %v6062_v26  ;;  %v1913_v12 = vpop.f32.mrf.mxu2  ;;  %v6745_v26 = vld [vmem:[%s11654_s3 + $0x720] sm:$0xf]  ;;  %v6318_v53 = vor.u32 %v7584_v10, %v6315_v19  ;;  %v6555_v18 = vld [vmem:[%s11654_s3 + $0x5b0] sm:$0xf0]  ;;  %v7684_v19 = vld [vmem:[%s11654_s3 + $0x6e4] sm:$0xf] }
 0x17d   :  { %v1914_v14 = vadd.f32 %v1913_v12, %v1901_v20  ;;  %v6746_v31 = vor.u32 %v7694_v27, %v6745_v26  ;;  %v7616_v20 = vld [vmem:[%s11654_s3 + $0x4c4] sm:$0xf]  ;;  %v6558_v25 = vor.u32 %v7644_v16, %v6555_v18  ;;  %v6411_v28 = vld [vmem:[%s11654_s3 + $0x490] sm:$0xf0] }
 0x17e   :  { %3727 = vmatpush.bf16.msra.mxu2 %v6190_v32  ;;  %3702 = vmatpush.bf16.msra.mxu0 %v5918_v36  ;;  %v1926_v15 = vpop.f32.mrf.mxu3  ;;  %v1902_v32 = vpop.f32.mrf.mxu1  ;;  %v7464_v36 = vld [vmem:[%s11654_s3 + $0x4] sm:$0xf] }
 0x17f   :  { %v1927_v57 = vadd.f32 %v1926_v15, %v1914_v14  ;;  %3693 = vmatpush.bf16.msrb.mxu3 %v6746_v31  ;;  %v7612_v12 = vld [vmem:[%s11654_s3 + $0x4a4] sm:$0xf]  ;;  %v6299_v14 = vld [vmem:[%s11654_s3 + $0x3b0] sm:$0xf0]  ;;  %v314_v31 = vperm.slane %v9798_v5, 6 }
 0x180   :  { %3715 = vmatpush.bf16.msra.mxu1 %v6046_v37  ;;  %v5835_v37 = vld [vmem:[%s11654_s3 + $0x10] sm:$0xf0]  ;;  %v7608_v26 = vld [vmem:[%s11654_s3 + $0x484] sm:$0xf] }
 0x181   :  { %v2039_v35 = vmax.f32 %v1927_v57, 0.0  ;;  %v5838_v1 = vor.u32 %v7464_v36, %v5835_v37  ;;  %v6427_v15 = vld [vmem:[%s11654_s3 + $0x4b0] sm:$0xf0]  ;;  %v7576_v27 = vld [vmem:[%s11654_s3 + $0x384] sm:$0xf]  ;;  %v6414_v32 = vor.u32 %v7608_v26, %v6411_v28 }
 0x182   :  { %3728 = vmatpush.bf16.msra.mxu2 %v6174_v44  ;;  %3703 = vmatpush.bf16.msra.mxu0 %v5902_v49  ;;  %v7690_v49 = vld [vmem:[%s11654_s3 + $0x70c] sm:$0xf0]  ;;  %v6283_v57 = vld [vmem:[%s11654_s3 + $0x390] sm:$0xf0]  ;;  %v7572_v36 = vld [vmem:[%s11654_s3 + $0x364] sm:$0xf] }
 0x183   :  { %v10069_v44 = vpack.c.bf16 %v2039_v35, %v2039_v35  ;;  %v6730_v58 = vor.u32 %v7690_v49, %v6729_v33  ;;  %v6286_v30 = vor.u32 %v7576_v27, %v6283_v57  ;;  %v7604_v35 = vld [vmem:[%s11654_s3 + $0x464] sm:$0xf]  ;;  %v6267_v37 = vld [vmem:[%s11654_s3 + $0x370] sm:$0xf0]  ;;  %v7495_v57 = vld [vmem:[%s11654_s3 + $0xf4] sm:$0xf0] }
 0x184   :  { %3716 = vmatpush.bf16.msra.mxu1 %v6030_v50  ;;  %v6587_v50 = vld [vmem:[%s11654_s3 + $0x5f0] sm:$0xf0]  ;;  %v1915_v52 = vpop.f32.mrf.mxu2  ;;  %v7568_v49 = vld [vmem:[%s11654_s3 + $0x344] sm:$0xf]  ;;  %v6081_v28 = vld [vmem:[%s11654_s3 + $0x1e8] sm:$0xf] }
 0x185   :  { %3669 = vmatmul.bf16.vlgmr.msrb.gmra.mxu1 %v10069_v44  ;;  %v6590_v4 = vor.u32 %v7652_v46, %v6587_v50  ;;  %3694 = vmatpush.bf16.msrb.mxu3 %v6730_v58  ;;  %v7600_v46 = vld [vmem:[%s11654_s3 + $0x444] sm:$0xf]  ;;  %v6251_v50 = vld [vmem:[%s11654_s3 + $0x350] sm:$0xf0] }
 0x186   :  { %3729 = vmatpush.bf16.msra.mxu2 %v6158_v2  ;;  %3704 = vmatpush.bf16.msra.mxu0 %v5886_v23  ;;  %v1928_v62 = vpop.f32.mrf.mxu3  ;;  %v5966_v2 = vor.u32 %v7496_v38, %v5963_v43  ;;  %v6443_v23 = vld [vmem:[%s11654_s3 + $0x4d0] sm:$0xf0]  ;;  %v7632_v58 = vld [vmem:[%s11654_s3 + $0x544] sm:$0xf]  ;;  %v6254_v61 = vor.u32 %v7568_v49, %v6251_v50  ;;  %v5921_v49 = vld [vmem:[%s11654_s3 + $0xa8] sm:$0xf] }
 0x187   :  { %v6446_v21 = vor.u32 %v7616_v20, %v6443_v23  ;;  %v6395_v38 = vld [vmem:[%s11654_s3 + $0x470] sm:$0xf0]  ;;  %v7628_v23 = vld [vmem:[%s11654_s3 + $0x524] sm:$0xf] }
 0x188   :  { %3717 = vmatpush.bf16.msra.mxu1 %v6014_v6  ;;  %v7648_v6 = vld [vmem:[%s11654_s3 + $0x5c4] sm:$0xf]  ;;  %v6398_v33 = vor.u32 %v7604_v35, %v6395_v38  ;;  %v6363_v20 = vld [vmem:[%s11654_s3 + $0x430] sm:$0xf0] }
 0x189   :  { %3739 = vmatpush.bf16.msra.mxu3 %v6334_v0  ;;  %v6574_v11 = vor.u32 %v7648_v6, %v6571_v7  ;;  %v6491_v6 = vld [vmem:[%s11654_s3 + $0x530] sm:$0xf0]  ;;  %v7624_v16 = vld [vmem:[%s11654_s3 + $0x504] sm:$0xf] }
 0x18a   :  { %3730 = vmatpush.bf16.msra.mxu2 %v6142_v13  ;;  %3705 = vmatpush.bf16.msra.mxu0 %v5870_v22  ;;  %v7580_v13 = vld [vmem:[%s11654_s3 + $0x3a4] sm:$0xf] }
 0x18b   :  { %v6302_v22 = vor.u32 %v7580_v13, %v6299_v14  ;;  %v7560_v18 = vld [vmem:[%s11654_s3 + $0x304] sm:$0xf] }
 0x18c   :  { %3718 = vmatpush.bf16.msra.mxu1 %v5998_v24  ;;  %v6430_v24 = vor.u32 %v7612_v12, %v6427_v15  ;;  %v6347_v12 = vld [vmem:[%s11654_s3 + $0x410] sm:$0xf0]  ;;  %v6494_v15 = vor.u32 %v7628_v23, %v6491_v6 }
 0x18d   :  { %3740 = vmatpush.bf16.msra.mxu3 %v6318_v53  ;;  %v6715_v53 = vld [vmem:[%s11654_s3 + $0x6f0] sm:$0xf0] }
 0x18e   :  { %3731 = vmatpush.bf16.msra.mxu2 %v6126_v34  ;;  %3706 = vmatpush.bf16.msra.mxu0 %v5854_v41  ;;  %v6542_v34 = vor.u32 %v7640_v59, %v6539_v29  ;;  %v6270_v41 = vor.u32 %v7572_v36, %v6267_v37  ;;  %v6718_v27 = vor.u32 %v7684_v19, %v6715_v53  ;;  %v7527_v59 = vld [vmem:[%s11654_s3 + $0x1f4] sm:$0xf0]  ;;  %v6651_v23 = vld [vmem:[%s11654_s3 + $0x670] sm:$0xf0] }
 0x18f   :  { %v6082_v38 = vor.u32 %v7527_v59, %v6081_v28  ;;  %v7511_v19 = vld [vmem:[%s11654_s3 + $0x174] sm:$0xf0]  ;;  %v7660_v28 = vld [vmem:[%s11654_s3 + $0x624] sm:$0xf]  ;;  %v6619_v59 = vld [vmem:[%s11654_s3 + $0x630] sm:$0xf0] }
 0x190   :  { %3719 = vmatpush.bf16.msra.mxu1 %v5982_v42 }
 0x191   :  { %3741 = vmatpush.bf16.msra.mxu3 %v6302_v22  ;;  %v6475_v22 = vld [vmem:[%s11654_s3 + $0x510] sm:$0xf0] }
 0x192   :  { %3732 = vmatpush.bf16.msra.mxu2 %v6110_v56  ;;  %3707 = vmatpush.bf16.msra.mxu0 %v5838_v1  ;;  %v1939_v42 = vpop.f32.mrf.mxu0  ;;  %v6379_v56 = vld [vmem:[%s11654_s3 + $0x450] sm:$0xf0]  ;;  %v6510_v1 = vor.u32 %v7632_v58, %v6507_v60  ;;  %v6478_v35 = vor.u32 %v7624_v16, %v6475_v22  ;;  %v7519_v58 = vld [vmem:[%s11654_s3 + $0x1b4] sm:$0xf0]  ;;  %v7672_v60 = vld [vmem:[%s11654_s3 + $0x684] sm:$0xf] }
 0x193   :  { %v1940_v43 = vadd.f32 %v1939_v42, %v314_v31  ;;  %v6382_v0 = vor.u32 %v7600_v46, %v6379_v56  ;;  %v7680_v31 = vld [vmem:[%s11654_s3 + $0x6c4] sm:$0xf]  ;;  %v6065_v42 = vld [vmem:[%s11654_s3 + $0x1c8] sm:$0xf]  ;;  %v7475_v22 = vld [vmem:[%s11654_s3 + $0x54] sm:$0xf0] }
 0x194   :  { %3720 = vmatpush.bf16.msra.mxu1 %v5966_v2  ;;  %v1952_v9 = vpop.f32.mrf.mxu1  ;;  %v7596_v2 = vld [vmem:[%s11654_s3 + $0x424] sm:$0xf]  ;;  %v6049_v56 = vld [vmem:[%s11654_s3 + $0x1a8] sm:$0xf] }
 0x195   :  { %3708 = vmatmul.bf16.vlgmr.msra.gmra.mxu0 %v9753_v47  ;;  %3742 = vmatpush.bf16.msra.mxu3 %v6286_v30  ;;  %v1953_v52 = vadd.f32 %v1952_v9, %v1940_v43  ;;  %v6366_v14 = vor.u32 %v7596_v2, %v6363_v20  ;;  %v7523_v43 = vld [vmem:[%s11654_s3 + $0x1d4] sm:$0xf0]  ;;  %v7676_v9 = vld [vmem:[%s11654_s3 + $0x6a4] sm:$0xf]  ;;  %v6033_v2 = vld [vmem:[%s11654_s3 + $0x188] sm:$0xf] }
 0x196   :  { %3752 = vmatpush.bf16.msrb.mxu0 %v6462_v3  ;;  %3733 = vmatpush.bf16.msra.mxu2 %v6094_v8  ;;  %v7564_v3 = vld [vmem:[%s11654_s3 + $0x324] sm:$0xf]  ;;  %v6066_v46 = vor.u32 %v7523_v43, %v6065_v42  ;;  %v6603_v43 = vld [vmem:[%s11654_s3 + $0x610] sm:$0xf0] }
 0x197   :  { %3721 = vmatmul.bf16.vlgmr.msra.gmra.mxu1 %v9755_v48  ;;  %v7668_v20 = vld [vmem:[%s11654_s3 + $0x664] sm:$0xf] }
 0x198   :  { %3765 = vmatpush.bf16.msrb.mxu1 %v6590_v4  ;;  %v6235_v4 = vld [vmem:[%s11654_s3 + $0x330] sm:$0xf0]  ;;  %v7656_v42 = vld [vmem:[%s11654_s3 + $0x604] sm:$0xf] }
 0x199   :  { %3743 = vmatpush.bf16.msra.mxu3 %v6270_v41  ;;  %v6238_v7 = vor.u32 %v7564_v3, %v6235_v4  ;;  %v7491_v41 = vld [vmem:[%s11654_s3 + $0xd4] sm:$0xf0]  ;;  %v315_v4 = vperm.slane %v9798_v5, 7 }
 0x19a   :  { %3753 = vmatpush.bf16.msrb.mxu0 %v6446_v21  ;;  %v1941_v10 = vpop.f32.mrf.mxu0  ;;  %v7515_v3 = vld [vmem:[%s11654_s3 + $0x194] sm:$0xf0] }
 0x19b   :  { %v7479_v5 = vld [vmem:[%s11654_s3 + $0x74] sm:$0xf0]  ;;  %v6017_v10 = vld [vmem:[%s11654_s3 + $0x168] sm:$0xf] }
 0x19c   :  { %3766 = vmatpush.bf16.msrb.mxu1 %v6574_v11  ;;  %v1965_v62 = vpop.f32.mrf.mxu2  ;;  %v1954_v21 = vpop.f32.mrf.mxu1  ;;  %v7592_v11 = vld [vmem:[%s11654_s3 + $0x404] sm:$0xf]  ;;  %v6018_v16 = vor.u32 %v7511_v19, %v6017_v10  ;;  %v7555_v10 = vld [vmem:[%s11654_s3 + $0x2d4] sm:$0xf0] }
 0x19d   :  { %v1966_v63 = vadd.f32 %v1965_v62, %v1953_v52  ;;  %3744 = vmatpush.bf16.msra.mxu3 %v6254_v61  ;;  %v7487_v52 = vld [vmem:[%s11654_s3 + $0xb4] sm:$0xf0]  ;;  %v6667_v61 = vld [vmem:[%s11654_s3 + $0x690] sm:$0xf0] }
 0x19e   :  { %3754 = vmatpush.bf16.msrb.mxu0 %v6430_v24  ;;  %v1978_v39 = vpop.f32.mrf.mxu3  ;;  %v5953_v24 = vld [vmem:[%s11654_s3 + $0xe8] sm:$0xf]  ;;  %v5922_v62 = vor.u32 %v7487_v52, %v5921_v49  ;;  %v7559_v52 = vld [vmem:[%s11654_s3 + $0x2f4] sm:$0xf0] }
 0x19f   :  { %v1979_v8 = vadd.f32 %v1978_v39, %v1966_v63  ;;  %v5954_v37 = vor.u32 %v7495_v57, %v5953_v24  ;;  %v6050_v63 = vor.u32 %v7519_v58, %v6049_v56  ;;  %v5905_v39 = vld [vmem:[%s11654_s3 + $0x88] sm:$0xf]  ;;  %v7467_v58 = vld [vmem:[%s11654_s3 + $0x14] sm:$0xf0] }
 0x1a0   :  { %3767 = vmatpush.bf16.msrb.mxu1 %v6558_v25  ;;  %v6219_v25 = vld [vmem:[%s11654_s3 + $0x310] sm:$0xf0]  ;;  %v6001_v24 = vld [vmem:[%s11654_s3 + $0x148] sm:$0xf] }
 0x1a1   :  { %v2040_v13 = vmax.f32 %v1979_v8, 0.0  ;;  %3745 = vmatpush.bf16.msra.mxu3 %v6238_v7  ;;  %v6222_v29 = vor.u32 %v7560_v18, %v6219_v25  ;;  %v6034_v7 = vor.u32 %v7515_v3, %v6033_v2  ;;  %v5889_v8 = vld [vmem:[%s11654_s3 + $0x68] sm:$0xf]  ;;  %v7507_v25 = vld [vmem:[%s11654_s3 + $0x154] sm:$0xf0] }
 0x1a2   :  { %3755 = vmatpush.bf16.msrb.mxu0 %v6414_v32  ;;  %v6699_v32 = vld [vmem:[%s11654_s3 + $0x6d0] sm:$0xf0]  ;;  %v5873_v18 = vld [vmem:[%s11654_s3 + $0x48] sm:$0xf] }
 0x1a3   :  { %v10234_v26 = vpack.c.bf16 %v2040_v13, %v2040_v13  ;;  %v6702_v40 = vor.u32 %v7680_v31, %v6699_v32  ;;  %v7664_v13 = vld [vmem:[%s11654_s3 + $0x644] sm:$0xf]  ;;  %v5857_v31 = vld [vmem:[%s11654_s3 + $0x28] sm:$0xf] }
 0x1a4   :  { %3768 = vmatpush.bf16.msrb.mxu1 %v6542_v34  ;;  %v1967_v30 = vpop.f32.mrf.mxu2  ;;  %v6350_v34 = vor.u32 %v7592_v11, %v6347_v12  ;;  %v6654_v11 = vor.u32 %v7668_v20, %v6651_v23  ;;  %v5841_v56 = vld [vmem:[%s11654_s3 + $0x8] sm:$0xf]  ;;  %v7712_v20 = vld [vmem:[%s11654_s3 + $0x7c4] sm:$0xf] }
 0x1a5   :  { %3682 = vmatmul.bf16.vlgmr.msrb.gmra.mxu2 %v10234_v26  ;;  %3746 = vmatpush.bf16.msra.mxu3 %v6222_v29  ;;  %v5874_v29 = vor.u32 %v7475_v22, %v5873_v18  ;;  %v6002_v30 = vor.u32 %v7507_v25, %v6001_v24  ;;  %v6593_v3 = vld [vmem:[%s11654_s3 + $0x5e8] sm:$0xf]  ;;  %v7651_v18 = vld [vmem:[%s11654_s3 + $0x5d4] sm:$0xf0]  ;;  %v7708_v22 = vld [vmem:[%s11654_s3 + $0x7a4] sm:$0xf] }
 0x1a6   :  { %3756 = vmatpush.bf16.msrb.mxu0 %v6398_v33  ;;  %v1980_v36 = vpop.f32.mrf.mxu3  ;;  %3778 = vmatpush.bf16.msrb.mxu2 %v6718_v27  ;;  %v6683_v33 = vld [vmem:[%s11654_s3 + $0x6b0] sm:$0xf0]  ;;  %v6177_v25 = vld [vmem:[%s11654_s3 + $0x2a8] sm:$0xf] }
 0x1a7   :  { %v6686_v50 = vor.u32 %v7676_v9, %v6683_v33  ;;  %v5985_v36 = vld [vmem:[%s11654_s3 + $0x128] sm:$0xf]  ;;  %v7716_v9 = vld [vmem:[%s11654_s3 + $0x7e4] sm:$0xf]  ;;  %v6843_v33 = vld [vmem:[%s11654_s3 + $0x7f0] sm:$0xf0] }
 0x1a8   :  { %3769 = vmatpush.bf16.msrb.mxu1 %v6526_v45  ;;  %v5938_v45 = vor.u32 %v7491_v41, %v5937_v51  ;;  %v6622_v41 = vor.u32 %v7660_v28, %v6619_v59  ;;  %v6811_v24 = vld [vmem:[%s11654_s3 + $0x7b0] sm:$0xf0]  ;;  %v6433_v59 = vld [vmem:[%s11654_s3 + $0x4a8] sm:$0xf] }
 0x1aa   :  { %3757 = vmatpush.bf16.msrb.mxu0 %v6382_v0  ;;  %3779 = vmatpush.bf16.msrb.mxu2 %v6702_v40  ;;  %v6670_v0 = vor.u32 %v7672_v60, %v6667_v61  ;;  %v5969_v60 = vld [vmem:[%s11654_s3 + $0x108] sm:$0xf]  ;;  %v7499_v61 = vld [vmem:[%s11654_s3 + $0x114] sm:$0xf0] }
 0x1ac   :  { %3770 = vmatpush.bf16.msrb.mxu1 %v6510_v1  ;;  %v7483_v1 = vld [vmem:[%s11654_s3 + $0x94] sm:$0xf0] }
 0x1ad   :  { %v5906_v6 = vor.u32 %v7483_v1, %v5905_v39  ;;  %v6465_v39 = vld [vmem:[%s11654_s3 + $0x4e8] sm:$0xf]  ;;  %v6846_v1 = vor.u32 %v7716_v9, %v6843_v33  ;;  %v7611_v9 = vld [vmem:[%s11654_s3 + $0x494] sm:$0xf0] }
 0x1ae   :  { %3758 = vmatpush.bf16.msrb.mxu0 %v6366_v14  ;;  %3780 = vmatpush.bf16.msrb.mxu2 %v6686_v50  ;;  %v6635_v14 = vld [vmem:[%s11654_s3 + $0x650] sm:$0xf0]  ;;  %v6209_v50 = vld [vmem:[%s11654_s3 + $0x2e8] sm:$0xf] }
 0x1af   :  { %v6638_v57 = vor.u32 %v7664_v13, %v6635_v14  ;;  %v6210_v2 = vor.u32 %v7559_v52, %v6209_v50  ;;  %v7619_v13 = vld [vmem:[%s11654_s3 + $0x4d4] sm:$0xf0]  ;;  %v7700_v50 = vld [vmem:[%s11654_s3 + $0x764] sm:$0xf]  ;;  %v6779_v52 = vld [vmem:[%s11654_s3 + $0x770] sm:$0xf0] }
 0x1b0   :  { %3771 = vmatpush.bf16.msrb.mxu1 %v6494_v15  ;;  %v5890_v15 = vor.u32 %v7479_v5, %v5889_v8  ;;  %v6827_v8 = vld [vmem:[%s11654_s3 + $0x7d0] sm:$0xf0]  ;;  %v6193_v5 = vld [vmem:[%s11654_s3 + $0x2c8] sm:$0xf] }
 0x1b1   :  { %v6830_v14 = vor.u32 %v7712_v20, %v6827_v8  ;;  %v6129_v8 = vld [vmem:[%s11654_s3 + $0x248] sm:$0xf] }
 0x1b2   :  { %3759 = vmatpush.bf16.msrb.mxu0 %v6350_v34  ;;  %3781 = vmatpush.bf16.msrb.mxu2 %v6670_v0  ;;  %v1991_v53 = vpop.f32.mrf.mxu0  ;;  %v7623_v0 = vld [vmem:[%s11654_s3 + $0x4f4] sm:$0xf0] }
 0x1b3   :  { %v1992_v12 = vadd.f32 %v1991_v53, %v315_v4  ;;  %v7655_v4 = vld [vmem:[%s11654_s3 + $0x5f4] sm:$0xf0] }
 0x1b4   :  { %3772 = vmatpush.bf16.msrb.mxu1 %v6478_v35  ;;  %v2004_v21 = vpop.f32.mrf.mxu1  ;;  %v7471_v35 = vld [vmem:[%s11654_s3 + $0x34] sm:$0xf0] }
 0x1b5   :  { %3760 = vmatmul.bf16.vlgmr.msrb.gmra.mxu0 %v9921_v17  ;;  %3734 = vmatmul.bf16.vlgmr.msra.gmra.mxu2 %v9760_v54  ;;  %v2005_v27 = vadd.f32 %v2004_v21, %v1992_v12  ;;  %v6466_v21 = vor.u32 %v7623_v0, %v6465_v39  ;;  %v6449_v12 = vld [vmem:[%s11654_s3 + $0x4c8] sm:$0xf]  ;;  %v6782_v0 = vor.u32 %v7700_v50, %v6779_v52 }
 0x1b6   :  { %3804 = vmatpush.bf16.msra.mxu0 %v5954_v37  ;;  %3782 = vmatpush.bf16.msrb.mxu2 %v6654_v11  ;;  %v7503_v37 = vld [vmem:[%s11654_s3 + $0x134] sm:$0xf0]  ;;  %v6594_v11 = vor.u32 %v7655_v4, %v6593_v3  ;;  %v7696_v4 = vld [vmem:[%s11654_s3 + $0x744] sm:$0xf]  ;;  %v6353_v52 = vld [vmem:[%s11654_s3 + $0x408] sm:$0xf] }
 0x1b7   :  { %3773 = vmatmul.bf16.vlgmr.msrb.gmra.mxu1 %v10069_v44  ;;  %v5986_v49 = vor.u32 %v7503_v37, %v5985_v36  ;;  %v10458_v36 = vld [vmem:[%s11655_s4] sm:$0xf]  ;;  %v6795_v37 = vld [vmem:[%s11654_s3 + $0x790] sm:$0xf0]  ;;  %v7639_v3 = vld [vmem:[%s11654_s3 + $0x574] sm:$0xf0] }
 0x1b8   :  { %3817 = vmatpush.bf16.msra.mxu1 %v6082_v38 }
 0x1ba   :  { %3805 = vmatpush.bf16.msra.mxu0 %v5938_v45  ;;  %3783 = vmatpush.bf16.msrb.mxu2 %v6638_v57  ;;  %v1993_v51 = vpop.f32.mrf.mxu0  ;;  %v6450_v57 = vor.u32 %v7619_v13, %v6449_v12 }
 0x1bb   :  { %v7547_v51 = vld [vmem:[%s11654_s3 + $0x294] sm:$0xf0] }
 0x1bc   :  { %3818 = vmatpush.bf16.msra.mxu1 %v6066_v46  ;;  %v2017_v32 = vpop.f32.mrf.mxu2  ;;  %v2006_v40 = vpop.f32.mrf.mxu1  ;;  %v5858_v46 = vor.u32 %v7471_v35, %v5857_v31  ;;  %v6814_v31 = vor.u32 %v7708_v22, %v6811_v24  ;;  %v7704_v35 = vld [vmem:[%s11654_s3 + $0x784] sm:$0xf]  ;;  %v6113_v22 = vld [vmem:[%s11654_s3 + $0x228] sm:$0xf]  ;;  %v7535_v24 = vld [vmem:[%s11654_s3 + $0x234] sm:$0xf0] }
 0x1bd   :  { %v2018_v38 = vadd.f32 %v2017_v32, %v2005_v27  ;;  %v7551_v27 = vld [vmem:[%s11654_s3 + $0x2b4] sm:$0xf0]  ;;  %v6798_v33 = vor.u32 %v7704_v35, %v6795_v37  ;;  %v7688_v35 = vld [vmem:[%s11654_s3 + $0x704] sm:$0xf]  ;;  %v6731_v37 = vld [vmem:[%s11654_s3 + $0x710] sm:$0xf0] }
 0x1be   :  { %3806 = vmatpush.bf16.msra.mxu0 %v5922_v62  ;;  %v2030_v34 = vpop.f32.mrf.mxu3  ;;  %3784 = vmatpush.bf16.msrb.mxu2 %v6622_v41  ;;  %v6178_v32 = vor.u32 %v7551_v27, %v6177_v25 }
 0x1bf   :  { %v2031_v45 = vadd.f32 %v2030_v34, %v2018_v38  ;;  %v7647_v34 = vld [vmem:[%s11654_s3 + $0x5b4] sm:$0xf0]  ;;  %v6161_v38 = vld [vmem:[%s11654_s3 + $0x288] sm:$0xf] }
 0x1c0   :  { %3819 = vmatpush.bf16.msra.mxu1 %v6050_v63  ;;  %v6606_v63 = vor.u32 %v7656_v42, %v6603_v43  ;;  %v2308_v42 = vperm.slane %v10458_v36, 0  ;;  %v6417_v43 = vld [vmem:[%s11654_s3 + $0x488] sm:$0xf] }
 0x1c1   :  { %v2041_v62 = vmax.f32 %v2031_v45, 0.0  ;;  %v6162_v45 = vor.u32 %v7547_v51, %v6161_v38 }
 0x1c2   :  { %3807 = vmatpush.bf16.msra.mxu0 %v5906_v6  ;;  %v5842_v6 = vor.u32 %v7467_v58, %v5841_v56  ;;  %3785 = vmatpush.bf16.msrb.mxu2 %v6606_v63  ;;  %v6145_v56 = vld [vmem:[%s11654_s3 + $0x268] sm:$0xf]  ;;  %v7543_v58 = vld [vmem:[%s11654_s3 + $0x274] sm:$0xf0] }
 0x1c3   :  { %v10403_v23 = vpack.c.bf16 %v2041_v62, %v2041_v62  ;;  %v6401_v62 = vld [vmem:[%s11654_s3 + $0x468] sm:$0xf]  ;;  %v7607_v63 = vld [vmem:[%s11654_s3 + $0x474] sm:$0xf0] }
 0x1c4   :  { %3820 = vmatpush.bf16.msra.mxu1 %v6034_v7  ;;  %v5970_v7 = vor.u32 %v7499_v61, %v5969_v60  ;;  %v2019_v19 = vpop.f32.mrf.mxu2  ;;  %v6418_v60 = vor.u32 %v7611_v9, %v6417_v43 }
 0x1c5   :  { %3695 = vmatmul.bf16.vlgmr.msrb.gmra.mxu3 %v10403_v23  ;;  %3786 = vmatmul.bf16.vlgmr.msrb.gmra.mxu2 %v10234_v26 }
 0x1c6   :  { %3808 = vmatpush.bf16.msra.mxu0 %v5890_v15  ;;  %v2032_v53 = vpop.f32.mrf.mxu3  ;;  %3791 = vmatpush.bf16.msrb.mxu3 %v6846_v1  ;;  %v6194_v15 = vor.u32 %v7555_v10, %v6193_v5  ;;  %v6146_v1 = vor.u32 %v7543_v58, %v6145_v56  ;;  %v7539_v5 = vld [vmem:[%s11654_s3 + $0x254] sm:$0xf0]  ;;  %v6402_v10 = vor.u32 %v7607_v63, %v6401_v62 }
 0x1c7   :  { %3830 = vmatpush.bf16.msra.mxu2 %v6210_v2  ;;  %v6529_v2 = vld [vmem:[%s11654_s3 + $0x568] sm:$0xf]  ;;  %v6130_v13 = vor.u32 %v7539_v5, %v6129_v8  ;;  %v7595_v56 = vld [vmem:[%s11654_s3 + $0x414] sm:$0xf0]  ;;  %v6734_v58 = vor.u32 %v7688_v35, %v6731_v37 }
 0x1c8   :  { %3821 = vmatpush.bf16.msra.mxu1 %v6018_v16  ;;  %v6577_v16 = vld [vmem:[%s11654_s3 + $0x5c8] sm:$0xf]  ;;  %v6530_v53 = vor.u32 %v7639_v3, %v6529_v2  ;;  %v7627_v62 = vld [vmem:[%s11654_s3 + $0x514] sm:$0xf0]  ;;  %v7525_v2 = vld [vmem:[%s11654_s3 + $0x1ec] sm:$0xf]  ;;  %v6354_v3 = vor.u32 %v7595_v56, %v6353_v52 }
 0x1c9   :  { %v6578_v28 = vor.u32 %v7651_v18, %v6577_v16  ;;  %v7692_v16 = vld [vmem:[%s11654_s3 + $0x724] sm:$0xf]  ;;  %v6747_v18 = vld [vmem:[%s11654_s3 + $0x730] sm:$0xf0]  ;;  %v6705_v8 = vld [vmem:[%s11654_s3 + $0x6c8] sm:$0xf] }
 0x1ca   :  { %3809 = vmatpush.bf16.msra.mxu0 %v5874_v29  ;;  %v7615_v29 = vld [vmem:[%s11654_s3 + $0x4b4] sm:$0xf0]  ;;  %3792 = vmatpush.bf16.msrb.mxu3 %v6830_v14  ;;  %v6513_v14 = vld [vmem:[%s11654_s3 + $0x548] sm:$0xf] }
 0x1cb   :  { %3831 = vmatpush.bf16.msra.mxu2 %v6194_v15  ;;  %v6434_v40 = vor.u32 %v7615_v29, %v6433_v59  ;;  %v7635_v15 = vld [vmem:[%s11654_s3 + $0x554] sm:$0xf0]  ;;  %v6497_v59 = vld [vmem:[%s11654_s3 + $0x528] sm:$0xf] }
 0x1cc   :  { %3822 = vmatpush.bf16.msra.mxu1 %v6002_v30  ;;  %v6561_v30 = vld [vmem:[%s11654_s3 + $0x5a8] sm:$0xf]  ;;  %v6514_v27 = vor.u32 %v7635_v15, %v6513_v14  ;;  %v7683_v5 = vld [vmem:[%s11654_s3 + $0x6d4] sm:$0xf0]  ;;  %v6067_v15 = vld [vmem:[%s11654_s3 + $0x1d8] sm:$0xf0] }
 0x1cd   :  { %v6562_v41 = vor.u32 %v7647_v34, %v6561_v30  ;;  %v7631_v34 = vld [vmem:[%s11654_s3 + $0x534] sm:$0xf0]  ;;  %v6706_v14 = vor.u32 %v7683_v5, %v6705_v8  ;;  %v6673_v37 = vld [vmem:[%s11654_s3 + $0x688] sm:$0xf] }
 0x1ce   :  { %3810 = vmatpush.bf16.msra.mxu0 %v5858_v46  ;;  %3793 = vmatpush.bf16.msrb.mxu3 %v6814_v31  ;;  %v6545_v46 = vld [vmem:[%s11654_s3 + $0x588] sm:$0xf]  ;;  %v6750_v31 = vor.u32 %v7692_v16, %v6747_v18  ;;  %v6498_v50 = vor.u32 %v7631_v34, %v6497_v59  ;;  %v7583_v18 = vld [vmem:[%s11654_s3 + $0x3b4] sm:$0xf0]  ;;  %v7485_v59 = vld [vmem:[%s11654_s3 + $0xac] sm:$0xf] }
 0x1cf   :  { %3832 = vmatpush.bf16.msra.mxu2 %v6178_v32  ;;  %v6114_v32 = vor.u32 %v7535_v24, %v6113_v22  ;;  %v6305_v16 = vld [vmem:[%s11654_s3 + $0x3a8] sm:$0xf]  ;;  %v7579_v35 = vld [vmem:[%s11654_s3 + $0x394] sm:$0xf0] }
 0x1d0   :  { %3823 = vmatpush.bf16.msra.mxu1 %v5986_v49  ;;  %v7643_v49 = vld [vmem:[%s11654_s3 + $0x594] sm:$0xf0]  ;;  %v6689_v24 = vld [vmem:[%s11654_s3 + $0x6a8] sm:$0xf] }
 0x1d1   :  { %v6546_v61 = vor.u32 %v7643_v49, %v6545_v46  ;;  %v7687_v46 = vld [vmem:[%s11654_s3 + $0x6f4] sm:$0xf0]  ;;  %v6289_v34 = vld [vmem:[%s11654_s3 + $0x388] sm:$0xf] }
 0x1d2   :  { %3811 = vmatpush.bf16.msra.mxu0 %v5842_v6  ;;  %3794 = vmatpush.bf16.msrb.mxu3 %v6798_v33  ;;  %v3605_v39 = vpop.f32.mrf.mxu0  ;;  %v7591_v33 = vld [vmem:[%s11654_s3 + $0x3f4] sm:$0xf0]  ;;  %v6657_v52 = vld [vmem:[%s11654_s3 + $0x668] sm:$0xf] }
 0x1d3   :  { %3833 = vmatpush.bf16.msra.mxu2 %v6162_v45  ;;  %v3606_v20 = vadd.f32 %v3605_v39, %v2308_v42  ;;  %v6337_v42 = vld [vmem:[%s11654_s3 + $0x3e8] sm:$0xf]  ;;  %v7671_v56 = vld [vmem:[%s11654_s3 + $0x674] sm:$0xf0] }
 0x1d4   :  { %3824 = vmatpush.bf16.msra.mxu1 %v5970_v7  ;;  %v3618_v6 = vpop.f32.mrf.mxu1  ;;  %v6763_v7 = vld [vmem:[%s11654_s3 + $0x750] sm:$0xf0]  ;;  %v6721_v45 = vld [vmem:[%s11654_s3 + $0x6e8] sm:$0xf]  ;;  %v6338_v63 = vor.u32 %v7591_v33, %v6337_v42  ;;  %v7481_v42 = vld [vmem:[%s11654_s3 + $0x8c] sm:$0xf] }
 0x1d5   :  { %3812 = vmatmul.bf16.vlgmr.msra.gmra.mxu0 %v9753_v47  ;;  %v3619_v19 = vadd.f32 %v3618_v6, %v3606_v20  ;;  %3747 = vmatmul.bf16.vlgmr.msra.gmra.mxu3 %v9762_v55  ;;  %v6766_v12 = vor.u32 %v7696_v4, %v6763_v7  ;;  %v6722_v39 = vor.u32 %v7687_v46, %v6721_v45  ;;  %v6083_v4 = vld [vmem:[%s11654_s3 + $0x1f8] sm:$0xf0]  ;;  %v6321_v20 = vld [vmem:[%s11654_s3 + $0x3c8] sm:$0xf]  ;;  %v7587_v6 = vld [vmem:[%s11654_s3 + $0x3d4] sm:$0xf0] }
 0x1d6   :  { %3856 = vmatpush.bf16.msrb.mxu0 %v6466_v21  ;;  %v6385_v21 = vld [vmem:[%s11654_s3 + $0x448] sm:$0xf]  ;;  %3795 = vmatpush.bf16.msrb.mxu3 %v6782_v0  ;;  %v7493_v0 = vld [vmem:[%s11654_s3 + $0xec] sm:$0xf]  ;;  %v6035_v45 = vld [vmem:[%s11654_s3 + $0x198] sm:$0xf0] }
 0x1d7   :  { %3825 = vmatmul.bf16.vlgmr.msra.gmra.mxu1 %v9755_v48  ;;  %3834 = vmatpush.bf16.msra.mxu2 %v6146_v1  ;;  %v5955_v1 = vld [vmem:[%s11654_s3 + $0xf8] sm:$0xf0]  ;;  %v6273_v46 = vld [vmem:[%s11654_s3 + $0x368] sm:$0xf] }
 0x1d8   :  { %3869 = vmatpush.bf16.msrb.mxu1 %v6594_v11  ;;  %v7603_v11 = vld [vmem:[%s11654_s3 + $0x454] sm:$0xf0] }
 0x1d9   :  { %v6386_v25 = vor.u32 %v7603_v11, %v6385_v21  ;;  %v6322_v21 = vor.u32 %v7587_v6, %v6321_v20  ;;  %v7489_v11 = vld [vmem:[%s11654_s3 + $0xcc] sm:$0xf]  ;;  %v6641_v6 = vld [vmem:[%s11654_s3 + $0x648] sm:$0xf] }
 0x1da   :  { %3857 = vmatpush.bf16.msrb.mxu0 %v6450_v57  ;;  %v6369_v57 = vld [vmem:[%s11654_s3 + $0x428] sm:$0xf]  ;;  %3796 = vmatpush.bf16.msrb.mxu3 %v6766_v12  ;;  %v3607_v30 = vpop.f32.mrf.mxu0  ;;  %v5939_v12 = vld [vmem:[%s11654_s3 + $0xd8] sm:$0xf0] }
 0x1db   :  { %3835 = vmatpush.bf16.msra.mxu2 %v6130_v13  ;;  %v7521_v13 = vld [vmem:[%s11654_s3 + $0x1cc] sm:$0xf] }
 0x1dc   :  { %3870 = vmatpush.bf16.msrb.mxu1 %v6578_v28  ;;  %v7599_v28 = vld [vmem:[%s11654_s3 + $0x434] sm:$0xf0]  ;;  %v3631_v29 = vpop.f32.mrf.mxu2  ;;  %v3620_v51 = vpop.f32.mrf.mxu1  ;;  %v7517_v30 = vld [vmem:[%s11654_s3 + $0x1ac] sm:$0xf] }
 0x1dd   :  { %v3632_v38 = vadd.f32 %v3631_v29, %v3619_v19  ;;  %v6370_v9 = vor.u32 %v7599_v28, %v6369_v57  ;;  %v5958_v19 = vor.u32 %v7493_v0, %v5955_v1  ;;  %v6070_v57 = vor.u32 %v7521_v13, %v6067_v15  ;;  %v5923_v29 = vld [vmem:[%s11654_s3 + $0xb8] sm:$0xf0]  ;;  %v7567_v13 = vld [vmem:[%s11654_s3 + $0x334] sm:$0xf0] }
 0x1de   :  { %3858 = vmatpush.bf16.msrb.mxu0 %v6434_v40  ;;  %v6097_v40 = vld [vmem:[%s11654_s3 + $0x208] sm:$0xf]  ;;  %v3644_v43 = vpop.f32.mrf.mxu3  ;;  %3797 = vmatpush.bf16.msrb.mxu3 %v6750_v31  ;;  %v6306_v28 = vor.u32 %v7583_v18, %v6305_v16  ;;  %v5926_v51 = vor.u32 %v7485_v59, %v5923_v29  ;;  %v6658_v1 = vor.u32 %v7671_v56, %v6657_v52  ;;  %v7663_v15 = vld [vmem:[%s11654_s3 + $0x634] sm:$0xf0]  ;;  %v7469_v18 = vld [vmem:[%s11654_s3 + $0x2c] sm:$0xf] }
 0x1df   :  { %v10581_v49 = vadd.f32 %v3644_v43, %v3632_v38  ;;  %3836 = vmatpush.bf16.msra.mxu2 %v6114_v32  ;;  %v6051_v32 = vld [vmem:[%s11654_s3 + $0x1b8] sm:$0xf0]  ;;  %v7675_v38 = vld [vmem:[%s11654_s3 + $0x694] sm:$0xf0]  ;;  %v6225_v59 = vld [vmem:[%s11654_s3 + $0x308] sm:$0xf] }
 0x1e0   :  { %3871 = vmatpush.bf16.msrb.mxu1 %v6562_v41  ;;  %v7531_v41 = vld [vmem:[%s11654_s3 + $0x214] sm:$0xf0]  ;;  %v5907_v43 = vld [vmem:[%s11654_s3 + $0x98] sm:$0xf0]  ;;  %v6674_v33 = vor.u32 %v7675_v38, %v6673_v37  ;;  %v7557_v38 = vld [vmem:[%s11654_s3 + $0x2ec] sm:$0xf] }
 0x1e1   :  { %v7563_v29 = vld [vmem:[%s11654_s3 + $0x314] sm:$0xf0]  ;;  %v6467_v52 = vld [vmem:[%s11654_s3 + $0x4f8] sm:$0xf0] }
 0x1e2   :  { %3859 = vmatpush.bf16.msrb.mxu0 %v6418_v60  ;;  %v6098_v60 = vor.u32 %v7531_v41, %v6097_v40  ;;  %3798 = vmatpush.bf16.msrb.mxu3 %v6734_v58  ;;  %v6054_v40 = vor.u32 %v7517_v30, %v6051_v32  ;;  %v6290_v41 = vor.u32 %v7579_v35, %v6289_v34  ;;  %v6609_v30 = vld [vmem:[%s11654_s3 + $0x608] sm:$0xf]  ;;  %v7659_v32 = vld [vmem:[%s11654_s3 + $0x614] sm:$0xf0] }
 0x1e3   :  { %v5910_v58 = vor.u32 %v7481_v42, %v5907_v43  ;;  %v6849_v34 = vld [vmem:[%s11654_s3 + $0x7e8] sm:$0xf]  ;;  %v7719_v35 = vld [vmem:[%s11654_s3 + $0x7f4] sm:$0xf0]  ;;  %v7465_v42 = vld [vmem:[%s11654_s3 + $0xc] sm:$0xf] }
 0x1e4   :  { %3872 = vmatpush.bf16.msrb.mxu1 %v6546_v61  ;;  %v6481_v61 = vld [vmem:[%s11654_s3 + $0x508] sm:$0xf]  ;;  %3837 = vmatpush.bf16.msra.mxu2 %v6098_v60  ;;  %v5843_v43 = vld [vmem:[%s11654_s3 + $0x18] sm:$0xf0] }
 0x1e5   :  { %v6482_v7 = vor.u32 %v7627_v62, %v6481_v61  ;;  %3799 = vmatmul.bf16.vlgmr.msrb.gmra.mxu3 %v10403_v23  ;;  %v7477_v62 = vld [vmem:[%s11654_s3 + $0x6c] sm:$0xf] }
 0x1e6   :  { %3860 = vmatpush.bf16.msrb.mxu0 %v6402_v10  ;;  %v3633_v10 = vpop.f32.mrf.mxu2  ;;  %3843 = vmatpush.bf16.msra.mxu3 %v6338_v63  ;;  %v3646_v22 = vpop.f32.mrf.mxu3  ;;  %v5891_v63 = vld [vmem:[%s11654_s3 + $0x78] sm:$0xf0] }
 0x1e7   :  { %3838 = vmatmul.bf16.vlgmr.msra.gmra.mxu2 %v9760_v54  ;;  %v5894_v8 = vor.u32 %v7477_v62, %v5891_v63  ;;  %v5846_v62 = vor.u32 %v7465_v42, %v5843_v43  ;;  %v7715_v63 = vld [vmem:[%s11654_s3 + $0x7d4] sm:$0xf0]  ;;  %v7605_v42 = vld [vmem:[%s11654_s3 + $0x46c] sm:$0xf]  ;;  %v6403_v43 = vld [vmem:[%s11654_s3 + $0x478] sm:$0xf0] }
 0x1e8   :  { %3873 = vmatpush.bf16.msrb.mxu1 %v6530_v53  ;;  %3882 = vmatpush.bf16.msrb.mxu2 %v6722_v39  ;;  %v6086_v53 = vor.u32 %v7525_v2, %v6083_v4  ;;  %v7509_v39 = vld [vmem:[%s11654_s3 + $0x16c] sm:$0xf]  ;;  %v6019_v2 = vld [vmem:[%s11654_s3 + $0x178] sm:$0xf0]  ;;  %v7571_v4 = vld [vmem:[%s11654_s3 + $0x354] sm:$0xf0] }
 0x1e9   :  { %v6022_v5 = vor.u32 %v7509_v39, %v6019_v2  ;;  %v7553_v39 = vld [vmem:[%s11654_s3 + $0x2cc] sm:$0xf] }
 0x1ea   :  { %3861 = vmatpush.bf16.msrb.mxu0 %v6386_v25  ;;  %v7679_v25 = vld [vmem:[%s11654_s3 + $0x6b4] sm:$0xf0]  ;;  %3844 = vmatpush.bf16.msra.mxu3 %v6322_v21 }
 0x1eb   :  { %v6690_v31 = vor.u32 %v7679_v25, %v6689_v24  ;;  %v5859_v25 = vld [vmem:[%s11654_s3 + $0x38] sm:$0xf0] }
 0x1ec   :  { %3874 = vmatpush.bf16.msrb.mxu1 %v6514_v27  ;;  %v5942_v27 = vor.u32 %v7489_v11, %v5939_v12  ;;  %3883 = vmatpush.bf16.msrb.mxu2 %v6706_v14  ;;  %v6003_v11 = vld [vmem:[%s11654_s3 + $0x158] sm:$0xf0]  ;;  %v6241_v12 = vld [vmem:[%s11654_s3 + $0x328] sm:$0xf]  ;;  %v5862_v37 = vor.u32 %v7469_v18, %v5859_v25 }
 0x1ed   :  { %v6625_v14 = vld [vmem:[%s11654_s3 + $0x628] sm:$0xf]  ;;  %v6242_v24 = vor.u32 %v7567_v13, %v6241_v12  ;;  %v7613_v13 = vld [vmem:[%s11654_s3 + $0x4ac] sm:$0xf] }
 0x1ee   :  { %3862 = vmatpush.bf16.msrb.mxu0 %v6370_v9  ;;  %3845 = vmatpush.bf16.msra.mxu3 %v6306_v28  ;;  %v7513_v9 = vld [vmem:[%s11654_s3 + $0x18c] sm:$0xf]  ;;  %v6626_v28 = vor.u32 %v7663_v15, %v6625_v14  ;;  %v6435_v14 = vld [vmem:[%s11654_s3 + $0x4b8] sm:$0xf0]  ;;  %v6801_v25 = vld [vmem:[%s11654_s3 + $0x788] sm:$0xf] }
 0x1ef   :  { %v6038_v60 = vor.u32 %v7513_v9, %v6035_v45  ;;  %v7497_v9 = vld [vmem:[%s11654_s3 + $0x10c] sm:$0xf]  ;;  %v6850_v45 = vor.u32 %v7719_v35, %v6849_v34  ;;  %v6547_v34 = vld [vmem:[%s11654_s3 + $0x598] sm:$0xf0]  ;;  %v6785_v35 = vld [vmem:[%s11654_s3 + $0x768] sm:$0xf] }
 0x1f0   :  { %3875 = vmatpush.bf16.msrb.mxu1 %v6498_v50  ;;  %3884 = vmatpush.bf16.msrb.mxu2 %v6690_v31  ;;  %v7575_v50 = vld [vmem:[%s11654_s3 + $0x374] sm:$0xf0] }
 0x1f1   :  { %v6274_v61 = vor.u32 %v7575_v50, %v6273_v46  ;;  %v5971_v46 = vld [vmem:[%s11654_s3 + $0x118] sm:$0xf0]  ;;  %v7621_v50 = vld [vmem:[%s11654_s3 + $0x4ec] sm:$0xf] }
 0x1f2   :  { %3863 = vmatpush.bf16.msrb.mxu0 %v6354_v3  ;;  %3846 = vmatpush.bf16.msra.mxu3 %v6290_v41  ;;  %v3657_v0 = vpop.f32.mrf.mxu0  ;;  %v6257_v3 = vld [vmem:[%s11654_s3 + $0x348] sm:$0xf]  ;;  %v6226_v41 = vor.u32 %v7563_v29, %v6225_v59  ;;  %v6470_v2 = vor.u32 %v7621_v50, %v6467_v52  ;;  %v6163_v59 = vld [vmem:[%s11654_s3 + $0x298] sm:$0xf0]  ;;  %v7637_v50 = vld [vmem:[%s11654_s3 + $0x56c] sm:$0xf] }
 0x1f3   :  { %v10714_v20 = vadd.f32 %v3657_v0, %v10581_v49  ;;  %v6258_v10 = vor.u32 %v7571_v4, %v6257_v3  ;;  %v5875_v49 = vld [vmem:[%s11654_s3 + $0x58] sm:$0xf0]  ;;  %v7617_v4 = vld [vmem:[%s11654_s3 + $0x4cc] sm:$0xf] }
 0x1f4   :  { %3876 = vmatpush.bf16.msrb.mxu1 %v6482_v7  ;;  %3885 = vmatpush.bf16.msrb.mxu2 %v6674_v33  ;;  %v7667_v7 = vld [vmem:[%s11654_s3 + $0x654] sm:$0xf0]  ;;  %v6610_v33 = vor.u32 %v7659_v32, %v6609_v30  ;;  %v6195_v0 = vld [vmem:[%s11654_s3 + $0x2d8] sm:$0xf0]  ;;  %v7641_v32 = vld [vmem:[%s11654_s3 + $0x58c] sm:$0xf] }
 0x1f5   :  { %3864 = vmatmul.bf16.vlgmr.msrb.gmra.mxu0 %v9921_v17  ;;  %v6642_v21 = vor.u32 %v7667_v7, %v6641_v6  ;;  %v6451_v6 = vld [vmem:[%s11654_s3 + $0x4d8] sm:$0xf0] }
 0x1f6   :  { %3908 = vmatpush.bf16.msra.mxu0 %v5958_v19  ;;  %3847 = vmatpush.bf16.msra.mxu3 %v6274_v61  ;;  %v7473_v19 = vld [vmem:[%s11654_s3 + $0x4c] sm:$0xf]  ;;  %v6833_v61 = vld [vmem:[%s11654_s3 + $0x7c8] sm:$0xf]  ;;  %v6531_v52 = vld [vmem:[%s11654_s3 + $0x578] sm:$0xf0] }
 0x1f7   :  { %3877 = vmatmul.bf16.vlgmr.msrb.gmra.mxu1 %v10069_v44  ;;  %v5878_v16 = vor.u32 %v7473_v19, %v5875_v49  ;;  %v6834_v7 = vor.u32 %v7715_v63, %v6833_v61  ;;  %v6817_v19 = vld [vmem:[%s11654_s3 + $0x7a8] sm:$0xf]  ;;  %v7711_v49 = vld [vmem:[%s11654_s3 + $0x7b4] sm:$0xf0]  ;;  %v6131_v61 = vld [vmem:[%s11654_s3 + $0x258] sm:$0xf0]  ;;  %v6406_v63 = vor.u32 %v7605_v42, %v6403_v43 }
 0x1f8   :  { %3921 = vmatpush.bf16.msra.mxu1 %v6086_v53  ;;  %v7505_v53 = vld [vmem:[%s11654_s3 + $0x14c] sm:$0xf]  ;;  %3886 = vmatpush.bf16.msrb.mxu2 %v6658_v1  ;;  %v5974_v1 = vor.u32 %v7497_v9, %v5971_v46  ;;  %v6818_v15 = vor.u32 %v7711_v49, %v6817_v19  ;;  %v6707_v43 = vld [vmem:[%s11654_s3 + $0x6d8] sm:$0xf0] }
 0x1f9   :  { %v6006_v22 = vor.u32 %v7505_v53, %v6003_v11  ;;  %v7549_v53 = vld [vmem:[%s11654_s3 + $0x2ac] sm:$0xf]  ;;  %v6454_v11 = vor.u32 %v7617_v4, %v6451_v6  ;;  %v6515_v4 = vld [vmem:[%s11654_s3 + $0x558] sm:$0xf0]  ;;  %v6753_v6 = vld [vmem:[%s11654_s3 + $0x728] sm:$0xf] }
 0x1fa   :  { %3909 = vmatpush.bf16.msra.mxu0 %v5942_v27  ;;  %3848 = vmatpush.bf16.msra.mxu3 %v6258_v10  ;;  %v7501_v27 = vld [vmem:[%s11654_s3 + $0x12c] sm:$0xf]  ;;  %v3659_v31 = vpop.f32.mrf.mxu0  ;;  %v6579_v10 = vld [vmem:[%s11654_s3 + $0x5d8] sm:$0xf0] }
 0x1fb   :  { %v7681_v42 = vld [vmem:[%s11654_s3 + $0x6cc] sm:$0xf] }
 0x1fc   :  { %3922 = vmatpush.bf16.msra.mxu1 %v6070_v57  ;;  %v5987_v57 = vld [vmem:[%s11654_s3 + $0x138] sm:$0xf0]  ;;  %3887 = vmatpush.bf16.msrb.mxu2 %v6642_v21 }
 0x1fd   :  { %v6179_v21 = vld [vmem:[%s11654_s3 + $0x2b8] sm:$0xf0] }
 0x1fe   :  { %3910 = vmatpush.bf16.msra.mxu0 %v5926_v51  ;;  %v6211_v51 = vld [vmem:[%s11654_s3 + $0x2f8] sm:$0xf0]  ;;  %3849 = vmatpush.bf16.msra.mxu3 %v6242_v24 }
 0x1ff   :  { %v6214_v56 = vor.u32 %v7557_v38, %v6211_v51  ;;  %v6563_v24 = vld [vmem:[%s11654_s3 + $0x5b8] sm:$0xf0]  ;;  %v7541_v38 = vld [vmem:[%s11654_s3 + $0x26c] sm:$0xf] }
 0x200   :  { %3923 = vmatpush.bf16.msra.mxu1 %v6054_v40  ;;  %v5990_v40 = vor.u32 %v7501_v27, %v5987_v57  ;;  %3888 = vmatpush.bf16.msrb.mxu2 %v6626_v28  ;;  %v7707_v57 = vld [vmem:[%s11654_s3 + $0x794] sm:$0xf0]  ;;  %v7545_v28 = vld [vmem:[%s11654_s3 + $0x28c] sm:$0xf]  ;;  %v6147_v51 = vld [vmem:[%s11654_s3 + $0x278] sm:$0xf0] }
 0x201   :  { %v6802_v30 = vor.u32 %v7707_v57, %v6801_v25  ;;  %v6166_v31 = vor.u32 %v7545_v28, %v6163_v59  ;;  %v7529_v25 = vld [vmem:[%s11654_s3 + $0x20c] sm:$0xf]  ;;  %v6099_v57 = vld [vmem:[%s11654_s3 + $0x218] sm:$0xf0] }
 0x202   :  { %3911 = vmatpush.bf16.msra.mxu0 %v5910_v58  ;;  %v7653_v58 = vld [vmem:[%s11654_s3 + $0x5ec] sm:$0xf]  ;;  %3850 = vmatpush.bf16.msra.mxu3 %v6226_v41  ;;  %v3670_v18 = vpop.f32.mrf.mxu1  ;;  %v6550_v41 = vor.u32 %v7641_v32, %v6547_v34  ;;  %v6339_v59 = vld [vmem:[%s11654_s3 + $0x3f8] sm:$0xf0] }
 0x203   :  { %v10862_v27 = vadd.f32 %v3670_v18, %v10714_v20  ;;  %v6419_v20 = vld [vmem:[%s11654_s3 + $0x498] sm:$0xf0]  ;;  %v6737_v18 = vld [vmem:[%s11654_s3 + $0x708] sm:$0xf]  ;;  %v7589_v28 = vld [vmem:[%s11654_s3 + $0x3ec] sm:$0xf] }
 0x204   :  { %3924 = vmatpush.bf16.msra.mxu1 %v6038_v60  ;;  %v6595_v60 = vld [vmem:[%s11654_s3 + $0x5f8] sm:$0xf0]  ;;  %3889 = vmatpush.bf16.msrb.mxu2 %v6610_v33  ;;  %v7593_v32 = vld [vmem:[%s11654_s3 + $0x40c] sm:$0xf] }
 0x205   :  { %v6598_v3 = vor.u32 %v7653_v58, %v6595_v60  ;;  %3851 = vmatmul.bf16.vlgmr.msra.gmra.mxu3 %v9762_v55  ;;  %v7699_v58 = vld [vmem:[%s11654_s3 + $0x754] sm:$0xf0]  ;;  %v7537_v60 = vld [vmem:[%s11654_s3 + $0x24c] sm:$0xf]  ;;  %v6355_v34 = vld [vmem:[%s11654_s3 + $0x418] sm:$0xf0] }
 0x206   :  { %3912 = vmatpush.bf16.msra.mxu0 %v5894_v8  ;;  %3895 = vmatpush.bf16.msrb.mxu3 %v6850_v45  ;;  %v6198_v8 = vor.u32 %v7553_v39, %v6195_v0  ;;  %v6150_v45 = vor.u32 %v7541_v38, %v6147_v51  ;;  %v6534_v39 = vor.u32 %v7637_v50, %v6531_v52  ;;  %v7601_v0 = vld [vmem:[%s11654_s3 + $0x44c] sm:$0xf]  ;;  %v6483_v51 = vld [vmem:[%s11654_s3 + $0x518] sm:$0xf0] }
 0x207   :  { %3890 = vmatmul.bf16.vlgmr.msrb.gmra.mxu2 %v10234_v26  ;;  %v7625_v38 = vld [vmem:[%s11654_s3 + $0x50c] sm:$0xf] }
 0x208   :  { %3925 = vmatpush.bf16.msra.mxu1 %v6022_v5  ;;  %3934 = vmatpush.bf16.msra.mxu2 %v6214_v56  ;;  %v7649_v5 = vld [vmem:[%s11654_s3 + $0x5cc] sm:$0xf]  ;;  %v6769_v56 = vld [vmem:[%s11654_s3 + $0x748] sm:$0xf] }
 0x209   :  { %v6582_v12 = vor.u32 %v7649_v5, %v6579_v10  ;;  %v6115_v5 = vld [vmem:[%s11654_s3 + $0x238] sm:$0xf0] }
 0x20a   :  { %3913 = vmatpush.bf16.msra.mxu0 %v5878_v16  ;;  %3896 = vmatpush.bf16.msrb.mxu3 %v6834_v7  ;;  %v6182_v16 = vor.u32 %v7549_v53, %v6179_v21  ;;  %v3672_v46 = vpop.f32.mrf.mxu1  ;;  %v7695_v7 = vld [vmem:[%s11654_s3 + $0x734] sm:$0xf0]  ;;  %v7597_v53 = vld [vmem:[%s11654_s3 + $0x42c] sm:$0xf]  ;;  %v6371_v21 = vld [vmem:[%s11654_s3 + $0x438] sm:$0xf0] }
 0x20b   :  { %v6486_v46 = vor.u32 %v7625_v38, %v6483_v51 }
 0x20c   :  { %3926 = vmatpush.bf16.msra.mxu1 %v6006_v22  ;;  %3935 = vmatpush.bf16.msra.mxu2 %v6198_v8  ;;  %v7645_v22 = vld [vmem:[%s11654_s3 + $0x5ac] sm:$0xf] }
 0x20d   :  { %v6566_v29 = vor.u32 %v7645_v22, %v6563_v24  ;;  %v7533_v8 = vld [vmem:[%s11654_s3 + $0x22c] sm:$0xf]  ;;  %v7691_v22 = vld [vmem:[%s11654_s3 + $0x714] sm:$0xf0] }
 0x20e   :  { %3914 = vmatpush.bf16.msra.mxu0 %v5862_v37  ;;  %3897 = vmatpush.bf16.msrb.mxu3 %v6818_v15  ;;  %v7703_v37 = vld [vmem:[%s11654_s3 + $0x774] sm:$0xf0] }
 0x20f   :  { %v6786_v33 = vor.u32 %v7703_v37, %v6785_v35  ;;  %v6342_v35 = vor.u32 %v7589_v28, %v6339_v59  ;;  %v7569_v59 = vld [vmem:[%s11654_s3 + $0x34c] sm:$0xf] }
 0x210   :  { %3927 = vmatpush.bf16.msra.mxu1 %v5990_v40  ;;  %3936 = vmatpush.bf16.msra.mxu2 %v6182_v16  ;;  %v6499_v16 = vld [vmem:[%s11654_s3 + $0x538] sm:$0xf0] }
 0x212   :  { %3915 = vmatpush.bf16.msra.mxu0 %v5846_v62  ;;  %3898 = vmatpush.bf16.msrb.mxu3 %v6802_v30  ;;  %v3709_v9 = vpop.f32.mrf.mxu0  ;;  %v2309_v62 = vperm.slane %v10458_v36, 1  ;;  %v7633_v36 = vld [vmem:[%s11654_s3 + $0x54c] sm:$0xf]  ;;  %v6738_v30 = vor.u32 %v7691_v22, %v6737_v18 }
 0x213   :  { %v6518_v49 = vor.u32 %v7633_v36, %v6515_v4  ;;  %v7673_v36 = vld [vmem:[%s11654_s3 + $0x68c] sm:$0xf] }
 0x214   :  { %3928 = vmatpush.bf16.msra.mxu1 %v5974_v1  ;;  %3937 = vmatpush.bf16.msra.mxu2 %v6166_v31  ;;  %v6387_v1 = vld [vmem:[%s11654_s3 + $0x458] sm:$0xf0]  ;;  %v3710_v10 = vadd.f32 %v3709_v9, %v2309_v62  ;;  %v3722_v15 = vpop.f32.mrf.mxu1  ;;  %v6102_v31 = vor.u32 %v7529_v25, %v6099_v57  ;;  %v6913_v9 = vld [vmem:[%s11656_s5 + $0x70] sm:$0xf]  ;;  %v7677_v62 = vld [vmem:[%s11654_s3 + $0x6ac] sm:$0xf] }
 0x215   :  { %3916 = vmatmul.bf16.vlgmr.msra.gmra.mxu0 %v9753_v47  ;;  %v6438_v47 = vor.u32 %v7613_v13, %v6435_v14  ;;  %v6390_v19 = vor.u32 %v7601_v0, %v6387_v1  ;;  %v6754_v13 = vor.u32 %v7695_v7, %v6753_v6  ;;  %v6118_v14 = vor.u32 %v7533_v8, %v6115_v5  ;;  %v7733_v0 = vld [vmem:[%s11656_s5 + $0x64] sm:$0xf0]  ;;  %v6675_v6 = vld [vmem:[%s11654_s3 + $0x698] sm:$0xf0]  ;;  %v6977_v7 = vld [vmem:[%s11656_s5 + $0xf0] sm:$0xf] }
 0x216   :  { %3960 = vmatpush.bf16.msrb.mxu0 %v6470_v2  ;;  %3899 = vmatpush.bf16.msrb.mxu3 %v6786_v33  ;;  %v6770_v2 = vor.u32 %v7699_v58, %v6769_v56  ;;  %v10964_v24 = vadd.f32 %v3722_v15, %v3710_v10  ;;  %v7735_v33 = vld [vmem:[%s11656_s5 + $0x74] sm:$0xf0]  ;;  %v6710_v56 = vor.u32 %v7681_v42, %v6707_v43  ;;  %v7581_v58 = vld [vmem:[%s11654_s3 + $0x3ac] sm:$0xf]  ;;  %v6897_v5 = vld [vmem:[%s11656_s5 + $0x50] sm:$0xf] }
 0x217   :  { %3929 = vmatmul.bf16.vlgmr.msra.gmra.mxu1 %v9755_v48  ;;  %v7609_v48 = vld [vmem:[%s11654_s3 + $0x48c] sm:$0xf]  ;;  %v7751_v8 = vld [vmem:[%s11656_s5 + $0xf4] sm:$0xf0]  ;;  %v6889_v15 = vld [vmem:[%s11656_s5 + $0x40] sm:$0xf] }
 0x218   :  { %3973 = vmatpush.bf16.msrb.mxu1 %v6598_v3  ;;  %v6422_v40 = vor.u32 %v7609_v48, %v6419_v20  ;;  %3938 = vmatpush.bf16.msra.mxu2 %v6150_v45  ;;  %v6134_v3 = vor.u32 %v7537_v60, %v6131_v61  ;;  %v6374_v48 = vor.u32 %v7597_v53, %v6371_v21  ;;  %v6307_v61 = vld [vmem:[%s11654_s3 + $0x3b8] sm:$0xf0]  ;;  %v7731_v10 = vld [vmem:[%s11656_s5 + $0x54] sm:$0xf0]  ;;  %v7573_v21 = vld [vmem:[%s11654_s3 + $0x36c] sm:$0xf] }
 0x219   :  { %v6358_v45 = vor.u32 %v7593_v32, %v6355_v34  ;;  %v6914_v60 = vor.u32 %v7735_v33, %v6913_v9  ;;  %v6310_v1 = vor.u32 %v7581_v58, %v6307_v61  ;;  %v6678_v53 = vor.u32 %v7673_v36, %v6675_v6  ;;  %v7747_v32 = vld [vmem:[%s11656_s5 + $0xd4] sm:$0xf0]  ;;  %v6881_v34 = vld [vmem:[%s11656_s5 + $0x30] sm:$0xf]  ;;  %v7661_v42 = vld [vmem:[%s11654_s3 + $0x62c] sm:$0xf] }
 0x21a   :  { %3961 = vmatpush.bf16.msrb.mxu0 %v6454_v11  ;;  %v7629_v11 = vld [vmem:[%s11654_s3 + $0x52c] sm:$0xf]  ;;  %3900 = vmatpush.bf16.msrb.mxu3 %v6770_v2  ;;  %v6627_v9 = vld [vmem:[%s11654_s3 + $0x638] sm:$0xf0]  ;;  %v6953_v33 = vld [vmem:[%s11656_s5 + $0xc0] sm:$0xf] }
 0x21b   :  { %v6502_v20 = vor.u32 %v7629_v11, %v6499_v16  ;;  %v6898_v11 = vor.u32 %v7731_v10, %v6897_v5  ;;  %v7729_v16 = vld [vmem:[%s11656_s5 + $0x44] sm:$0xf0]  ;;  %v7743_v36 = vld [vmem:[%s11656_s5 + $0xb4] sm:$0xf0]  ;;  %v6865_v6 = vld [vmem:[%s11656_s5 + $0x10] sm:$0xf] }
 0x21c   :  { %3974 = vmatpush.bf16.msrb.mxu1 %v6582_v12  ;;  %3939 = vmatpush.bf16.msra.mxu2 %v6134_v3  ;;  %v3711_v12 = vpop.f32.mrf.mxu0  ;;  %v3724_v50 = vpop.f32.mrf.mxu1  ;;  %v7577_v3 = vld [vmem:[%s11654_s3 + $0x38c] sm:$0xf] }
 0x21d   :  { %v6659_v12 = vld [vmem:[%s11654_s3 + $0x678] sm:$0xf0]  ;;  %v7725_v50 = vld [vmem:[%s11656_s5 + $0x24] sm:$0xf0] }
 0x21e   :  { %3962 = vmatpush.bf16.msrb.mxu0 %v6438_v47  ;;  %v7685_v47 = vld [vmem:[%s11654_s3 + $0x6ec] sm:$0xf]  ;;  %3901 = vmatpush.bf16.msrb.mxu3 %v6754_v13  ;;  %v6969_v13 = vld [vmem:[%s11656_s5 + $0xe0] sm:$0xf] }
 0x220   :  { %3975 = vmatpush.bf16.msrb.mxu1 %v6566_v29  ;;  %v6723_v29 = vld [vmem:[%s11654_s3 + $0x6f8] sm:$0xf0]  ;;  %3940 = vmatpush.bf16.msra.mxu2 %v6118_v14  ;;  %v7749_v14 = vld [vmem:[%s11656_s5 + $0xe4] sm:$0xf0] }
 0x221   :  { %v6726_v37 = vor.u32 %v7685_v47, %v6723_v29  ;;  %v6970_v18 = vor.u32 %v7749_v14, %v6969_v13  ;;  %v6259_v47 = vld [vmem:[%s11654_s3 + $0x358] sm:$0xf0]  ;;  %v7665_v29 = vld [vmem:[%s11654_s3 + $0x64c] sm:$0xf]  ;;  %v7734_v14 = vld [vmem:[%s11656_s5 + $0x74] sm:$0xf] }
 0x222   :  { %3963 = vmatpush.bf16.msrb.mxu0 %v6422_v40  ;;  %v7585_v40 = vld [vmem:[%s11654_s3 + $0x3cc] sm:$0xf]  ;;  %3902 = vmatpush.bf16.msrb.mxu3 %v6738_v30  ;;  %v6643_v30 = vld [vmem:[%s11654_s3 + $0x658] sm:$0xf0]  ;;  %v6262_v38 = vor.u32 %v7569_v59, %v6259_v47  ;;  %v7739_v59 = vld [vmem:[%s11656_s5 + $0x94] sm:$0xf0] }
 0x223   :  { %v6646_v51 = vor.u32 %v7665_v29, %v6643_v30  ;;  %v7709_v29 = vld [vmem:[%s11654_s3 + $0x7ac] sm:$0xf]  ;;  %v7732_v30 = vld [vmem:[%s11656_s5 + $0x64] sm:$0xf] }
 0x224   :  { %3976 = vmatpush.bf16.msrb.mxu1 %v6550_v41  ;;  %v6323_v41 = vld [vmem:[%s11654_s3 + $0x3d8] sm:$0xf0]  ;;  %3941 = vmatpush.bf16.msra.mxu2 %v6102_v31  ;;  %v6961_v31 = vld [vmem:[%s11656_s5 + $0xd0] sm:$0xf] }
 0x225   :  { %v6326_v52 = vor.u32 %v7585_v40, %v6323_v41  ;;  %3903 = vmatmul.bf16.vlgmr.msrb.gmra.mxu3 %v10403_v23  ;;  %v7565_v40 = vld [vmem:[%s11654_s3 + $0x32c] sm:$0xf]  ;;  %v6243_v41 = vld [vmem:[%s11654_s3 + $0x338] sm:$0xf0] }
 0x226   :  { %3964 = vmatpush.bf16.msrb.mxu0 %v6406_v63  ;;  %3947 = vmatpush.bf16.msra.mxu3 %v6342_v35  ;;  %v6691_v63 = vld [vmem:[%s11654_s3 + $0x6b8] sm:$0xf0]  ;;  %v7727_v35 = vld [vmem:[%s11656_s5 + $0x34] sm:$0xf0]  ;;  %v6246_v61 = vor.u32 %v7565_v40, %v6243_v41  ;;  %v7750_v40 = vld [vmem:[%s11656_s5 + $0xf4] sm:$0xf] }
 0x227   :  { %3942 = vmatmul.bf16.vlgmr.msra.gmra.mxu2 %v9760_v54  ;;  %v6694_v2 = vor.u32 %v7677_v62, %v6691_v63  ;;  %v6291_v54 = vld [vmem:[%s11654_s3 + $0x398] sm:$0xf0]  ;;  %v6882_v43 = vor.u32 %v7727_v35, %v6881_v34  ;;  %v6630_v62 = vor.u32 %v7661_v42, %v6627_v9  ;;  %v6921_v34 = vld [vmem:[%s11656_s5 + $0x80] sm:$0xf]  ;;  %v7737_v35 = vld [vmem:[%s11656_s5 + $0x84] sm:$0xf0] }
 0x228   :  { %3977 = vmatpush.bf16.msrb.mxu1 %v6534_v39  ;;  %3986 = vmatpush.bf16.msrb.mxu2 %v6726_v37  ;;  %v6905_v39 = vld [vmem:[%s11656_s5 + $0x60] sm:$0xf]  ;;  %v6962_v37 = vor.u32 %v7747_v32, %v6961_v31  ;;  %v6227_v63 = vld [vmem:[%s11654_s3 + $0x318] sm:$0xf0]  ;;  %v6907_v32 = vld [vmem:[%s11656_s5 + $0x68] sm:$0xf0] }
 0x229   :  { %v6906_v4 = vor.u32 %v7733_v0, %v6905_v39  ;;  %v7657_v39 = vld [vmem:[%s11654_s3 + $0x60c] sm:$0xf]  ;;  %v6611_v0 = vld [vmem:[%s11654_s3 + $0x618] sm:$0xf0]  ;;  %v7730_v42 = vld [vmem:[%s11656_s5 + $0x54] sm:$0xf] }
 0x22a   :  { %3965 = vmatpush.bf16.msrb.mxu0 %v6390_v19  ;;  %3948 = vmatpush.bf16.msra.mxu3 %v6326_v52  ;;  %v6978_v19 = vor.u32 %v7751_v8, %v6977_v7  ;;  %v7723_v7 = vld [vmem:[%s11656_s5 + $0x14] sm:$0xf0]  ;;  %v6614_v10 = vor.u32 %v7657_v39, %v6611_v0  ;;  %v6979_v41 = vld [vmem:[%s11656_s5 + $0xf8] sm:$0xf0] }
 0x22b   :  { %v6982_v9 = vor.u32 %v7750_v40, %v6979_v41  ;;  %v7041_v40 = vld [vmem:[%s11656_s5 + $0x170] sm:$0xf]  ;;  %v7767_v41 = vld [vmem:[%s11656_s5 + $0x174] sm:$0xf0] }
 0x22c   :  { %3978 = vmatpush.bf16.msrb.mxu1 %v6518_v49  ;;  %3987 = vmatpush.bf16.msrb.mxu2 %v6710_v56  ;;  %v6294_v49 = vor.u32 %v7577_v3, %v6291_v54  ;;  %v7561_v56 = vld [vmem:[%s11654_s3 + $0x30c] sm:$0xf]  ;;  %v6945_v54 = vld [vmem:[%s11656_s5 + $0xb0] sm:$0xf] }
 0x22d   :  { %v7717_v3 = vld [vmem:[%s11654_s3 + $0x7ec] sm:$0xf]  ;;  %v6946_v8 = vor.u32 %v7743_v36, %v6945_v54  ;;  %v6230_v5 = vor.u32 %v7561_v56, %v6227_v63  ;;  %v7748_v56 = vld [vmem:[%s11656_s5 + $0xe4] sm:$0xf] }
 0x22e   :  { %3966 = vmatpush.bf16.msrb.mxu0 %v6374_v48  ;;  %3949 = vmatpush.bf16.msra.mxu3 %v6310_v1  ;;  %v11097_v48 = vpop.f32.mrf.mxu2  ;;  %v6891_v63 = vld [vmem:[%s11656_s5 + $0x48] sm:$0xf0] }
 0x230   :  { %3979 = vmatpush.bf16.msrb.mxu1 %v6502_v20  ;;  %3988 = vmatpush.bf16.msrb.mxu2 %v6694_v2  ;;  %v6890_v20 = vor.u32 %v7729_v16, %v6889_v15  ;;  %v6915_v15 = vld [vmem:[%s11656_s5 + $0x78] sm:$0xf0] }
 0x231   :  { %v6918_v47 = vor.u32 %v7734_v14, %v6915_v15 }
 0x232   :  { %3967 = vmatpush.bf16.msrb.mxu0 %v6358_v45  ;;  %3950 = vmatpush.bf16.msra.mxu3 %v6294_v49  ;;  %v11084_v22 = vpop.f32.mrf.mxu0  ;;  %v7745_v45 = vld [vmem:[%s11656_s5 + $0xc4] sm:$0xf0]  ;;  %v6866_v49 = vor.u32 %v7723_v7, %v6865_v6  ;;  %v7746_v6 = vld [vmem:[%s11656_s5 + $0xd4] sm:$0xf]  ;;  %v6963_v7 = vld [vmem:[%s11656_s5 + $0xd8] sm:$0xf0] }
 0x233   :  { %v6954_v52 = vor.u32 %v7745_v45, %v6953_v33 }
 0x234   :  { %3980 = vmatpush.bf16.msrb.mxu1 %v6486_v46  ;;  %3989 = vmatpush.bf16.msrb.mxu2 %v6678_v53  ;;  %v11086_v25 = vpop.f32.mrf.mxu1  ;;  %v6873_v46 = vld [vmem:[%s11656_s5 + $0x20] sm:$0xf]  ;;  %v7713_v53 = vld [vmem:[%s11654_s3 + $0x7cc] sm:$0xf] }
 0x235   :  { %3968 = vmatmul.bf16.vlgmr.msrb.gmra.mxu0 %v9921_v17  ;;  %v6275_v17 = vld [vmem:[%s11654_s3 + $0x378] sm:$0xf0]  ;;  %v6874_v2 = vor.u32 %v7725_v50, %v6873_v46  ;;  %v7701_v46 = vld [vmem:[%s11654_s3 + $0x76c] sm:$0xf] }
 0x236   :  { %4410 = vmatpush.bf16.msra.mxu0 %v6914_v60  ;;  %v6278_v57 = vor.u32 %v7573_v21, %v6275_v17  ;;  %v3685_v1 = vpop.f32.mrf.mxu2  ;;  %v6937_v21 = vld [vmem:[%s11656_s5 + $0xa0] sm:$0xf]  ;;  %v7741_v17 = vld [vmem:[%s11656_s5 + $0xa4] sm:$0xf0] }
 0x237   :  { %3981 = vmatmul.bf16.vlgmr.msrb.gmra.mxu1 %v10069_v44  ;;  %v7669_v44 = vld [vmem:[%s11654_s3 + $0x66c] sm:$0xf]  ;;  %v6938_v13 = vor.u32 %v7741_v17, %v6937_v21 }
 0x238   :  { %4423 = vmatpush.bf16.msra.mxu1 %v6978_v19  ;;  %v6662_v28 = vor.u32 %v7669_v44, %v6659_v12  ;;  %3951 = vmatpush.bf16.msra.mxu3 %v6278_v57  ;;  %v6835_v44 = vld [vmem:[%s11654_s3 + $0x7d8] sm:$0xf0]  ;;  %v7721_v12 = vld [vmem:[%s11656_s5 + $0x4] sm:$0xf0]  ;;  %v7697_v1 = vld [vmem:[%s11654_s3 + $0x74c] sm:$0xf] }
 0x239   :  { %v7693_v17 = vld [vmem:[%s11654_s3 + $0x72c] sm:$0xf] }
 0x23a   :  { %4411 = vmatpush.bf16.msra.mxu0 %v6906_v4  ;;  %3990 = vmatpush.bf16.msrb.mxu2 %v6662_v28  ;;  %v3763_v58 = vpop.f32.mrf.mxu0  ;;  %v6851_v4 = vld [vmem:[%s11654_s3 + $0x7f8] sm:$0xf0]  ;;  %v6929_v28 = vld [vmem:[%s11656_s5 + $0x90] sm:$0xf] }
 0x23b   :  { %v6854_v19 = vor.u32 %v7717_v3, %v6851_v4  ;;  %v6930_v31 = vor.u32 %v7739_v59, %v6929_v28  ;;  %v6971_v58 = vld [vmem:[%s11656_s5 + $0xe8] sm:$0xf0]  ;;  %v6771_v4 = vld [vmem:[%s11654_s3 + $0x758] sm:$0xf0] }
 0x23c   :  { %4424 = vmatpush.bf16.msra.mxu1 %v6970_v18  ;;  %3952 = vmatpush.bf16.msra.mxu3 %v6262_v38  ;;  %v3776_v60 = vpop.f32.mrf.mxu1  ;;  %v6838_v18 = vor.u32 %v7713_v53, %v6835_v44  ;;  %v6803_v38 = vld [vmem:[%s11654_s3 + $0x798] sm:$0xf0]  ;;  %v6974_v39 = vor.u32 %v7748_v56, %v6971_v58  ;;  %v6774_v21 = vor.u32 %v7697_v1, %v6771_v4  ;;  %v6875_v28 = vld [vmem:[%s11656_s5 + $0x28] sm:$0xf0]  ;;  %v7025_v4 = vld [vmem:[%s11656_s5 + $0x150] sm:$0xf] }
 0x23d   :  { %v11253_v60 = vld [vmem:[%s11655_s4] sm:$0xf]  ;;  %v6755_v44 = vld [vmem:[%s11654_s3 + $0x738] sm:$0xf0] }
 0x23e   :  { %4412 = vmatpush.bf16.msra.mxu0 %v6898_v11  ;;  %3991 = vmatpush.bf16.msrb.mxu2 %v6646_v51  ;;  %v6857_v11 = vld [vmem:[%s11656_s5] sm:$0xf]  ;;  %v11192_v16 = vpop.f32.mrf.mxu2  ;;  %v6922_v51 = vor.u32 %v7737_v35, %v6921_v34  ;;  %v6758_v59 = vor.u32 %v7693_v17, %v6755_v44  ;;  %v6931_v56 = vld [vmem:[%s11656_s5 + $0x98] sm:$0xf0]  ;;  %v7009_v44 = vld [vmem:[%s11656_s5 + $0x130] sm:$0xf] }
 0x23f   :  { %v6858_v57 = vor.u32 %v7721_v12, %v6857_v11  ;;  %v7744_v12 = vld [vmem:[%s11656_s5 + $0xc4] sm:$0xf] }
 0x240   :  { %4425 = vmatpush.bf16.msra.mxu1 %v6962_v37  ;;  %3953 = vmatpush.bf16.msra.mxu3 %v6246_v61  ;;  %v2310_v61 = vperm.slane %v11253_v60, 2 }
 0x242   :  { %4413 = vmatpush.bf16.msra.mxu0 %v6890_v20  ;;  %3992 = vmatpush.bf16.msrb.mxu2 %v6630_v62  ;;  %v6819_v20 = vld [vmem:[%s11654_s3 + $0x7b8] sm:$0xf0]  ;;  %v7728_v62 = vld [vmem:[%s11656_s5 + $0x44] sm:$0xf] }
 0x243   :  { %v6822_v37 = vor.u32 %v7709_v29, %v6819_v20  ;;  %v6894_v36 = vor.u32 %v7728_v62, %v6891_v63  ;;  %v3736_v63 = vadd.f32 %v11192_v16, %v10964_v24  ;;  %v7033_v24 = vld [vmem:[%s11656_s5 + $0x160] sm:$0xf] }
 0x244   :  { %4426 = vmatpush.bf16.msra.mxu1 %v6954_v52  ;;  %3954 = vmatpush.bf16.msra.mxu3 %v6230_v5  ;;  %v6787_v52 = vld [vmem:[%s11654_s3 + $0x778] sm:$0xf0] }
 0x245   :  { %v6790_v0 = vor.u32 %v7701_v46, %v6787_v52  ;;  %v7738_v52 = vld [vmem:[%s11656_s5 + $0x94] sm:$0xf] }
 0x246   :  { %4414 = vmatpush.bf16.msra.mxu0 %v6882_v43  ;;  %3993 = vmatpush.bf16.msrb.mxu2 %v6614_v10  ;;  %v6899_v43 = vld [vmem:[%s11656_s5 + $0x58] sm:$0xf0]  ;;  %v3737_v33 = vpop.f32.mrf.mxu2  ;;  %v7726_v10 = vld [vmem:[%s11656_s5 + $0x34] sm:$0xf]  ;;  %v6934_v62 = vor.u32 %v7738_v52, %v6931_v56 }
 0x247   :  { %3955 = vmatmul.bf16.vlgmr.msra.gmra.mxu3 %v9762_v55  ;;  %v7705_v55 = vld [vmem:[%s11654_s3 + $0x78c] sm:$0xf]  ;;  %v6902_v50 = vor.u32 %v7730_v42, %v6899_v43 }
 0x248   :  { %4427 = vmatpush.bf16.msra.mxu1 %v6946_v8  ;;  %3999 = vmatpush.bf16.msrb.mxu3 %v6854_v19  ;;  %v6806_v45 = vor.u32 %v7705_v55, %v6803_v38  ;;  %v3696_v5 = vpop.f32.mrf.mxu3  ;;  %v6883_v19 = vld [vmem:[%s11656_s5 + $0x38] sm:$0xf0]  ;;  %v7740_v38 = vld [vmem:[%s11656_s5 + $0xa4] sm:$0xf] }
 0x249   :  { %3994 = vmatmul.bf16.vlgmr.msrb.gmra.mxu2 %v10234_v26  ;;  %v6910_v26 = vor.u32 %v7732_v30, %v6907_v32  ;;  %v6886_v14 = vor.u32 %v7726_v10, %v6883_v19  ;;  %v6739_v30 = vld [vmem:[%s11654_s3 + $0x718] sm:$0xf0] }
 0x24a   :  { %4415 = vmatpush.bf16.msra.mxu0 %v6874_v2  ;;  %v3684_v2 = vadd.f32 %v11097_v48, %v10862_v27  ;;  %v6966_v27 = vor.u32 %v7746_v6, %v6963_v7  ;;  %v6947_v32 = vld [vmem:[%s11656_s5 + $0xb8] sm:$0xf0] }
 0x24b   :  { %v6867_v55 = vld [vmem:[%s11656_s5 + $0x18] sm:$0xf0] }
 0x24c   :  { %4428 = vmatpush.bf16.msra.mxu1 %v6938_v13  ;;  %4000 = vmatpush.bf16.msrb.mxu3 %v6838_v18  ;;  %v3697_v48 = vadd.f32 %v3696_v5, %v3684_v2  ;;  %v6955_v13 = vld [vmem:[%s11656_s5 + $0xc8] sm:$0xf0] }
 0x24d   :  { %v6958_v15 = vor.u32 %v7744_v12, %v6955_v13 }
 0x24e   :  { %4416 = vmatpush.bf16.msra.mxu0 %v6866_v49  ;;  %v11284_v53 = vpop.f32.mrf.mxu2  ;;  %v4012_v11 = vmax.f32 %v3697_v48, 0.0  ;;  %v7761_v48 = vld [vmem:[%s11656_s5 + $0x144] sm:$0xf0] }
 0x250   :  { %4429 = vmatpush.bf16.msra.mxu1 %v6930_v31  ;;  %4001 = vmatpush.bf16.msrb.mxu3 %v6822_v37  ;;  %v4016_v18 = vpack.c.bf16 %v4012_v11, %v4012_v11  ;;  %v7742_v31 = vld [vmem:[%s11656_s5 + $0xb4] sm:$0xf]  ;;  %v3698_v34 = vpop.f32.mrf.mxu3 }
 0x251   :  { %v7722_v37 = vld [vmem:[%s11656_s5 + $0x14] sm:$0xf]  ;;  %v7043_v34 = vld [vmem:[%s11656_s5 + $0x178] sm:$0xf0] }
 0x252   :  { %4417 = vmatpush.bf16.msra.mxu0 %v6858_v57  ;;  %v3813_v3 = vpop.f32.mrf.mxu0  ;;  %v7724_v57 = vld [vmem:[%s11656_s5 + $0x24] sm:$0xf]  ;;  %v6870_v33 = vor.u32 %v7722_v37, %v6867_v55 }
 0x253   :  { %v3814_v8 = vadd.f32 %v3813_v3, %v2310_v61  ;;  %v6878_v35 = vor.u32 %v7724_v57, %v6875_v28  ;;  %v7764_v55 = vld [vmem:[%s11656_s5 + $0x164] sm:$0xf] }
 0x254   :  { %4430 = vmatpush.bf16.msra.mxu1 %v6922_v51  ;;  %4002 = vmatpush.bf16.msrb.mxu3 %v6806_v45  ;;  %v3826_v54 = vpop.f32.mrf.mxu1  ;;  %v6939_v51 = vld [vmem:[%s11656_s5 + $0xa8] sm:$0xf0]  ;;  %v7720_v45 = vld [vmem:[%s11656_s5 + $0x4] sm:$0xf] }
 0x255   :  { %v11282_v49 = vadd.f32 %v3826_v54, %v3814_v8  ;;  %4418 = vmatmul.bf16.vlgmr.msra.gmra.mxu0 %v4016_v18  ;;  %v6942_v46 = vor.u32 %v7740_v38, %v6939_v51  ;;  %v2311_v51 = vperm.slane %v11253_v60, 3  ;;  %v7019_v60 = vld [vmem:[%s11656_s5 + $0x148] sm:$0xf0] }
 0x256   :  { %4462 = vmatpush.bf16.msrb.mxu0 %v6918_v47  ;;  %v7689_v47 = vld [vmem:[%s11654_s3 + $0x70c] sm:$0xf]  ;;  %v3789_v42 = vpop.f32.mrf.mxu2 }
 0x257   :  { %v6742_v43 = vor.u32 %v7689_v47, %v6739_v30  ;;  %v7755_v47 = vld [vmem:[%s11656_s5 + $0x114] sm:$0xf0]  ;;  %v6985_v30 = vld [vmem:[%s11656_s5 + $0x100] sm:$0xf] }
 0x258   :  { %4475 = vmatpush.bf16.msrb.mxu1 %v6982_v9  ;;  %4003 = vmatpush.bf16.msrb.mxu3 %v6790_v0  ;;  %v7042_v9 = vor.u32 %v7767_v41, %v7041_v40  ;;  %v3748_v58 = vpop.f32.mrf.mxu3  ;;  %v6923_v0 = vld [vmem:[%s11656_s5 + $0x88] sm:$0xf0]  ;;  %v7762_v40 = vld [vmem:[%s11656_s5 + $0x154] sm:$0xf]  ;;  %v7027_v41 = vld [vmem:[%s11656_s5 + $0x158] sm:$0xf0] }
 0x259   :  { %v3749_v1 = vadd.f32 %v3748_v58, %v3736_v63  ;;  %v7030_v42 = vor.u32 %v7762_v40, %v7027_v41  ;;  %v7758_v58 = vld [vmem:[%s11656_s5 + $0x134] sm:$0xf]  ;;  %v7049_v40 = vld [vmem:[%s11656_s5 + $0x180] sm:$0xf] }
 0x25a   :  { %4463 = vmatpush.bf16.msrb.mxu0 %v6910_v26  ;;  %v3815_v29 = vpop.f32.mrf.mxu0  ;;  %v6950_v26 = vor.u32 %v7742_v31, %v6947_v32  ;;  %4436 = vmatpush.bf16.msra.mxu2 %v7042_v9  ;;  %v7753_v31 = vld [vmem:[%s11656_s5 + $0x104] sm:$0xf0]  ;;  %v7766_v32 = vld [vmem:[%s11656_s5 + $0x174] sm:$0xf] }
 0x25b   :  { %v3762_v3 = vadd.f32 %v11084_v22, %v3749_v1  ;;  %v7763_v22 = vld [vmem:[%s11656_s5 + $0x154] sm:$0xf0]  ;;  %v7046_v37 = vor.u32 %v7766_v32, %v7043_v34  ;;  %v7003_v1 = vld [vmem:[%s11656_s5 + $0x128] sm:$0xf0]  ;;  %v7773_v32 = vld [vmem:[%s11656_s5 + $0x1a4] sm:$0xf0] }
 0x25c   :  { %4476 = vmatpush.bf16.msrb.mxu1 %v6974_v39  ;;  %4004 = vmatpush.bf16.msrb.mxu3 %v6774_v21  ;;  %v3828_v20 = vpop.f32.mrf.mxu1  ;;  %v7736_v39 = vld [vmem:[%s11656_s5 + $0x84] sm:$0xf]  ;;  %v7026_v7 = vor.u32 %v7763_v22, %v7025_v4 }
 0x25d   :  { %v6926_v2 = vor.u32 %v7736_v39, %v6923_v0  ;;  %v7756_v0 = vld [vmem:[%s11656_s5 + $0x124] sm:$0xf] }
 0x25e   :  { %4464 = vmatpush.bf16.msrb.mxu0 %v6902_v50  ;;  %v6859_v50 = vld [vmem:[%s11656_s5 + $0x8] sm:$0xf0] }
 0x25f   :  { %v6862_v61 = vor.u32 %v7720_v45, %v6859_v50 }
 0x260   :  { %4477 = vmatpush.bf16.msrb.mxu1 %v6966_v27  ;;  %4005 = vmatpush.bf16.msrb.mxu3 %v6758_v59  ;;  %v3750_v16 = vpop.f32.mrf.mxu3  ;;  %v6993_v59 = vld [vmem:[%s11656_s5 + $0x110] sm:$0xf] }
 0x261   :  { %v6994_v20 = vor.u32 %v7755_v47, %v6993_v59  ;;  %v7105_v16 = vld [vmem:[%s11656_s5 + $0x1f0] sm:$0xf] }
 0x262   :  { %4465 = vmatpush.bf16.msrb.mxu0 %v6894_v36  ;;  %v3775_v36 = vadd.f32 %v11086_v25, %v3762_v3  ;;  %v7017_v25 = vld [vmem:[%s11656_s5 + $0x140] sm:$0xf]  ;;  %v7754_v3 = vld [vmem:[%s11656_s5 + $0x114] sm:$0xf]  ;;  %v7073_v47 = vld [vmem:[%s11656_s5 + $0x1b0] sm:$0xf] }
 0x263   :  { %v7018_v19 = vor.u32 %v7761_v48, %v7017_v25 }
 0x264   :  { %4478 = vmatpush.bf16.msrb.mxu1 %v6958_v15  ;;  %4006 = vmatpush.bf16.msrb.mxu3 %v6742_v43  ;;  %v3788_v27 = vadd.f32 %v11284_v53, %v3775_v36  ;;  %v7759_v53 = vld [vmem:[%s11656_s5 + $0x134] sm:$0xf0]  ;;  %v7001_v15 = vld [vmem:[%s11656_s5 + $0x120] sm:$0xf] }
 0x265   :  { %v7010_v12 = vor.u32 %v7759_v53, %v7009_v44 }
 0x266   :  { %4466 = vmatpush.bf16.msrb.mxu0 %v6886_v14 }
 0x267   :  { %4007 = vmatmul.bf16.vlgmr.msrb.gmra.mxu3 %v10403_v23  ;;  %v7765_v23 = vld [vmem:[%s11656_s5 + $0x164] sm:$0xf0] }
 0x268   :  { %4479 = vmatpush.bf16.msrb.mxu1 %v6950_v26  ;;  %v7034_v54 = vor.u32 %v7765_v23, %v7033_v24  ;;  %v3800_v10 = vpop.f32.mrf.mxu3  ;;  %v7035_v26 = vld [vmem:[%s11656_s5 + $0x168] sm:$0xf0]  ;;  %v6995_v23 = vld [vmem:[%s11656_s5 + $0x118] sm:$0xf0] }
 0x269   :  { %v3801_v21 = vadd.f32 %v3800_v10, %v3788_v27  ;;  %v7038_v38 = vor.u32 %v7764_v55, %v7035_v26  ;;  %v6998_v22 = vor.u32 %v7754_v3, %v6995_v23  ;;  %v6987_v27 = vld [vmem:[%s11656_s5 + $0x108] sm:$0xf0]  ;;  %v7075_v3 = vld [vmem:[%s11656_s5 + $0x1b8] sm:$0xf0]  ;;  %v7772_v23 = vld [vmem:[%s11656_s5 + $0x1a4] sm:$0xf] }
 0x26a   :  { %4467 = vmatpush.bf16.msrb.mxu0 %v6878_v35  ;;  %4437 = vmatpush.bf16.msra.mxu2 %v7034_v54  ;;  %v11373_v5 = vpop.f32.mrf.mxu2  ;;  %v6986_v35 = vor.u32 %v7753_v31, %v6985_v30  ;;  %v7783_v54 = vld [vmem:[%s11656_s5 + $0x1f4] sm:$0xf0]  ;;  %v7065_v31 = vld [vmem:[%s11656_s5 + $0x1a0] sm:$0xf] }
 0x26b   :  { %v4013_v17 = vmax.f32 %v3801_v21, 0.0  ;;  %v7106_v4 = vor.u32 %v7783_v54, %v7105_v16  ;;  %v3840_v25 = vadd.f32 %v11373_v5, %v11282_v49  ;;  %v7097_v21 = vld [vmem:[%s11656_s5 + $0x1e0] sm:$0xf]  ;;  %v7089_v49 = vld [vmem:[%s11656_s5 + $0x1d0] sm:$0xf] }
 0x26c   :  { %4480 = vmatpush.bf16.msrb.mxu1 %v6942_v46  ;;  %v7760_v46 = vld [vmem:[%s11656_s5 + $0x144] sm:$0xf]  ;;  %v7067_v16 = vld [vmem:[%s11656_s5 + $0x1a8] sm:$0xf0] }
 0x26d   :  { %v4017_v13 = vpack.c.bf16 %v4013_v17, %v4013_v17  ;;  %v7022_v56 = vor.u32 %v7760_v46, %v7019_v60  ;;  %4449 = vmatpush.bf16.msra.mxu3 %v7106_v4  ;;  %v7781_v17 = vld [vmem:[%s11656_s5 + $0x1e4] sm:$0xf0]  ;;  %v7780_v46 = vld [vmem:[%s11656_s5 + $0x1e4] sm:$0xf]  ;;  %v7099_v60 = vld [vmem:[%s11656_s5 + $0x1e8] sm:$0xf0]  ;;  %v7070_v54 = vor.u32 %v7772_v23, %v7067_v16 }
 0x26e   :  { %4468 = vmatpush.bf16.msrb.mxu0 %v6870_v33  ;;  %4438 = vmatpush.bf16.msra.mxu2 %v7026_v7  ;;  %v7752_v7 = vld [vmem:[%s11656_s5 + $0x104] sm:$0xf]  ;;  %v7098_v44 = vor.u32 %v7781_v17, %v7097_v21  ;;  %v7059_v4 = vld [vmem:[%s11656_s5 + $0x198] sm:$0xf0] }
 0x26f   :  { %4431 = vmatmul.bf16.vlgmr.msra.gmra.mxu1 %v4017_v13  ;;  %v6990_v48 = vor.u32 %v7752_v7, %v6987_v27 }
 0x270   :  { %4481 = vmatpush.bf16.msrb.mxu1 %v6934_v62  ;;  %v3802_v29 = vpop.f32.mrf.mxu3 }
 0x271   :  { %4450 = vmatpush.bf16.msra.mxu3 %v7098_v44  ;;  %v7775_v29 = vld [vmem:[%s11656_s5 + $0x1b4] sm:$0xf0] }
 0x272   :  { %4469 = vmatpush.bf16.msrb.mxu0 %v6862_v61  ;;  %v11369_v6 = vpop.f32.mrf.mxu0  ;;  %4439 = vmatpush.bf16.msra.mxu2 %v7018_v19  ;;  %v3841_v28 = vpop.f32.mrf.mxu2  ;;  %v7011_v61 = vld [vmem:[%s11656_s5 + $0x138] sm:$0xf0] }
 0x273   :  { %v7014_v62 = vor.u32 %v7758_v58, %v7011_v61  ;;  %v7091_v58 = vld [vmem:[%s11656_s5 + $0x1d8] sm:$0xf0] }
 0x274   :  { %4482 = vmatpush.bf16.msrb.mxu1 %v6926_v2  ;;  %v11371_v8 = vpop.f32.mrf.mxu1  ;;  %v7006_v2 = vor.u32 %v7756_v0, %v7003_v1 }
 0x275   :  { %4470 = vmatmul.bf16.vlgmr.msrb.gmra.mxu0 %v4016_v18  ;;  %v7757_v18 = vld [vmem:[%s11656_s5 + $0x124] sm:$0xf0] }
 0x276   :  { %4440 = vmatpush.bf16.msra.mxu2 %v7010_v12  ;;  %v7002_v57 = vor.u32 %v7757_v18, %v7001_v15 }
 0x27a   :  { %v3867_v11 = vpop.f32.mrf.mxu0  ;;  %4441 = vmatpush.bf16.msra.mxu2 %v7002_v57 }
 0x27c   :  { %v3880_v14 = vpop.f32.mrf.mxu1 }
 0x27d   :  { %v7081_v14 = vld [vmem:[%s11656_s5 + $0x1c0] sm:$0xf] }
 0x27e   :  { %4442 = vmatpush.bf16.msra.mxu2 %v6994_v20  ;;  %v7074_v20 = vor.u32 %v7775_v29, %v7073_v47 }
 0x27f   :  { %4483 = vmatmul.bf16.vlgmr.msrb.gmra.mxu1 %v4017_v13 }
 0x282   :  { %4443 = vmatpush.bf16.msra.mxu2 %v6986_v35 }
 0x286   :  { %4488 = vmatpush.bf16.msrb.mxu2 %v7046_v37  ;;  %v7066_v37 = vor.u32 %v7773_v32, %v7065_v31 }
 0x288   :  { %v3852_v45 = vpop.f32.mrf.mxu3 }
 0x289   :  { %v3853_v10 = vadd.f32 %v3852_v45, %v3840_v25 }
 0x28a   :  { %4489 = vmatpush.bf16.msrb.mxu2 %v7038_v38  ;;  %v3891_v52 = vpop.f32.mrf.mxu2  ;;  %v7057_v38 = vld [vmem:[%s11656_s5 + $0x190] sm:$0xf] }
 0x28b   :  { %v3866_v19 = vadd.f32 %v11369_v6, %v3853_v10  ;;  %v7779_v6 = vld [vmem:[%s11656_s5 + $0x1d4] sm:$0xf0]  ;;  %v7768_v10 = vld [vmem:[%s11656_s5 + $0x184] sm:$0xf] }
 0x28c   :  { %v7090_v5 = vor.u32 %v7779_v6, %v7089_v49 }
 0x28d   :  { %v3879_v53 = vadd.f32 %v11371_v8, %v3866_v19  ;;  %v7777_v8 = vld [vmem:[%s11656_s5 + $0x1c4] sm:$0xf0]  ;;  %v7051_v19 = vld [vmem:[%s11656_s5 + $0x188] sm:$0xf0] }
 0x28e   :  { %4490 = vmatpush.bf16.msrb.mxu2 %v7030_v42  ;;  %4451 = vmatpush.bf16.msra.mxu3 %v7090_v5  ;;  %v7082_v57 = vor.u32 %v7777_v8, %v7081_v14  ;;  %v7769_v42 = vld [vmem:[%s11656_s5 + $0x184] sm:$0xf0]  ;;  %v7054_v21 = vor.u32 %v7768_v10, %v7051_v19  ;;  %v7800_v19 = vld [vmem:[%s11660_s9] sm:$0xff] }
 0x28f   :  { %v3892_v13 = vadd.f32 %v3891_v52, %v3879_v53  ;;  %v7102_v52 = vor.u32 %v7780_v46, %v7099_v60  ;;  %v7784_v46 = vld [vmem:[%s11658_s7] sm:$0xff]  ;;  %v7801_v10 = vld [vmem:[%s11660_s9 + $0x8] sm:$0xff] }
 0x290   :  { %v3854_v24 = vpop.f32.mrf.mxu3  ;;  %v7796_v60 = vld [vmem:[%s11658_s7 + $0x60] sm:$0xff] }
 0x292   :  { %v3917_v43 = vpop.f32.mrf.mxu0  ;;  %4491 = vmatpush.bf16.msrb.mxu2 %v7022_v56  ;;  %v3893_v36 = vpop.f32.mrf.mxu2  ;;  %4452 = vmatpush.bf16.msra.mxu3 %v7082_v57  ;;  %v7778_v56 = vld [vmem:[%s11656_s5 + $0x1d4] sm:$0xf] }
 0x293   :  { %v3918_v33 = vadd.f32 %v3917_v43, %v2311_v51  ;;  %v7771_v51 = vld [vmem:[%s11656_s5 + $0x194] sm:$0xf0]  ;;  %v7782_v43 = vld [vmem:[%s11656_s5 + $0x1f4] sm:$0xf]  ;;  %v7094_v61 = vor.u32 %v7778_v56, %v7091_v58  ;;  %v7793_v58 = vld [vmem:[%s11658_s7 + $0x48] sm:$0xff] }
 0x294   :  { %v3930_v9 = vpop.f32.mrf.mxu1  ;;  %v7058_v41 = vor.u32 %v7771_v51, %v7057_v38  ;;  %v7770_v36 = vld [vmem:[%s11656_s5 + $0x194] sm:$0xf]  ;;  %v7788_v51 = vld [vmem:[%s11658_s7 + $0x20] sm:$0xff] }
 0x295   :  { %v11431_v50 = vadd.f32 %v3930_v9, %v3918_v33  ;;  %v7107_v9 = vld [vmem:[%s11656_s5 + $0x1f8] sm:$0xf0]  ;;  %v7050_v33 = vor.u32 %v7769_v42, %v7049_v40  ;;  %v7062_v27 = vor.u32 %v7770_v36, %v7059_v4  ;;  %v7786_v42 = vld [vmem:[%s11658_s7 + $0x10] sm:$0xff] }
 0x296   :  { %4492 = vmatpush.bf16.msrb.mxu2 %v7014_v62  ;;  %4453 = vmatpush.bf16.msra.mxu3 %v7074_v20  ;;  %v7110_v45 = vor.u32 %v7782_v43, %v7107_v9  ;;  %v7776_v62 = vld [vmem:[%s11656_s5 + $0x1c4] sm:$0xf]  ;;  %v7787_v40 = vld [vmem:[%s11658_s7 + $0x18] sm:$0xff]  ;;  %v7794_v56 = vld [vmem:[%s11658_s7 + $0x50] sm:$0xff] }
 0x29a   :  { %v3919_v63 = vpop.f32.mrf.mxu0  ;;  %4493 = vmatpush.bf16.msrb.mxu2 %v7006_v2  ;;  %4454 = vmatpush.bf16.msra.mxu3 %v7066_v37  ;;  %v7774_v2 = vld [vmem:[%s11656_s5 + $0x1b4] sm:$0xf] }
 0x29b   :  { %v7083_v63 = vld [vmem:[%s11656_s5 + $0x1c8] sm:$0xf0]  ;;  %v7078_v24 = vor.u32 %v7774_v2, %v7075_v3  ;;  %v7790_v37 = vld [vmem:[%s11658_s7 + $0x30] sm:$0xff] }
 0x29c   :  { %v3932_v39 = vpop.f32.mrf.mxu1  ;;  %v7086_v1 = vor.u32 %v7776_v62, %v7083_v63  ;;  %v7807_v62 = vld [vmem:[%s11660_s9 + $0x38] sm:$0xff]  ;;  %v7806_v63 = vld [vmem:[%s11660_s9 + $0x30] sm:$0xff] }
 0x29e   :  { %4494 = vmatpush.bf16.msrb.mxu2 %v6998_v22  ;;  %4455 = vmatpush.bf16.msra.mxu3 %v7058_v41 }
 0x2a2   :  { %4495 = vmatpush.bf16.msrb.mxu2 %v6990_v48  ;;  %4456 = vmatpush.bf16.msra.mxu3 %v7050_v33  ;;  %v7785_v33 = vld [vmem:[%s11658_s7 + $0x8] sm:$0xff] }
 0x2a6   :  { %4501 = vmatpush.bf16.msrb.mxu3 %v7110_v45  ;;  %v7797_v45 = vld [vmem:[%s11658_s7 + $0x68] sm:$0xff] }
 0x2a8   :  { %v3904_v15 = vpop.f32.mrf.mxu3 }
 0x2a9   :  { %v3905_v28 = vadd.f32 %v3904_v15, %v3892_v13  ;;  %v4084_v15 = vld [vmem:[%s11657_s6] sm:$0x3] }
 0x2aa   :  { %v3943_v18 = vpop.f32.mrf.mxu2  ;;  %4502 = vmatpush.bf16.msrb.mxu3 %v7102_v52  ;;  %v7795_v52 = vld [vmem:[%s11658_s7 + $0x58] sm:$0xff] }
 0x2ab   :  { %v4014_v59 = vmax.f32 %v3905_v28, 0.0  ;;  %v3944_v48 = vadd.f32 %v3943_v18, %v11431_v50  ;;  %v4086_v28 = vperm.slane %v4084_v15, 0 }
 0x2ad   :  { %v4018_v30 = vpack.c.bf16 %v4014_v59, %v4014_v59 }
 0x2ae   :  { %4503 = vmatpush.bf16.msrb.mxu3 %v7094_v61  ;;  %v7792_v61 = vld [vmem:[%s11658_s7 + $0x40] sm:$0xff] }
 0x2af   :  { %4444 = vmatmul.bf16.vlgmr.msra.gmra.mxu2 %v4018_v30 }
 0x2b0   :  { %v3906_v55 = vpop.f32.mrf.mxu3  ;;  %4746 = vmatpush.bf16.msra.mxu2 %v7807_v62 }
 0x2b1   :  { %v7798_v55 = vld [vmem:[%s11658_s7 + $0x70] sm:$0xff] }
 0x2b2   :  { %v11479_v11 = vpop.f32.mrf.mxu0  ;;  %v3945_v26 = vpop.f32.mrf.mxu2  ;;  %4504 = vmatpush.bf16.msrb.mxu3 %v7086_v1 }
 0x2b3   :  { %v7789_v26 = vld [vmem:[%s11658_s7 + $0x28] sm:$0xff] }
 0x2b4   :  { %v11481_v12 = vpop.f32.mrf.mxu1  ;;  %4747 = vmatpush.bf16.msra.mxu2 %v7806_v63 }
 0x2b6   :  { %4505 = vmatpush.bf16.msrb.mxu3 %v7078_v24 }
 0x2ba   :  { %v3971_v34 = vpop.f32.mrf.mxu0  ;;  %4506 = vmatpush.bf16.msrb.mxu3 %v7070_v54 }
 0x2bb   :  { %v7791_v34 = vld [vmem:[%s11658_s7 + $0x38] sm:$0xff] }
 0x2bc   :  { %v3984_v35 = vpop.f32.mrf.mxu1  ;;  %4650 = vmatpush.bf16.msra.mxu0 %v7791_v34 }
 0x2bd   :  { %v7799_v35 = vld [vmem:[%s11658_s7 + $0x78] sm:$0xff] }
 0x2be   :  { %4507 = vmatpush.bf16.msrb.mxu3 %v7062_v27  ;;  %4663 = vmatpush.bf16.msra.mxu1 %v7799_v35  ;;  %v7804_v27 = vld [vmem:[%s11660_s9 + $0x20] sm:$0xff] }
 0x2bf   :  { %4496 = vmatmul.bf16.vlgmr.msrb.gmra.mxu2 %v4018_v30 }
 0x2c0   :  { %4651 = vmatpush.bf16.msra.mxu0 %v7790_v37 }
 0x2c2   :  { %4508 = vmatpush.bf16.msrb.mxu3 %v7054_v21  ;;  %4664 = vmatpush.bf16.msra.mxu1 %v7798_v55 }
 0x2c4   :  { %4652 = vmatpush.bf16.msra.mxu0 %v7789_v26 }
 0x2c6   :  { %4665 = vmatpush.bf16.msra.mxu1 %v7797_v45 }
 0x2c8   :  { %4653 = vmatpush.bf16.msra.mxu0 %v7788_v51 }
 0x2ca   :  { %v3956_v39 = vpop.f32.mrf.mxu3  ;;  %4666 = vmatpush.bf16.msra.mxu1 %v7796_v60 }
 0x2cb   :  { %v3957_v17 = vadd.f32 %v3956_v39, %v3944_v48  ;;  %v7802_v48 = vld [vmem:[%s11660_s9 + $0x10] sm:$0xff] }
 0x2cc   :  { %v3995_v0 = vpop.f32.mrf.mxu2  ;;  %4654 = vmatpush.bf16.msra.mxu0 %v7787_v40 }
 0x2cd   :  { %v3970_v44 = vadd.f32 %v11479_v11, %v3957_v17 }
 0x2ce   :  { %4667 = vmatpush.bf16.msra.mxu1 %v7795_v52 }
 0x2cf   :  { %v3983_v49 = vadd.f32 %v11481_v12, %v3970_v44  ;;  %v4087_v12 = vperm.slane %v4084_v15, 1  ;;  %v7811_v44 = vld [vmem:[%s11659_s8] ss:$0 sm:$0xff] }
 0x2d0   :  { %4655 = vmatpush.bf16.msra.mxu0 %v7786_v42  ;;  %v7812_v15 = vld [vmem:[%s11661_s10] ss:$0 sm:$0xff]  ;;  %s4798_s10 = sshll.u32 %s11664_s13, 4  ;;  %s4799_s10 = int_to_ptr.hbm [resolvable:$true] %s4798_s10 }
 0x2d1   :  { %v3996_v6 = vadd.f32 %v3995_v0, %v3983_v49 }
 0x2d2   :  { %v3958_v22 = vpop.f32.mrf.mxu3  ;;  %v4419_v25 = vpop.f32.mrf.mxu0  ;;  %4668 = vmatpush.bf16.msra.mxu1 %v7794_v56 }
 0x2d3   :  { %v4420_v59 = vadd.f32 %v4419_v25, %v4086_v28  ;;  %v7803_v25 = vld [vmem:[%s11660_s9 + $0x18] sm:$0xff] }
 0x2d4   :  { %v3997_v7 = vpop.f32.mrf.mxu2  ;;  %4656 = vmatpush.bf16.msra.mxu0 %v7785_v33 }
 0x2d5   :  { %v7805_v7 = vld [vmem:[%s11660_s9 + $0x28] sm:$0xff] }
 0x2d6   :  { %4669 = vmatpush.bf16.msra.mxu1 %v7793_v58  ;;  %4748 = vmatpush.bf16.msra.mxu2 %v7805_v7 }
 0x2d8   :  { %4657 = vmatpush.bf16.msra.mxu0 %v7784_v46 }
 0x2da   :  { %v4421_v53 = vpop.f32.mrf.mxu0  ;;  %4670 = vmatpush.bf16.msra.mxu1 %v7792_v61  ;;  %4749 = vmatpush.bf16.msra.mxu2 %v7804_v27 }
 0x2de   :  { %4750 = vmatpush.bf16.msra.mxu2 %v7803_v25 }
 0x2e2   :  { %4751 = vmatpush.bf16.msra.mxu2 %v7802_v48 }
 0x2e6   :  { %4752 = vmatpush.bf16.msra.mxu2 %v7801_v10 }
 0x2ea   :  { %v4008_v5 = vpop.f32.mrf.mxu3  ;;  %4753 = vmatpush.bf16.msra.mxu2 %v7800_v19 }
 0x2eb   :  { %v4009_v13 = vadd.f32 %v4008_v5, %v3996_v6 }
 0x2ec   :  { %v4432_v47 = vpop.f32.mrf.mxu1 }
 0x2ed   :  { %v4015_v14 = vmax.f32 %v4009_v13, 0.0  ;;  %v4433_v11 = vadd.f32 %v4432_v47, %v4420_v59 }
 0x2ef   :  { %v4019_v8 = vpack.c.bf16 %v4015_v14, %v4015_v14  ;;  %v4762_v14 = vld [vmem:[#allocation2] sm:$0x1] }
 0x2f1   :  { %4457 = vmatmul.bf16.vlgmr.msra.gmra.mxu3 %v4019_v8 }
 0x2f2   :  { %v4471_v50 = vpop.f32.mrf.mxu0  ;;  %v4010_v18 = vpop.f32.mrf.mxu3 }
 0x2f3   :  { %v4472_v20 = vadd.f32 %v4471_v50, %v4087_v12 }
 0x2f4   :  { %v4434_v29 = vpop.f32.mrf.mxu1 }
 0x2f5   :  { %v4761_v29 = vld [vmem:[%s11662_s11] sm:$0x1] }
 0x2fa   :  { %v4473_v57 = vpop.f32.mrf.mxu0 }
 0x2fc   :  { %v4484_v30 = vpop.f32.mrf.mxu1 }
 0x2fd   :  { %v4485_v31 = vadd.f32 %v4484_v30, %v4472_v20 }
 0x301   :  { %4509 = vmatmul.bf16.vlgmr.msrb.gmra.mxu3 %v4019_v8  ;;  %v7841_v8 = vmov 0  }
 0x302   :  { %7810 = vset.pattern.permute.xlu0 %v7841_v8 }
 0x303   :  { %4765 = vperm.xlu0 %7810, %v4762_v14  }
 0x304   :  { %v4486_v32 = vpop.f32.mrf.mxu1 }
 0x332   :  { %v4445_v38 = vpop.f32.mrf.mxu2 }
 0x333   :  { %v4446_v39 = vadd.f32 %v4445_v38, %v4433_v11 }
 0x33a   :  { %v4447_v41 = vpop.f32.mrf.mxu2 }
 0x342   :  { %v4497_v43 = vpop.f32.mrf.mxu2 }
 0x343   :  { %v4498_v23 = vadd.f32 %v4497_v43, %v4485_v31 }
 0x34a   :  { %v4499_v9 = vpop.f32.mrf.mxu2 }
 0x374   :  { %v4458_v0 = vpop.f32.mrf.mxu3 }
 0x375   :  { %v4459_v1 = vadd.f32 %v4458_v0, %v4446_v39  ;;  %v4766_v12 = vpop.permute.xlu0 %4765 }
 0x376   :  { %v4768_v20 = vperm.slane %v4766_v12, 0 }
 0x377   :  { %v4514_v2 = vmax.f32 %v4459_v1, 0.0 }
 0x379   :  { %v4516_v3 = vpack.c.bf16 %v4514_v2, %v4514_v2 }
 0x37b   :  { %4658 = vmatmul.bf16.vlgmr.msra.gmra.mxu0 %v4516_v3 }
 0x37c   :  { %v4460_v24 = vpop.f32.mrf.mxu3 }
 0x384   :  { %v4510_v16 = vpop.f32.mrf.mxu3 }
 0x385   :  { %v4511_v54 = vadd.f32 %v4510_v16, %v4498_v23 }
 0x387   :  { %v4515_v36 = vmax.f32 %v4511_v54, 0.0 }
 0x389   :  { %v4517_v4 = vpack.c.bf16 %v4515_v36, %v4515_v36 }
 0x38b   :  { %4671 = vmatmul.bf16.vlgmr.msra.gmra.mxu1 %v4517_v4 }
 0x38c   :  { %v4512_v22 = vpop.f32.mrf.mxu3 }
 0x3f8   :  { %v4659_v21 = vpop.f32.mrf.mxu0 }
 0x3f9   :  { %v4660_v53 = vadd.f32 %v7811_v44, %v4659_v21 }
 0x400   :  { %v4661_v17 = vpop.f32.mrf.mxu0 }
 0x408   :  { %v4672_v49 = vpop.f32.mrf.mxu1 }
 0x409   :  { %v4673_v6 = vadd.f32 %v4672_v49, %v4660_v53 }
 0x40b   :  { %v4676_v5 = vmax.f32 %v4673_v6, 0.0 }
 0x40d   :  { %v4677_v50 = vpack.c.bf16 %v4676_v5, %v4676_v5 }
 0x40f   :  { %4754 = vmatmul.bf16.vlgmr.msra.gmra.mxu2 %v4677_v50 }
 0x410   :  { %v4674_v13 = vpop.f32.mrf.mxu1 }
 0x492   :  { %v4755_v18 = vpop.f32.mrf.mxu2 }
 0x493   :  { %v4756_v57 = vadd.f32 %v7812_v15, %v4755_v18 }
 0x495   :  { %v4759_v28 = vmax.f32 %v4756_v57, 0.0 }
 0x497   :  { %v4760_v59 = vpack.c.bf16 %v4759_v28, %v4759_v28 }
 0x499   :  { %v4774_v47 = vsel %vm4769_vm0, %v4760_v59, 0 }
 0x49a   :  { %v4757_v11 = vpop.f32.mrf.mxu2  ;;  %4783 = vmatpush.bf16.xpose.msra.mxu3 %v4774_v47 }
 0x4a1   :  { %7207 = vmatmul.msk.bf16.vlgmr.msra.gmra.mxu3 %vm4769_vm0, %v4761_v29 }
 0x524   :  { %v4785_v30 = vpop.f32.mrf.mxu3 }
 0x525   :  { %v4786_v31 = vadd.f32 %v4785_v30, %v4768_v20 }
 0x527   :  { %4790 = vst.msk [vmem:[#allocation3] sm:$0x1] %vm4789_vm1, %v4786_v31 }
 0x528   :  { %4801 = dma.vmem_to_hbm [thread:$0]  %s4797_s23, 16, %s4799_s10, [#allocation4]  }
 0x52c   :  { %v4787_v32 = vpop.f32.mrf.mxu3 }
 0x52d   :  { %7839 = dma.done.wait [#allocation4], 16  }
 0x52e   :  { %7840 = vsyncadd [#allocation4], 4294967280 }
 0x52f   :  { %4806 = vsyncpa [#allocation4], 1 }

</bundles_post_ra>
